<compile_context>
chip_gen: v7x
topology: tpu7x:2x2x1
jax: 0.10.0
libtpu: 0.0.40
codegen_flags: <defaults>
</compile_context>

<pallas_src>
import functools

import numpy as np
import jax
import jax.numpy as jnp
from jax.experimental import pallas as pl
from jax.experimental.pallas import tpu as pltpu

L = 150                    # sequence length (fixed by Linear(32*150, 64))
CIN = 4                    # input channels
KW = 3                     # conv kernel width
COUT = 32                  # conv output channels
HID = 64                   # hidden width
DEC_OUT = L * CIN          # 600 decoder outputs before .view(-1, 150, 4)
DEC_PAD = 640              # 5 * 128 -> lane-dense decoder matmul / store
TC = 8                     # conv timesteps handled per block-diagonal matmul
LPAD = 152                 # L padded so LPAD % TC == 0 and LPAD*COUT % 128 == 0
NCHUNK = LPAD // TC        # 19
CHUNK_IN = TC * KW * CIN   # 96  im2col columns per chunk
CHUNK_OUT = TC * COUT      # 256 flattened-activation columns per chunk (2 vregs wide)
KFLAT = LPAD * COUT        # 4864 = 38 * 128


# ---------------------------------------------------------------------------
# Fused kernel: conv(+ReLU, flattened) -> encoder MLP -> reparam -> decoder MLP
# ---------------------------------------------------------------------------
def _cvae_fused_kernel(latent_dim,
                       xcol_ref, eps_ref, cond_ref,
                       wcb_ref, bcb_ref, w1_ref, b1_ref, w2_ref, b2_ref,
                       wd1z_ref, wd1c_ref, bd1_ref, wd2_ref, bd2_ref,
                       recon_ref, stats_ref, hbuf_ref):
    mm_dtype = w1_ref.dtype

    # Conv1d(k=3, pad=1) + ReLU + Flatten, fused: each chunk contracts a 96-wide im2col
    # slice against the block-diagonal tap matrix and writes a 128-aligned 256-wide slab
    # of the flattened activation straight into VMEM (no HBM round-trip, no reshape).
    for c in range(NCHUNK):
        xc = xcol_ref[:, c * CHUNK_IN:(c + 1) * CHUNK_IN].astype(wcb_ref.dtype)
        pre = jnp.dot(xc, wcb_ref[...], preferred_element_type=jnp.float32) + bcb_ref[...]
        hbuf_ref[:, c * CHUNK_OUT:(c + 1) * CHUNK_OUT] = jnp.maximum(pre, 0.0)

    hflat = hbuf_ref[...].astype(mm_dtype)

    # Encoder MLP
    h1 = jnp.dot(hflat, w1_ref[...], preferred_element_type=jnp.float32) + b1_ref[...]
    h1 = jnp.maximum(h1, 0.0)

    # mean/logvar in one merged matmul; torch.chunk(h, 2) == lane split
    stats = jnp.dot(h1, w2_ref[...], preferred_element_type=jnp.float32) + b2_ref[...]
    stats_ref[...] = stats
    mean = stats[:, :latent_dim]
    logvar = stats[:, latent_dim:]

    # Reparameterize: z = eps * exp(0.5 * logvar) + mean   (eps supplied by host RNG)
    z = eps_ref[...] * jnp.exp(0.5 * logvar) + mean

    # Decoder:  cat([z, cond], 1) @ Wd1  ==  z @ Wd1[:LD] + cond * Wd1[LD]
    d1 = (jnp.dot(z, wd1z_ref[...], preferred_element_type=jnp.float32)
          + cond_ref[...] * wd1c_ref[...] + bd1_ref[...])
    d1 = jnp.maximum(d1, 0.0)
    d2 = (jnp.dot(d1.astype(mm_dtype), wd2_ref[...], preferred_element_type=jnp.float32)
          + bd2_ref[...])
    recon_ref[...] = jax.nn.sigmoid(d2)          # lane-dense (TB, 640) store


# ---------------------------------------------------------------------------
# Wrapper: host-side glue (batch pad, im2col, lane-dense flatten) + pallas_call
# ---------------------------------------------------------------------------
def cvae_forward(x, condition, eps, params, *, block_b=64):
    B = x.shape[0]
    latent_dim = eps.shape[1]
    block_b = min(block_b, max(8, ((B + 7) // 8) * 8))   # shrink tile for small batches
    bp = ((B + block_b - 1) // block_b) * block_b

    # Batch pad (zeros), Conv1d zero padding, im2col -> (bp, L, 12), pad time to LPAD,
    # flatten lane-dense to (bp, 1824).
    xf = jnp.pad(x.astype(jnp.float32), ((0, bp - B), (0, 0), (0, 0)))
    cond = jnp.pad(condition.astype(jnp.float32), ((0, bp - B), (0, 0)))
    epsp = jnp.pad(eps.astype(jnp.float32), ((0, bp - B), (0, 0)))

    xp = jnp.pad(xf, ((0, 0), (1, 1), (0, 0)))
    xcol = jnp.concatenate([xp[:, 0:L], xp[:, 1:L + 1], xp[:, 2:L + 2]], axis=-1)
    xcol = jnp.pad(xcol, ((0, 0), (0, LPAD - L), (0, 0)))
    xcol = xcol.reshape(bp, LPAD * KW * CIN)

    kernel = functools.partial(_cvae_fused_kernel, latent_dim)
    wspec = lambda a: pl.BlockSpec(a.shape, lambda i: (0, 0))     # VMEM-resident weights

    recon_pad, stats = pl.pallas_call(
        kernel,
        out_shape=(
            jax.ShapeDtypeStruct((bp, DEC_PAD), jnp.float32),
            jax.ShapeDtypeStruct((bp, 2 * latent_dim), jnp.float32),
        ),
        grid=(bp // block_b,),
        in_specs=[
            pl.BlockSpec((block_b, LPAD * KW * CIN), lambda i: (i, 0)),   # xcol
            pl.BlockSpec((block_b, latent_dim), lambda i: (i, 0)),        # eps
            pl.BlockSpec((block_b, 1), lambda i: (i, 0)),                 # condition
            wspec(params["wcb"]), wspec(params["bcb"]),
            wspec(params["w1"]), wspec(params["b1"]),
            wspec(params["w2"]), wspec(params["b2"]),
            wspec(params["wd1z"]), wspec(params["wd1c"]), wspec(params["bd1"]),
            wspec(params["wd2"]), wspec(params["bd2"]),
        ],
        out_specs=(
            pl.BlockSpec((block_b, DEC_PAD), lambda i: (i, 0)),
            pl.BlockSpec((block_b, 2 * latent_dim), lambda i: (i, 0)),
        ),
        scratch_shapes=[pltpu.VMEM((block_b, KFLAT), jnp.float32)],        # flattened conv act
        compiler_params=pltpu.CompilerParams(dimension_semantics=("parallel",)),
    )(xcol, epsp, cond,
      params["wcb"], params["bcb"], params["w1"], params["b1"],
      params["w2"], params["b2"],
      params["wd1z"], params["wd1c"], params["bd1"],
      params["wd2"], params["bd2"])

    recon = recon_pad[:B, :DEC_OUT].reshape(B, L, CIN)   # matches torch .view(-1, 150, 4)
    mean = stats[:B, :latent_dim]
    logvar = stats[:B, latent_dim:]
    return recon, mean, logvar


# ---------------------------------------------------------------------------
# Parameter init (PyTorch-shaped, then converted to kernel layout)
# ---------------------------------------------------------------------------
def init_params(key, latent_dim):
    ks = jax.random.split(key, 10)

    def uni(k, shape, fan_in):
        bound = 1.0 / float(np.sqrt(fan_in))
        return jax.random.uniform(k, shape, jnp.float32, -bound, bound)

    wconv_pt = uni(ks[0], (COUT, CIN, KW), CIN * KW)     # torch Conv1d weight (out,in,k)
    bconv_pt = uni(ks[1], (COUT,), CIN * KW)
    w1_pt = uni(ks[2], (HID, COUT * L), COUT * L)        # torch Linear(4800, 64)
    b1_pt = uni(ks[3], (HID,), COUT * L)
    w2_pt = uni(ks[4], (2 * latent_dim, HID), HID)       # torch Linear(64, 2*latent)
    b2_pt = uni(ks[5], (2 * latent_dim,), HID)
    wd1_pt = uni(ks[6], (HID, latent_dim + 1), latent_dim + 1)
    bd1_pt = uni(ks[7], (HID,), latent_dim + 1)
    wd2_pt = uni(ks[8], (DEC_OUT, HID), HID)
    bd2_pt = uni(ks[9], (DEC_OUT,), HID)

    # conv taps -> (k*CIN + ci, co) matching the im2col column order
    wc = jnp.transpose(wconv_pt, (2, 1, 0)).reshape(KW * CIN, COUT)
    wcb = jnp.kron(jnp.eye(TC, dtype=jnp.float32), wc)               # (96, 256) block-diag
    bcb = jnp.tile(bconv_pt, (TC,)).reshape(1, CHUNK_OUT)            # (1, 256)

    # Linear(32*150, 64): permute rows torch co*L+t -> kernel t*COUT+co, pad to 4864 rows
    w1 = jnp.transpose(w1_pt.reshape(HID, COUT, L), (2, 1, 0)).reshape(L * COUT, HID)
    w1 = jnp.pad(w1, ((0, KFLAT - L * COUT), (0, 0)))

    wd1 = jnp.transpose(wd1_pt, (1, 0))                              # (latent+1, 64)
    wd2 = jnp.pad(jnp.transpose(wd2_pt, (1, 0)), ((0, 0), (0, DEC_PAD - DEC_OUT)))
    bd2 = jnp.pad(bd2_pt, ((0, DEC_PAD - DEC_OUT),)).reshape(1, DEC_PAD)

    return {
        "wcb": wcb, "bcb": bcb,
        "w1": w1, "b1": b1_pt.reshape(1, HID),
        "w2": jnp.transpose(w2_pt, (1, 0)),            # (64, 2*latent) merged mean|logvar
        "b2": b2_pt.reshape(1, 2 * latent_dim),
        "wd1z": wd1[:latent_dim], "wd1c": wd1[latent_dim:],
        "bd1": bd1_pt.reshape(1, HID),
        "wd2": wd2, "bd2": bd2,
    }


def cast_matmul_weights(params, dtype):
    """bf16 storage for the large matmul weights (f32 accumulation in-kernel)."""
    out = dict(params)
    for k in ("wcb", "w1", "wd2"):
        out[k] = params[k].astype(dtype)
    return out


# Pure-JAX reference (same math) for correctness checking.
def reference_forward(x, condition, eps, params):
    wc = params["wcb"][:KW * CIN, :COUT]
    bc = params["bcb"][0, :COUT]
    xp = jnp.pad(x, ((0, 0), (1, 1), (0, 0)))
    xcol = jnp.concatenate([xp[:, 0:L], xp[:, 1:L + 1], xp[:, 2:L + 2]], axis=-1)
    conv = jax.nn.relu(jnp.einsum("blj,jf->blf", xcol, wc) + bc)
    hflat = conv.reshape(x.shape[0], L * COUT)
    h1 = jax.nn.relu(hflat @ params["w1"][:L * COUT] + params["b1"])
    stats = h1 @ params["w2"] + params["b2"]
    ld = eps.shape[1]
    mean, logvar = stats[:, :ld], stats[:, ld:]
    z = eps * jnp.exp(0.5 * logvar) + mean
    d1 = jax.nn.relu(z @ params["wd1z"] + condition * params["wd1c"] + params["bd1"])
    recon = jax.nn.sigmoid(d1 @ params["wd2"][:, :DEC_OUT] + params["bd2"][:, :DEC_OUT])
    return recon.reshape(-1, L, CIN), mean, logvar


if __name__ == "__main__":
    B = 2
    latent_dim = 8

    key = jax.random.PRNGKey(0)
    kx, kc, keps, kp = jax.random.split(key, 4)
    x = jax.random.uniform(kx, (B, L, CIN), jnp.float32)        # (batch, 150, 4)
    condition = jax.random.uniform(kc, (B, 1), jnp.float32)     # (batch, 1)
    # TODO(synk): torch.randn_like draws eps inside the module; here the reparameterization
    # noise is drawn with jax.random on the host and passed into the kernel.
    eps = jax.random.normal(keps, (B, latent_dim), jnp.float32)
    params = init_params(kp, latent_dim)

    fwd = jax.jit(cvae_forward)

    # f32 weights: bit-tight check against the pure-JAX reference.
    recon, mean, logvar = jax.block_until_ready(fwd(x, condition, eps, params))
    ref_recon, ref_mean, ref_logvar = reference_forward(x, condition, eps, params)
    assert recon.shape == (B, L, CIN)
    assert mean.shape == (B, latent_dim) and logvar.shape == (B, latent_dim)
    np.testing.assert_allclose(np.asarray(recon), np.asarray(ref_recon), rtol=1e-5, atol=1e-5)
    np.testing.assert_allclose(np.asarray(mean), np.asarray(ref_mean), rtol=1e-5, atol=1e-5)
    np.testing.assert_allclose(np.asarray(logvar), np.asarray(ref_logvar), rtol=1e-5, atol=1e-5)

    # bf16 matmul-weight fast path (v6e/v7x): same kernel, looser tolerance.
    params_bf16 = cast_matmul_weights(params, jnp.bfloat16)
    recon_b, mean_b, logvar_b = jax.block_until_ready(fwd(x, condition, eps, params_bf16))
    np.testing.assert_allclose(np.asarray(recon_b), np.asarray(ref_recon), rtol=5e-2, atol=5e-2)
    np.testing.assert_allclose(np.asarray(mean_b), np.asarray(ref_mean), rtol=5e-2, atol=5e-2)
    np.testing.assert_allclose(np.asarray(logvar_b), np.asarray(ref_logvar), rtol=5e-2, atol=5e-2)

    print("KERNEL_OK")
</pallas_src>

<mosaic_0001>
module attributes {stable_mosaic.version = 11 : i64} {
  func.func @_cvae_fused_kernel(%arg0: i32, %arg1: memref<8x1824xf32, #tpu.memory_space<vmem>>, %arg2: memref<8x8xf32, #tpu.memory_space<vmem>>, %arg3: memref<8x1xf32, #tpu.memory_space<vmem>>, %arg4: memref<96x256xf32, #tpu.memory_space<vmem>>, %arg5: memref<1x256xf32, #tpu.memory_space<vmem>>, %arg6: memref<4864x64xf32, #tpu.memory_space<vmem>>, %arg7: memref<1x64xf32, #tpu.memory_space<vmem>>, %arg8: memref<64x16xf32, #tpu.memory_space<vmem>>, %arg9: memref<1x16xf32, #tpu.memory_space<vmem>>, %arg10: memref<8x64xf32, #tpu.memory_space<vmem>>, %arg11: memref<1x64xf32, #tpu.memory_space<vmem>>, %arg12: memref<1x64xf32, #tpu.memory_space<vmem>>, %arg13: memref<64x640xf32, #tpu.memory_space<vmem>>, %arg14: memref<1x640xf32, #tpu.memory_space<vmem>>, %arg15: memref<8x640xf32, #tpu.memory_space<vmem>>, %arg16: memref<8x16xf32, #tpu.memory_space<vmem>>, %arg17: memref<8x4864xf32, #tpu.memory_space<vmem>>) attributes {dimension_semantics = [#tpu.dimension_semantics<parallel>], iteration_bounds = array<i64: 1>, scalar_prefetch = 0 : i64, scratch_operands = 1 : i64, tpu.core_type = #tpu.core_type<tc>, window_params = [{transform_indices = @transform_0, window_bounds = array<i64: 8, 1824>}, {transform_indices = @transform_1, window_bounds = array<i64: 8, 8>}, {transform_indices = @transform_2, window_bounds = array<i64: 8, 1>}, {pipeline_mode = #tpu.pipeline_mode<synchronous>, transform_indices = @transform_3, window_bounds = array<i64: 96, 256>}, {pipeline_mode = #tpu.pipeline_mode<synchronous>, transform_indices = @transform_4, window_bounds = array<i64: 1, 256>}, {pipeline_mode = #tpu.pipeline_mode<synchronous>, transform_indices = @transform_5, window_bounds = array<i64: 4864, 64>}, {pipeline_mode = #tpu.pipeline_mode<synchronous>, transform_indices = @transform_6, window_bounds = array<i64: 1, 64>}, {pipeline_mode = #tpu.pipeline_mode<synchronous>, transform_indices = @transform_7, window_bounds = array<i64: 64, 16>}, {pipeline_mode = #tpu.pipeline_mode<synchronous>, transform_indices = @transform_8, window_bounds = array<i64: 1, 16>}, {pipeline_mode = #tpu.pipeline_mode<synchronous>, transform_indices = @transform_9, window_bounds = array<i64: 8, 64>}, {pipeline_mode = #tpu.pipeline_mode<synchronous>, transform_indices = @transform_10, window_bounds = array<i64: 1, 64>}, {pipeline_mode = #tpu.pipeline_mode<synchronous>, transform_indices = @transform_11, window_bounds = array<i64: 1, 64>}, {pipeline_mode = #tpu.pipeline_mode<synchronous>, transform_indices = @transform_12, window_bounds = array<i64: 64, 640>}, {pipeline_mode = #tpu.pipeline_mode<synchronous>, transform_indices = @transform_13, window_bounds = array<i64: 1, 640>}, {transform_indices = @transform_14, window_bounds = array<i64: 8, 640>}, {transform_indices = @transform_15, window_bounds = array<i64: 8, 16>}]} {
    %c0 = arith.constant 0 : index
    %c0_0 = arith.constant 0 : index
    %0 = vector.load %arg1[%c0, %c0_0] : memref<8x1824xf32, #tpu.memory_space<vmem>>, vector<8x96xf32>
    %c0_1 = arith.constant 0 : index
    %c0_2 = arith.constant 0 : index
    %1 = vector.load %arg4[%c0_1, %c0_2] : memref<96x256xf32, #tpu.memory_space<vmem>>, vector<96x256xf32>
    %cst = arith.constant dense<0.000000e+00> : vector<8x256xf32>
    %2 = tpu.matmul %0, %1, %cst {dimension_numbers = #tpu.dot_dimension_numbers<[1], [0], [0], [1], [0, 0, 1, 1], [], []>} : vector<8x96xf32>, vector<96x256xf32>, vector<8x256xf32> -> vector<8x256xf32>
    %c0_3 = arith.constant 0 : index
    %c0_4 = arith.constant 0 : index
    %3 = vector.load %arg5[%c0_3, %c0_4] : memref<1x256xf32, #tpu.memory_space<vmem>>, vector<1x256xf32>
    %4 = vector.broadcast %3 : vector<1x256xf32> to vector<8x256xf32>
    %5 = arith.addf %2, %4 : vector<8x256xf32>
    %cst_5 = arith.constant 0.000000e+00 : f32
    %6 = vector.broadcast %cst_5 : f32 to vector<8x256xf32>
    %7 = arith.maximumf %5, %6 : vector<8x256xf32>
    %c0_6 = arith.constant 0 : index
    %c0_7 = arith.constant 0 : index
    %8 = vector.load %arg17[%c0_6, %c0_7] : memref<8x4864xf32, #tpu.memory_space<vmem>>, vector<8x256xf32>
    tpu.vector_store %arg17[%c0_6, %c0_7], %7 {strides = array<i32>} : memref<8x4864xf32, #tpu.memory_space<vmem>>, vector<8x256xf32>,
    %c0_8 = arith.constant 0 : index
    %c96 = arith.constant 96 : index
    %9 = vector.load %arg1[%c0_8, %c96] : memref<8x1824xf32, #tpu.memory_space<vmem>>, vector<8x96xf32>
    %c0_9 = arith.constant 0 : index
    %c0_10 = arith.constant 0 : index
    %10 = vector.load %arg4[%c0_9, %c0_10] : memref<96x256xf32, #tpu.memory_space<vmem>>, vector<96x256xf32>
    %cst_11 = arith.constant dense<0.000000e+00> : vector<8x256xf32>
    %11 = tpu.matmul %9, %10, %cst_11 {dimension_numbers = #tpu.dot_dimension_numbers<[1], [0], [0], [1], [0, 0, 1, 1], [], []>} : vector<8x96xf32>, vector<96x256xf32>, vector<8x256xf32> -> vector<8x256xf32>
    %c0_12 = arith.constant 0 : index
    %c0_13 = arith.constant 0 : index
    %12 = vector.load %arg5[%c0_12, %c0_13] : memref<1x256xf32, #tpu.memory_space<vmem>>, vector<1x256xf32>
    %13 = vector.broadcast %12 : vector<1x256xf32> to vector<8x256xf32>
    %14 = arith.addf %11, %13 : vector<8x256xf32>
    %cst_14 = arith.constant 0.000000e+00 : f32
    %15 = vector.broadcast %cst_14 : f32 to vector<8x256xf32>
    %16 = arith.maximumf %14, %15 : vector<8x256xf32>
    %c0_15 = arith.constant 0 : index
    %c256 = arith.constant 256 : index
    %17 = vector.load %arg17[%c0_15, %c256] : memref<8x4864xf32, #tpu.memory_space<vmem>>, vector<8x256xf32>
    tpu.vector_store %arg17[%c0_15, %c256], %16 {strides = array<i32>} : memref<8x4864xf32, #tpu.memory_space<vmem>>, vector<8x256xf32>,
    %c0_16 = arith.constant 0 : index
    %c192 = arith.constant 192 : index
    %18 = vector.load %arg1[%c0_16, %c192] : memref<8x1824xf32, #tpu.memory_space<vmem>>, vector<8x96xf32>
    %c0_17 = arith.constant 0 : index
    %c0_18 = arith.constant 0 : index
    %19 = vector.load %arg4[%c0_17, %c0_18] : memref<96x256xf32, #tpu.memory_space<vmem>>, vector<96x256xf32>
    %cst_19 = arith.constant dense<0.000000e+00> : vector<8x256xf32>
    %20 = tpu.matmul %18, %19, %cst_19 {dimension_numbers = #tpu.dot_dimension_numbers<[1], [0], [0], [1], [0, 0, 1, 1], [], []>} : vector<8x96xf32>, vector<96x256xf32>, vector<8x256xf32> -> vector<8x256xf32>
    %c0_20 = arith.constant 0 : index
    %c0_21 = arith.constant 0 : index
    %21 = vector.load %arg5[%c0_20, %c0_21] : memref<1x256xf32, #tpu.memory_space<vmem>>, vector<1x256xf32>
    %22 = vector.broadcast %21 : vector<1x256xf32> to vector<8x256xf32>
    %23 = arith.addf %20, %22 : vector<8x256xf32>
    %cst_22 = arith.constant 0.000000e+00 : f32
    %24 = vector.broadcast %cst_22 : f32 to vector<8x256xf32>
    %25 = arith.maximumf %23, %24 : vector<8x256xf32>
    %c0_23 = arith.constant 0 : index
    %c512 = arith.constant 512 : index
    %26 = vector.load %arg17[%c0_23, %c512] : memref<8x4864xf32, #tpu.memory_space<vmem>>, vector<8x256xf32>
    tpu.vector_store %arg17[%c0_23, %c512], %25 {strides = array<i32>} : memref<8x4864xf32, #tpu.memory_space<vmem>>, vector<8x256xf32>,
    %c0_24 = arith.constant 0 : index
    %c288 = arith.constant 288 : index
    %27 = vector.load %arg1[%c0_24, %c288] : memref<8x1824xf32, #tpu.memory_space<vmem>>, vector<8x96xf32>
    %c0_25 = arith.constant 0 : index
    %c0_26 = arith.constant 0 : index
    %28 = vector.load %arg4[%c0_25, %c0_26] : memref<96x256xf32, #tpu.memory_space<vmem>>, vector<96x256xf32>
    %cst_27 = arith.constant dense<0.000000e+00> : vector<8x256xf32>
    %29 = tpu.matmul %27, %28, %cst_27 {dimension_numbers = #tpu.dot_dimension_numbers<[1], [0], [0], [1], [0, 0, 1, 1], [], []>} : vector<8x96xf32>, vector<96x256xf32>, vector<8x256xf32> -> vector<8x256xf32>
    %c0_28 = arith.constant 0 : index
    %c0_29 = arith.constant 0 : index
    %30 = vector.load %arg5[%c0_28, %c0_29] : memref<1x256xf32, #tpu.memory_space<vmem>>, vector<1x256xf32>
    %31 = vector.broadcast %30 : vector<1x256xf32> to vector<8x256xf32>
    %32 = arith.addf %29, %31 : vector<8x256xf32>
    %cst_30 = arith.constant 0.000000e+00 : f32
    %33 = vector.broadcast %cst_30 : f32 to vector<8x256xf32>
    %34 = arith.maximumf %32, %33 : vector<8x256xf32>
    %c0_31 = arith.constant 0 : index
    %c768 = arith.constant 768 : index
    %35 = vector.load %arg17[%c0_31, %c768] : memref<8x4864xf32, #tpu.memory_space<vmem>>, vector<8x256xf32>
    tpu.vector_store %arg17[%c0_31, %c768], %34 {strides = array<i32>} : memref<8x4864xf32, #tpu.memory_space<vmem>>, vector<8x256xf32>,
    %c0_32 = arith.constant 0 : index
    %c384 = arith.constant 384 : index
    %36 = vector.load %arg1[%c0_32, %c384] : memref<8x1824xf32, #tpu.memory_space<vmem>>, vector<8x96xf32>
    %c0_33 = arith.constant 0 : index
    %c0_34 = arith.constant 0 : index
    %37 = vector.load %arg4[%c0_33, %c0_34] : memref<96x256xf32, #tpu.memory_space<vmem>>, vector<96x256xf32>
    %cst_35 = arith.constant dense<0.000000e+00> : vector<8x256xf32>
    %38 = tpu.matmul %36, %37, %cst_35 {dimension_numbers = #tpu.dot_dimension_numbers<[1], [0], [0], [1], [0, 0, 1, 1], [], []>} : vector<8x96xf32>, vector<96x256xf32>, vector<8x256xf32> -> vector<8x256xf32>
    %c0_36 = arith.constant 0 : index
    %c0_37 = arith.constant 0 : index
    %39 = vector.load %arg5[%c0_36, %c0_37] : memref<1x256xf32, #tpu.memory_space<vmem>>, vector<1x256xf32>
    %40 = vector.broadcast %39 : vector<1x256xf32> to vector<8x256xf32>
    %41 = arith.addf %38, %40 : vector<8x256xf32>
    %cst_38 = arith.constant 0.000000e+00 : f32
    %42 = vector.broadcast %cst_38 : f32 to vector<8x256xf32>
    %43 = arith.maximumf %41, %42 : vector<8x256xf32>
    %c0_39 = arith.constant 0 : index
    %c1024 = arith.constant 1024 : index
    %44 = vector.load %arg17[%c0_39, %c1024] : memref<8x4864xf32, #tpu.memory_space<vmem>>, vector<8x256xf32>
    tpu.vector_store %arg17[%c0_39, %c1024], %43 {strides = array<i32>} : memref<8x4864xf32, #tpu.memory_space<vmem>>, vector<8x256xf32>,
    %c0_40 = arith.constant 0 : index
    %c480 = arith.constant 480 : index
    %45 = vector.load %arg1[%c0_40, %c480] : memref<8x1824xf32, #tpu.memory_space<vmem>>, vector<8x96xf32>
    %c0_41 = arith.constant 0 : index
    %c0_42 = arith.constant 0 : index
    %46 = vector.load %arg4[%c0_41, %c0_42] : memref<96x256xf32, #tpu.memory_space<vmem>>, vector<96x256xf32>
    %cst_43 = arith.constant dense<0.000000e+00> : vector<8x256xf32>
    %47 = tpu.matmul %45, %46, %cst_43 {dimension_numbers = #tpu.dot_dimension_numbers<[1], [0], [0], [1], [0, 0, 1, 1], [], []>} : vector<8x96xf32>, vector<96x256xf32>, vector<8x256xf32> -> vector<8x256xf32>
    %c0_44 = arith.constant 0 : index
    %c0_45 = arith.constant 0 : index
    %48 = vector.load %arg5[%c0_44, %c0_45] : memref<1x256xf32, #tpu.memory_space<vmem>>, vector<1x256xf32>
    %49 = vector.broadcast %48 : vector<1x256xf32> to vector<8x256xf32>
    %50 = arith.addf %47, %49 : vector<8x256xf32>
    %cst_46 = arith.constant 0.000000e+00 : f32
    %51 = vector.broadcast %cst_46 : f32 to vector<8x256xf32>
    %52 = arith.maximumf %50, %51 : vector<8x256xf32>
    %c0_47 = arith.constant 0 : index
    %c1280 = arith.constant 1280 : index
    %53 = vector.load %arg17[%c0_47, %c1280] : memref<8x4864xf32, #tpu.memory_space<vmem>>, vector<8x256xf32>
    tpu.vector_store %arg17[%c0_47, %c1280], %52 {strides = array<i32>} : memref<8x4864xf32, #tpu.memory_space<vmem>>, vector<8x256xf32>,
    %c0_48 = arith.constant 0 : index
    %c576 = arith.constant 576 : index
    %54 = vector.load %arg1[%c0_48, %c576] : memref<8x1824xf32, #tpu.memory_space<vmem>>, vector<8x96xf32>
    %c0_49 = arith.constant 0 : index
    %c0_50 = arith.constant 0 : index
    %55 = vector.load %arg4[%c0_49, %c0_50] : memref<96x256xf32, #tpu.memory_space<vmem>>, vector<96x256xf32>
    %cst_51 = arith.constant dense<0.000000e+00> : vector<8x256xf32>
    %56 = tpu.matmul %54, %55, %cst_51 {dimension_numbers = #tpu.dot_dimension_numbers<[1], [0], [0], [1], [0, 0, 1, 1], [], []>} : vector<8x96xf32>, vector<96x256xf32>, vector<8x256xf32> -> vector<8x256xf32>
    %c0_52 = arith.constant 0 : index
    %c0_53 = arith.constant 0 : index
    %57 = vector.load %arg5[%c0_52, %c0_53] : memref<1x256xf32, #tpu.memory_space<vmem>>, vector<1x256xf32>
    %58 = vector.broadcast %57 : vector<1x256xf32> to vector<8x256xf32>
    %59 = arith.addf %56, %58 : vector<8x256xf32>
    %cst_54 = arith.constant 0.000000e+00 : f32
    %60 = vector.broadcast %cst_54 : f32 to vector<8x256xf32>
    %61 = arith.maximumf %59, %60 : vector<8x256xf32>
    %c0_55 = arith.constant 0 : index
    %c1536 = arith.constant 1536 : index
    %62 = vector.load %arg17[%c0_55, %c1536] : memref<8x4864xf32, #tpu.memory_space<vmem>>, vector<8x256xf32>
    tpu.vector_store %arg17[%c0_55, %c1536], %61 {strides = array<i32>} : memref<8x4864xf32, #tpu.memory_space<vmem>>, vector<8x256xf32>,
    %c0_56 = arith.constant 0 : index
    %c672 = arith.constant 672 : index
    %63 = vector.load %arg1[%c0_56, %c672] : memref<8x1824xf32, #tpu.memory_space<vmem>>, vector<8x96xf32>
    %c0_57 = arith.constant 0 : index
    %c0_58 = arith.constant 0 : index
    %64 = vector.load %arg4[%c0_57, %c0_58] : memref<96x256xf32, #tpu.memory_space<vmem>>, vector<96x256xf32>
    %cst_59 = arith.constant dense<0.000000e+00> : vector<8x256xf32>
    %65 = tpu.matmul %63, %64, %cst_59 {dimension_numbers = #tpu.dot_dimension_numbers<[1], [0], [0], [1], [0, 0, 1, 1], [], []>} : vector<8x96xf32>, vector<96x256xf32>, vector<8x256xf32> -> vector<8x256xf32>
    %c0_60 = arith.constant 0 : index
    %c0_61 = arith.constant 0 : index
    %66 = vector.load %arg5[%c0_60, %c0_61] : memref<1x256xf32, #tpu.memory_space<vmem>>, vector<1x256xf32>
    %67 = vector.broadcast %66 : vector<1x256xf32> to vector<8x256xf32>
    %68 = arith.addf %65, %67 : vector<8x256xf32>
    %cst_62 = arith.constant 0.000000e+00 : f32
    %69 = vector.broadcast %cst_62 : f32 to vector<8x256xf32>
    %70 = arith.maximumf %68, %69 : vector<8x256xf32>
    %c0_63 = arith.constant 0 : index
    %c1792 = arith.constant 1792 : index
    %71 = vector.load %arg17[%c0_63, %c1792] : memref<8x4864xf32, #tpu.memory_space<vmem>>, vector<8x256xf32>
    tpu.vector_store %arg17[%c0_63, %c1792], %70 {strides = array<i32>} : memref<8x4864xf32, #tpu.memory_space<vmem>>, vector<8x256xf32>,
    %c0_64 = arith.constant 0 : index
    %c768_65 = arith.constant 768 : index
    %72 = vector.load %arg1[%c0_64, %c768_65] : memref<8x1824xf32, #tpu.memory_space<vmem>>, vector<8x96xf32>
    %c0_66 = arith.constant 0 : index
    %c0_67 = arith.constant 0 : index
    %73 = vector.load %arg4[%c0_66, %c0_67] : memref<96x256xf32, #tpu.memory_space<vmem>>, vector<96x256xf32>
    %cst_68 = arith.constant dense<0.000000e+00> : vector<8x256xf32>
    %74 = tpu.matmul %72, %73, %cst_68 {dimension_numbers = #tpu.dot_dimension_numbers<[1], [0], [0], [1], [0, 0, 1, 1], [], []>} : vector<8x96xf32>, vector<96x256xf32>, vector<8x256xf32> -> vector<8x256xf32>
    %c0_69 = arith.constant 0 : index
    %c0_70 = arith.constant 0 : index
    %75 = vector.load %arg5[%c0_69, %c0_70] : memref<1x256xf32, #tpu.memory_space<vmem>>, vector<1x256xf32>
    %76 = vector.broadcast %75 : vector<1x256xf32> to vector<8x256xf32>
    %77 = arith.addf %74, %76 : vector<8x256xf32>
    %cst_71 = arith.constant 0.000000e+00 : f32
    %78 = vector.broadcast %cst_71 : f32 to vector<8x256xf32>
    %79 = arith.maximumf %77, %78 : vector<8x256xf32>
    %c0_72 = arith.constant 0 : index
    %c2048 = arith.constant 2048 : index
    %80 = vector.load %arg17[%c0_72, %c2048] : memref<8x4864xf32, #tpu.memory_space<vmem>>, vector<8x256xf32>
    tpu.vector_store %arg17[%c0_72, %c2048], %79 {strides = array<i32>} : memref<8x4864xf32, #tpu.memory_space<vmem>>, vector<8x256xf32>,
    %c0_73 = arith.constant 0 : index
    %c864 = arith.constant 864 : index
    %81 = vector.load %arg1[%c0_73, %c864] : memref<8x1824xf32, #tpu.memory_space<vmem>>, vector<8x96xf32>
    %c0_74 = arith.constant 0 : index
    %c0_75 = arith.constant 0 : index
    %82 = vector.load %arg4[%c0_74, %c0_75] : memref<96x256xf32, #tpu.memory_space<vmem>>, vector<96x256xf32>
    %cst_76 = arith.constant dense<0.000000e+00> : vector<8x256xf32>
    %83 = tpu.matmul %81, %82, %cst_76 {dimension_numbers = #tpu.dot_dimension_numbers<[1], [0], [0], [1], [0, 0, 1, 1], [], []>} : vector<8x96xf32>, vector<96x256xf32>, vector<8x256xf32> -> vector<8x256xf32>
    %c0_77 = arith.constant 0 : index
    %c0_78 = arith.constant 0 : index
    %84 = vector.load %arg5[%c0_77, %c0_78] : memref<1x256xf32, #tpu.memory_space<vmem>>, vector<1x256xf32>
    %85 = vector.broadcast %84 : vector<1x256xf32> to vector<8x256xf32>
    %86 = arith.addf %83, %85 : vector<8x256xf32>
    %cst_79 = arith.constant 0.000000e+00 : f32
    %87 = vector.broadcast %cst_79 : f32 to vector<8x256xf32>
    %88 = arith.maximumf %86, %87 : vector<8x256xf32>
    %c0_80 = arith.constant 0 : index
    %c2304 = arith.constant 2304 : index
    %89 = vector.load %arg17[%c0_80, %c2304] : memref<8x4864xf32, #tpu.memory_space<vmem>>, vector<8x256xf32>
    tpu.vector_store %arg17[%c0_80, %c2304], %88 {strides = array<i32>} : memref<8x4864xf32, #tpu.memory_space<vmem>>, vector<8x256xf32>,
    %c0_81 = arith.constant 0 : index
    %c960 = arith.constant 960 : index
    %90 = vector.load %arg1[%c0_81, %c960] : memref<8x1824xf32, #tpu.memory_space<vmem>>, vector<8x96xf32>
    %c0_82 = arith.constant 0 : index
    %c0_83 = arith.constant 0 : index
    %91 = vector.load %arg4[%c0_82, %c0_83] : memref<96x256xf32, #tpu.memory_space<vmem>>, vector<96x256xf32>
    %cst_84 = arith.constant dense<0.000000e+00> : vector<8x256xf32>
    %92 = tpu.matmul %90, %91, %cst_84 {dimension_numbers = #tpu.dot_dimension_numbers<[1], [0], [0], [1], [0, 0, 1, 1], [], []>} : vector<8x96xf32>, vector<96x256xf32>, vector<8x256xf32> -> vector<8x256xf32>
    %c0_85 = arith.constant 0 : index
    %c0_86 = arith.constant 0 : index
    %93 = vector.load %arg5[%c0_85, %c0_86] : memref<1x256xf32, #tpu.memory_space<vmem>>, vector<1x256xf32>
    %94 = vector.broadcast %93 : vector<1x256xf32> to vector<8x256xf32>
    %95 = arith.addf %92, %94 : vector<8x256xf32>
    %cst_87 = arith.constant 0.000000e+00 : f32
    %96 = vector.broadcast %cst_87 : f32 to vector<8x256xf32>
    %97 = arith.maximumf %95, %96 : vector<8x256xf32>
    %c0_88 = arith.constant 0 : index
    %c2560 = arith.constant 2560 : index
    %98 = vector.load %arg17[%c0_88, %c2560] : memref<8x4864xf32, #tpu.memory_space<vmem>>, vector<8x256xf32>
    tpu.vector_store %arg17[%c0_88, %c2560], %97 {strides = array<i32>} : memref<8x4864xf32, #tpu.memory_space<vmem>>, vector<8x256xf32>,
    %c0_89 = arith.constant 0 : index
    %c1056 = arith.constant 1056 : index
    %99 = vector.load %arg1[%c0_89, %c1056] : memref<8x1824xf32, #tpu.memory_space<vmem>>, vector<8x96xf32>
    %c0_90 = arith.constant 0 : index
    %c0_91 = arith.constant 0 : index
    %100 = vector.load %arg4[%c0_90, %c0_91] : memref<96x256xf32, #tpu.memory_space<vmem>>, vector<96x256xf32>
    %cst_92 = arith.constant dense<0.000000e+00> : vector<8x256xf32>
    %101 = tpu.matmul %99, %100, %cst_92 {dimension_numbers = #tpu.dot_dimension_numbers<[1], [0], [0], [1], [0, 0, 1, 1], [], []>} : vector<8x96xf32>, vector<96x256xf32>, vector<8x256xf32> -> vector<8x256xf32>
    %c0_93 = arith.constant 0 : index
    %c0_94 = arith.constant 0 : index
    %102 = vector.load %arg5[%c0_93, %c0_94] : memref<1x256xf32, #tpu.memory_space<vmem>>, vector<1x256xf32>
    %103 = vector.broadcast %102 : vector<1x256xf32> to vector<8x256xf32>
    %104 = arith.addf %101, %103 : vector<8x256xf32>
    %cst_95 = arith.constant 0.000000e+00 : f32
    %105 = vector.broadcast %cst_95 : f32 to vector<8x256xf32>
    %106 = arith.maximumf %104, %105 : vector<8x256xf32>
    %c0_96 = arith.constant 0 : index
    %c2816 = arith.constant 2816 : index
    %107 = vector.load %arg17[%c0_96, %c2816] : memref<8x4864xf32, #tpu.memory_space<vmem>>, vector<8x256xf32>
    tpu.vector_store %arg17[%c0_96, %c2816], %106 {strides = array<i32>} : memref<8x4864xf32, #tpu.memory_space<vmem>>, vector<8x256xf32>,
    %c0_97 = arith.constant 0 : index
    %c1152 = arith.constant 1152 : index
    %108 = vector.load %arg1[%c0_97, %c1152] : memref<8x1824xf32, #tpu.memory_space<vmem>>, vector<8x96xf32>
    %c0_98 = arith.constant 0 : index
    %c0_99 = arith.constant 0 : index
    %109 = vector.load %arg4[%c0_98, %c0_99] : memref<96x256xf32, #tpu.memory_space<vmem>>, vector<96x256xf32>
    %cst_100 = arith.constant dense<0.000000e+00> : vector<8x256xf32>
    %110 = tpu.matmul %108, %109, %cst_100 {dimension_numbers = #tpu.dot_dimension_numbers<[1], [0], [0], [1], [0, 0, 1, 1], [], []>} : vector<8x96xf32>, vector<96x256xf32>, vector<8x256xf32> -> vector<8x256xf32>
    %c0_101 = arith.constant 0 : index
    %c0_102 = arith.constant 0 : index
    %111 = vector.load %arg5[%c0_101, %c0_102] : memref<1x256xf32, #tpu.memory_space<vmem>>, vector<1x256xf32>
    %112 = vector.broadcast %111 : vector<1x256xf32> to vector<8x256xf32>
    %113 = arith.addf %110, %112 : vector<8x256xf32>
    %cst_103 = arith.constant 0.000000e+00 : f32
    %114 = vector.broadcast %cst_103 : f32 to vector<8x256xf32>
    %115 = arith.maximumf %113, %114 : vector<8x256xf32>
    %c0_104 = arith.constant 0 : index
    %c3072 = arith.constant 3072 : index
    %116 = vector.load %arg17[%c0_104, %c3072] : memref<8x4864xf32, #tpu.memory_space<vmem>>, vector<8x256xf32>
    tpu.vector_store %arg17[%c0_104, %c3072], %115 {strides = array<i32>} : memref<8x4864xf32, #tpu.memory_space<vmem>>, vector<8x256xf32>,
    %c0_105 = arith.constant 0 : index
    %c1248 = arith.constant 1248 : index
    %117 = vector.load %arg1[%c0_105, %c1248] : memref<8x1824xf32, #tpu.memory_space<vmem>>, vector<8x96xf32>
    %c0_106 = arith.constant 0 : index
    %c0_107 = arith.constant 0 : index
    %118 = vector.load %arg4[%c0_106, %c0_107] : memref<96x256xf32, #tpu.memory_space<vmem>>, vector<96x256xf32>
    %cst_108 = arith.constant dense<0.000000e+00> : vector<8x256xf32>
    %119 = tpu.matmul %117, %118, %cst_108 {dimension_numbers = #tpu.dot_dimension_numbers<[1], [0], [0], [1], [0, 0, 1, 1], [], []>} : vector<8x96xf32>, vector<96x256xf32>, vector<8x256xf32> -> vector<8x256xf32>
    %c0_109 = arith.constant 0 : index
    %c0_110 = arith.constant 0 : index
    %120 = vector.load %arg5[%c0_109, %c0_110] : memref<1x256xf32, #tpu.memory_space<vmem>>, vector<1x256xf32>
    %121 = vector.broadcast %120 : vector<1x256xf32> to vector<8x256xf32>
    %122 = arith.addf %119, %121 : vector<8x256xf32>
    %cst_111 = arith.constant 0.000000e+00 : f32
    %123 = vector.broadcast %cst_111 : f32 to vector<8x256xf32>
    %124 = arith.maximumf %122, %123 : vector<8x256xf32>
    %c0_112 = arith.constant 0 : index
    %c3328 = arith.constant 3328 : index
    %125 = vector.load %arg17[%c0_112, %c3328] : memref<8x4864xf32, #tpu.memory_space<vmem>>, vector<8x256xf32>
    tpu.vector_store %arg17[%c0_112, %c3328], %124 {strides = array<i32>} : memref<8x4864xf32, #tpu.memory_space<vmem>>, vector<8x256xf32>,
    %c0_113 = arith.constant 0 : index
    %c1344 = arith.constant 1344 : index
    %126 = vector.load %arg1[%c0_113, %c1344] : memref<8x1824xf32, #tpu.memory_space<vmem>>, vector<8x96xf32>
    %c0_114 = arith.constant 0 : index
    %c0_115 = arith.constant 0 : index
    %127 = vector.load %arg4[%c0_114, %c0_115] : memref<96x256xf32, #tpu.memory_space<vmem>>, vector<96x256xf32>
    %cst_116 = arith.constant dense<0.000000e+00> : vector<8x256xf32>
    %128 = tpu.matmul %126, %127, %cst_116 {dimension_numbers = #tpu.dot_dimension_numbers<[1], [0], [0], [1], [0, 0, 1, 1], [], []>} : vector<8x96xf32>, vector<96x256xf32>, vector<8x256xf32> -> vector<8x256xf32>
    %c0_117 = arith.constant 0 : index
    %c0_118 = arith.constant 0 : index
    %129 = vector.load %arg5[%c0_117, %c0_118] : memref<1x256xf32, #tpu.memory_space<vmem>>, vector<1x256xf32>
    %130 = vector.broadcast %129 : vector<1x256xf32> to vector<8x256xf32>
    %131 = arith.addf %128, %130 : vector<8x256xf32>
    %cst_119 = arith.constant 0.000000e+00 : f32
    %132 = vector.broadcast %cst_119 : f32 to vector<8x256xf32>
    %133 = arith.maximumf %131, %132 : vector<8x256xf32>
    %c0_120 = arith.constant 0 : index
    %c3584 = arith.constant 3584 : index
    %134 = vector.load %arg17[%c0_120, %c3584] : memref<8x4864xf32, #tpu.memory_space<vmem>>, vector<8x256xf32>
    tpu.vector_store %arg17[%c0_120, %c3584], %133 {strides = array<i32>} : memref<8x4864xf32, #tpu.memory_space<vmem>>, vector<8x256xf32>,
    %c0_121 = arith.constant 0 : index
    %c1440 = arith.constant 1440 : index
    %135 = vector.load %arg1[%c0_121, %c1440] : memref<8x1824xf32, #tpu.memory_space<vmem>>, vector<8x96xf32>
    %c0_122 = arith.constant 0 : index
    %c0_123 = arith.constant 0 : index
    %136 = vector.load %arg4[%c0_122, %c0_123] : memref<96x256xf32, #tpu.memory_space<vmem>>, vector<96x256xf32>
    %cst_124 = arith.constant dense<0.000000e+00> : vector<8x256xf32>
    %137 = tpu.matmul %135, %136, %cst_124 {dimension_numbers = #tpu.dot_dimension_numbers<[1], [0], [0], [1], [0, 0, 1, 1], [], []>} : vector<8x96xf32>, vector<96x256xf32>, vector<8x256xf32> -> vector<8x256xf32>
    %c0_125 = arith.constant 0 : index
    %c0_126 = arith.constant 0 : index
    %138 = vector.load %arg5[%c0_125, %c0_126] : memref<1x256xf32, #tpu.memory_space<vmem>>, vector<1x256xf32>
    %139 = vector.broadcast %138 : vector<1x256xf32> to vector<8x256xf32>
    %140 = arith.addf %137, %139 : vector<8x256xf32>
    %cst_127 = arith.constant 0.000000e+00 : f32
    %141 = vector.broadcast %cst_127 : f32 to vector<8x256xf32>
    %142 = arith.maximumf %140, %141 : vector<8x256xf32>
    %c0_128 = arith.constant 0 : index
    %c3840 = arith.constant 3840 : index
    %143 = vector.load %arg17[%c0_128, %c3840] : memref<8x4864xf32, #tpu.memory_space<vmem>>, vector<8x256xf32>
    tpu.vector_store %arg17[%c0_128, %c3840], %142 {strides = array<i32>} : memref<8x4864xf32, #tpu.memory_space<vmem>>, vector<8x256xf32>,
    %c0_129 = arith.constant 0 : index
    %c1536_130 = arith.constant 1536 : index
    %144 = vector.load %arg1[%c0_129, %c1536_130] : memref<8x1824xf32, #tpu.memory_space<vmem>>, vector<8x96xf32>
    %c0_131 = arith.constant 0 : index
    %c0_132 = arith.constant 0 : index
    %145 = vector.load %arg4[%c0_131, %c0_132] : memref<96x256xf32, #tpu.memory_space<vmem>>, vector<96x256xf32>
    %cst_133 = arith.constant dense<0.000000e+00> : vector<8x256xf32>
    %146 = tpu.matmul %144, %145, %cst_133 {dimension_numbers = #tpu.dot_dimension_numbers<[1], [0], [0], [1], [0, 0, 1, 1], [], []>} : vector<8x96xf32>, vector<96x256xf32>, vector<8x256xf32> -> vector<8x256xf32>
    %c0_134 = arith.constant 0 : index
    %c0_135 = arith.constant 0 : index
    %147 = vector.load %arg5[%c0_134, %c0_135] : memref<1x256xf32, #tpu.memory_space<vmem>>, vector<1x256xf32>
    %148 = vector.broadcast %147 : vector<1x256xf32> to vector<8x256xf32>
    %149 = arith.addf %146, %148 : vector<8x256xf32>
    %cst_136 = arith.constant 0.000000e+00 : f32
    %150 = vector.broadcast %cst_136 : f32 to vector<8x256xf32>
    %151 = arith.maximumf %149, %150 : vector<8x256xf32>
    %c0_137 = arith.constant 0 : index
    %c4096 = arith.constant 4096 : index
    %152 = vector.load %arg17[%c0_137, %c4096] : memref<8x4864xf32, #tpu.memory_space<vmem>>, vector<8x256xf32>
    tpu.vector_store %arg17[%c0_137, %c4096], %151 {strides = array<i32>} : memref<8x4864xf32, #tpu.memory_space<vmem>>, vector<8x256xf32>,
    %c0_138 = arith.constant 0 : index
    %c1632 = arith.constant 1632 : index
    %153 = vector.load %arg1[%c0_138, %c1632] : memref<8x1824xf32, #tpu.memory_space<vmem>>, vector<8x96xf32>
    %c0_139 = arith.constant 0 : index
    %c0_140 = arith.constant 0 : index
    %154 = vector.load %arg4[%c0_139, %c0_140] : memref<96x256xf32, #tpu.memory_space<vmem>>, vector<96x256xf32>
    %cst_141 = arith.constant dense<0.000000e+00> : vector<8x256xf32>
    %155 = tpu.matmul %153, %154, %cst_141 {dimension_numbers = #tpu.dot_dimension_numbers<[1], [0], [0], [1], [0, 0, 1, 1], [], []>} : vector<8x96xf32>, vector<96x256xf32>, vector<8x256xf32> -> vector<8x256xf32>
    %c0_142 = arith.constant 0 : index
    %c0_143 = arith.constant 0 : index
    %156 = vector.load %arg5[%c0_142, %c0_143] : memref<1x256xf32, #tpu.memory_space<vmem>>, vector<1x256xf32>
    %157 = vector.broadcast %156 : vector<1x256xf32> to vector<8x256xf32>
    %158 = arith.addf %155, %157 : vector<8x256xf32>
    %cst_144 = arith.constant 0.000000e+00 : f32
    %159 = vector.broadcast %cst_144 : f32 to vector<8x256xf32>
    %160 = arith.maximumf %158, %159 : vector<8x256xf32>
    %c0_145 = arith.constant 0 : index
    %c4352 = arith.constant 4352 : index
    %161 = vector.load %arg17[%c0_145, %c4352] : memref<8x4864xf32, #tpu.memory_space<vmem>>, vector<8x256xf32>
    tpu.vector_store %arg17[%c0_145, %c4352], %160 {strides = array<i32>} : memref<8x4864xf32, #tpu.memory_space<vmem>>, vector<8x256xf32>,
    %c0_146 = arith.constant 0 : index
    %c1728 = arith.constant 1728 : index
    %162 = vector.load %arg1[%c0_146, %c1728] : memref<8x1824xf32, #tpu.memory_space<vmem>>, vector<8x96xf32>
    %c0_147 = arith.constant 0 : index
    %c0_148 = arith.constant 0 : index
    %163 = vector.load %arg4[%c0_147, %c0_148] : memref<96x256xf32, #tpu.memory_space<vmem>>, vector<96x256xf32>
    %cst_149 = arith.constant dense<0.000000e+00> : vector<8x256xf32>
    %164 = tpu.matmul %162, %163, %cst_149 {dimension_numbers = #tpu.dot_dimension_numbers<[1], [0], [0], [1], [0, 0, 1, 1], [], []>} : vector<8x96xf32>, vector<96x256xf32>, vector<8x256xf32> -> vector<8x256xf32>
    %c0_150 = arith.constant 0 : index
    %c0_151 = arith.constant 0 : index
    %165 = vector.load %arg5[%c0_150, %c0_151] : memref<1x256xf32, #tpu.memory_space<vmem>>, vector<1x256xf32>
    %166 = vector.broadcast %165 : vector<1x256xf32> to vector<8x256xf32>
    %167 = arith.addf %164, %166 : vector<8x256xf32>
    %cst_152 = arith.constant 0.000000e+00 : f32
    %168 = vector.broadcast %cst_152 : f32 to vector<8x256xf32>
    %169 = arith.maximumf %167, %168 : vector<8x256xf32>
    %c0_153 = arith.constant 0 : index
    %c4608 = arith.constant 4608 : index
    %170 = vector.load %arg17[%c0_153, %c4608] : memref<8x4864xf32, #tpu.memory_space<vmem>>, vector<8x256xf32>
    tpu.vector_store %arg17[%c0_153, %c4608], %169 {strides = array<i32>} : memref<8x4864xf32, #tpu.memory_space<vmem>>, vector<8x256xf32>,
    %c0_154 = arith.constant 0 : index
    %c0_155 = arith.constant 0 : index
    %171 = vector.load %arg17[%c0_154, %c0_155] : memref<8x4864xf32, #tpu.memory_space<vmem>>, vector<8x4864xf32>
    %c0_156 = arith.constant 0 : index
    %c0_157 = arith.constant 0 : index
    %172 = vector.load %arg6[%c0_156, %c0_157] : memref<4864x64xf32, #tpu.memory_space<vmem>>, vector<4864x64xf32>
    %cst_158 = arith.constant dense<0.000000e+00> : vector<8x64xf32>
    %173 = tpu.matmul %171, %172, %cst_158 {dimension_numbers = #tpu.dot_dimension_numbers<[1], [0], [0], [1], [0, 0, 1, 1], [], []>} : vector<8x4864xf32>, vector<4864x64xf32>, vector<8x64xf32> -> vector<8x64xf32>
    %c0_159 = arith.constant 0 : index
    %c0_160 = arith.constant 0 : index
    %174 = vector.load %arg7[%c0_159, %c0_160] : memref<1x64xf32, #tpu.memory_space<vmem>>, vector<1x64xf32>
    %175 = vector.broadcast %174 : vector<1x64xf32> to vector<8x64xf32>
    %176 = arith.addf %173, %175 : vector<8x64xf32>
    %cst_161 = arith.constant 0.000000e+00 : f32
    %177 = vector.broadcast %cst_161 : f32 to vector<8x64xf32>
    %178 = arith.maximumf %176, %177 : vector<8x64xf32>
    %c0_162 = arith.constant 0 : index
    %c0_163 = arith.constant 0 : index
    %179 = vector.load %arg8[%c0_162, %c0_163] : memref<64x16xf32, #tpu.memory_space<vmem>>, vector<64x16xf32>
    %cst_164 = arith.constant dense<0.000000e+00> : vector<8x16xf32>
    %180 = tpu.matmul %178, %179, %cst_164 {dimension_numbers = #tpu.dot_dimension_numbers<[1], [0], [0], [1], [0, 0, 1, 1], [], []>} : vector<8x64xf32>, vector<64x16xf32>, vector<8x16xf32> -> vector<8x16xf32>
    %c0_165 = arith.constant 0 : index
    %c0_166 = arith.constant 0 : index
    %181 = vector.load %arg9[%c0_165, %c0_166] : memref<1x16xf32, #tpu.memory_space<vmem>>, vector<1x16xf32>
    %182 = vector.broadcast %181 : vector<1x16xf32> to vector<8x16xf32>
    %183 = arith.addf %180, %182 : vector<8x16xf32>
    %c0_167 = arith.constant 0 : index
    %c0_168 = arith.constant 0 : index
    %184 = vector.load %arg16[%c0_167, %c0_168] : memref<8x16xf32, #tpu.memory_space<vmem>>, vector<8x16xf32>
    tpu.vector_store %arg16[%c0_167, %c0_168], %183 {strides = array<i32>} : memref<8x16xf32, #tpu.memory_space<vmem>>, vector<8x16xf32>,
    %185 = vector.extract_strided_slice %183 {offsets = [0, 0], sizes = [8, 8], strides = [1, 1]} : vector<8x16xf32> to vector<8x8xf32>
    %186 = vector.extract_strided_slice %183 {offsets = [0, 8], sizes = [8, 8], strides = [1, 1]} : vector<8x16xf32> to vector<8x8xf32>
    %c0_169 = arith.constant 0 : index
    %c0_170 = arith.constant 0 : index
    %187 = vector.load %arg2[%c0_169, %c0_170] : memref<8x8xf32, #tpu.memory_space<vmem>>, vector<8x8xf32>
    %cst_171 = arith.constant 5.000000e-01 : f32
    %188 = vector.broadcast %cst_171 : f32 to vector<8x8xf32>
    %189 = arith.mulf %188, %186 : vector<8x8xf32>
    %190 = math.exp %189 : vector<8x8xf32>
    %191 = arith.mulf %187, %190 : vector<8x8xf32>
    %192 = arith.addf %191, %185 : vector<8x8xf32>
    %c0_172 = arith.constant 0 : index
    %c0_173 = arith.constant 0 : index
    %193 = vector.load %arg10[%c0_172, %c0_173] : memref<8x64xf32, #tpu.memory_space<vmem>>, vector<8x64xf32>
    %cst_174 = arith.constant dense<0.000000e+00> : vector<8x64xf32>
    %194 = tpu.matmul %192, %193, %cst_174 {dimension_numbers = #tpu.dot_dimension_numbers<[1], [0], [0], [1], [0, 0, 1, 1], [], []>} : vector<8x8xf32>, vector<8x64xf32>, vector<8x64xf32> -> vector<8x64xf32>
    %c0_175 = arith.constant 0 : index
    %c0_176 = arith.constant 0 : index
    %195 = vector.load %arg3[%c0_175, %c0_176] : memref<8x1xf32, #tpu.memory_space<vmem>>, vector<8x1xf32>
    %c0_177 = arith.constant 0 : index
    %c0_178 = arith.constant 0 : index
    %196 = vector.load %arg11[%c0_177, %c0_178] : memref<1x64xf32, #tpu.memory_space<vmem>>, vector<1x64xf32>
    %197 = vector.broadcast %195 : vector<8x1xf32> to vector<8x64xf32>
    %198 = vector.broadcast %196 : vector<1x64xf32> to vector<8x64xf32>
    %199 = arith.mulf %197, %198 : vector<8x64xf32>
    %200 = arith.addf %194, %199 : vector<8x64xf32>
    %c0_179 = arith.constant 0 : index
    %c0_180 = arith.constant 0 : index
    %201 = vector.load %arg12[%c0_179, %c0_180] : memref<1x64xf32, #tpu.memory_space<vmem>>, vector<1x64xf32>
    %202 = vector.broadcast %201 : vector<1x64xf32> to vector<8x64xf32>
    %203 = arith.addf %200, %202 : vector<8x64xf32>
    %cst_181 = arith.constant 0.000000e+00 : f32
    %204 = vector.broadcast %cst_181 : f32 to vector<8x64xf32>
    %205 = arith.maximumf %203, %204 : vector<8x64xf32>
    %c0_182 = arith.constant 0 : index
    %c0_183 = arith.constant 0 : index
    %206 = vector.load %arg13[%c0_182, %c0_183] : memref<64x640xf32, #tpu.memory_space<vmem>>, vector<64x640xf32>
    %cst_184 = arith.constant dense<0.000000e+00> : vector<8x640xf32>
    %207 = tpu.matmul %205, %206, %cst_184 {dimension_numbers = #tpu.dot_dimension_numbers<[1], [0], [0], [1], [0, 0, 1, 1], [], []>} : vector<8x64xf32>, vector<64x640xf32>, vector<8x640xf32> -> vector<8x640xf32>
    %c0_185 = arith.constant 0 : index
    %c0_186 = arith.constant 0 : index
    %208 = vector.load %arg14[%c0_185, %c0_186] : memref<1x640xf32, #tpu.memory_space<vmem>>, vector<1x640xf32>
    %209 = vector.broadcast %208 : vector<1x640xf32> to vector<8x640xf32>
    %210 = arith.addf %207, %209 : vector<8x640xf32>
    %211 = arith.negf %210 : vector<8x640xf32>
    %212 = math.exp %211 : vector<8x640xf32>
    %cst_187 = arith.constant 1.000000e+00 : f32
    %213 = vector.broadcast %cst_187 : f32 to vector<8x640xf32>
    %214 = arith.addf %213, %212 : vector<8x640xf32>
    %215 = arith.divf %213, %214 : vector<8x640xf32>
    %c0_188 = arith.constant 0 : index
    %c0_189 = arith.constant 0 : index
    %216 = vector.load %arg15[%c0_188, %c0_189] : memref<8x640xf32, #tpu.memory_space<vmem>>, vector<8x640xf32>
    tpu.vector_store %arg15[%c0_188, %c0_189], %215 {strides = array<i32>} : memref<8x640xf32, #tpu.memory_space<vmem>>, vector<8x640xf32>,
    return
  }
  func.func @transform_0(%arg0: i32) -> (i32, i32) {
    %c0_i32 = arith.constant 0 : i32
    %c0_i32_0 = arith.constant 0 : i32
    return %arg0, %c0_i32 : i32, i32
  }
  func.func @transform_1(%arg0: i32) -> (i32, i32) {
    %c0_i32 = arith.constant 0 : i32
    %c0_i32_0 = arith.constant 0 : i32
    return %arg0, %c0_i32 : i32, i32
  }
  func.func @transform_2(%arg0: i32) -> (i32, i32) {
    %c0_i32 = arith.constant 0 : i32
    %c0_i32_0 = arith.constant 0 : i32
    return %arg0, %c0_i32 : i32, i32
  }
  func.func @transform_3(%arg0: i32) -> (i32, i32) {
    %c0_i32 = arith.constant 0 : i32
    %c0_i32_0 = arith.constant 0 : i32
    %c0_i32_1 = arith.constant 0 : i32
    return %c0_i32, %c0_i32_0 : i32, i32
  }
  func.func @transform_4(%arg0: i32) -> (i32, i32) {
    %c0_i32 = arith.constant 0 : i32
    %c0_i32_0 = arith.constant 0 : i32
    %c0_i32_1 = arith.constant 0 : i32
    return %c0_i32, %c0_i32_0 : i32, i32
  }
  func.func @transform_5(%arg0: i32) -> (i32, i32) {
    %c0_i32 = arith.constant 0 : i32
    %c0_i32_0 = arith.constant 0 : i32
    %c0_i32_1 = arith.constant 0 : i32
    return %c0_i32, %c0_i32_0 : i32, i32
  }
  func.func @transform_6(%arg0: i32) -> (i32, i32) {
    %c0_i32 = arith.constant 0 : i32
    %c0_i32_0 = arith.constant 0 : i32
    %c0_i32_1 = arith.constant 0 : i32
    return %c0_i32, %c0_i32_0 : i32, i32
  }
  func.func @transform_7(%arg0: i32) -> (i32, i32) {
    %c0_i32 = arith.constant 0 : i32
    %c0_i32_0 = arith.constant 0 : i32
    %c0_i32_1 = arith.constant 0 : i32
    return %c0_i32, %c0_i32_0 : i32, i32
  }
  func.func @transform_8(%arg0: i32) -> (i32, i32) {
    %c0_i32 = arith.constant 0 : i32
    %c0_i32_0 = arith.constant 0 : i32
    %c0_i32_1 = arith.constant 0 : i32
    return %c0_i32, %c0_i32_0 : i32, i32
  }
  func.func @transform_9(%arg0: i32) -> (i32, i32) {
    %c0_i32 = arith.constant 0 : i32
    %c0_i32_0 = arith.constant 0 : i32
    %c0_i32_1 = arith.constant 0 : i32
    return %c0_i32, %c0_i32_0 : i32, i32
  }
  func.func @transform_10(%arg0: i32) -> (i32, i32) {
    %c0_i32 = arith.constant 0 : i32
    %c0_i32_0 = arith.constant 0 : i32
    %c0_i32_1 = arith.constant 0 : i32
    return %c0_i32, %c0_i32_0 : i32, i32
  }
  func.func @transform_11(%arg0: i32) -> (i32, i32) {
    %c0_i32 = arith.constant 0 : i32
    %c0_i32_0 = arith.constant 0 : i32
    %c0_i32_1 = arith.constant 0 : i32
    return %c0_i32, %c0_i32_0 : i32, i32
  }
  func.func @transform_12(%arg0: i32) -> (i32, i32) {
    %c0_i32 = arith.constant 0 : i32
    %c0_i32_0 = arith.constant 0 : i32
    %c0_i32_1 = arith.constant 0 : i32
    return %c0_i32, %c0_i32_0 : i32, i32
  }
  func.func @transform_13(%arg0: i32) -> (i32, i32) {
    %c0_i32 = arith.constant 0 : i32
    %c0_i32_0 = arith.constant 0 : i32
    %c0_i32_1 = arith.constant 0 : i32
    return %c0_i32, %c0_i32_0 : i32, i32
  }
  func.func @transform_14(%arg0: i32) -> (i32, i32) {
    %c0_i32 = arith.constant 0 : i32
    %c0_i32_0 = arith.constant 0 : i32
    return %arg0, %c0_i32 : i32, i32
  }
  func.func @transform_15(%arg0: i32) -> (i32, i32) {
    %c0_i32 = arith.constant 0 : i32
    %c0_i32_0 = arith.constant 0 : i32
    return %arg0, %c0_i32 : i32, i32
  }
}

</mosaic_0001>

<bundles_post_ra>
// kernel: cvae_forward.1
= control target key start
LH: loop header
LB: loop body
LE: loop exit
PB: predicated region body
PF: predicated region fallthrough
CT: control target
= control target key end

     0   :  { %v6735_v2 = vmov 0.0   ;;  %s6736_s22 = smov 32   ;;  %s6737_s23 = smov 96   ;;  %vm86_vm0 = vcmask 785408   ;;  %vm209_vm1 = vcmask 261120   ;;  %vm332_vm2 = vcmask 523264   ;;  %s9691_s0 = inlined_call_operand.vmem [shape: f32[8,1824], index: 0, kind: input, shape index: {}]   ;;  %s9692_s3 = inlined_call_operand.vmem [shape: f32[96,256], index: 3, kind: input, shape index: {}]   ;;  %s9693_s4 = inlined_call_operand.vmem [shape: f32[1,256], index: 4, kind: input, shape index: {}]   ;;  %s9694_s5 = inlined_call_operand.vmem [shape: f32[4864,64], index: 5, kind: input, shape index: {}]   ;;  %s9695_s6 = inlined_call_operand.vmem [shape: f32[1,64], index: 6, kind: input, shape index: {}]   ;;  %s9696_s7 = inlined_call_operand.vmem [shape: f32[64,16], index: 7, kind: input, shape index: {}]   ;;  %s9697_s8 = inlined_call_operand.vmem [shape: f32[1,16], index: 8, kind: input, shape index: {}]   ;;  %s9698_s15 = inlined_call_operand.vmem [shape: f32[8,16], index: 15, kind: output, shape index: {1}]   ;;  %s9699_s9 = inlined_call_operand.vmem [shape: f32[8,64], index: 9, kind: input, shape index: {}]   ;;  %s9700_s2 = inlined_call_operand.vmem [shape: f32[8,1], index: 2, kind: input, shape index: {}]   ;;  %s9701_s12 = inlined_call_operand.vmem [shape: f32[64,640], index: 12, kind: input, shape index: {}]   ;;  %s9702_s1 = inlined_call_operand.vmem [shape: f32[8,8], index: 1, kind: input, shape index: {}]   ;;  %s9703_s10 = inlined_call_operand.vmem [shape: f32[1,64], index: 10, kind: input, shape index: {}]   ;;  %s9704_s11 = inlined_call_operand.vmem [shape: f32[1,64], index: 11, kind: input, shape index: {}]   ;;  %s9705_s13 = inlined_call_operand.vmem [shape: f32[1,640], index: 13, kind: input, shape index: {}]   ;;  %s9706_s14 = inlined_call_operand.vmem [shape: f32[8,640], index: 14, kind: output, shape index: {0}]  }
   0x1   :  { %v6826_v0 = vld [vmem:[%s9691_s0] sm:$0xff]  ;;  %v411_v1 = vld [vmem:[%s9691_s0 + $0x10] sm:$0xff]  ;;  %154 = vmatprep.mubr.f32.mxu0 %v6735_v2  ;;  %277 = vmatprep.mubr.f32.mxu1 %v6735_v2  ;;  %v166_v3 = vld [vmem:[%s9691_s0 + $0x8] sm:$0xff]  ;;  %s6738_s29 = smov 64   ;;  %vm6740_vm3 = vmmov 0   ;;  %vm4387_vm4 = vcmask 130048  }
   0x2   :  { %205 = vrot.lane.b32.xlu0 %v6826_v0, %s6736_s22  ;;  %449 = vrot.lane.b32.xlu1 %v411_v1, %s6737_s23  ;;  %v51_v4 = vld [vmem:[%s9692_s3 + $0x8] sm:$0xff]  ;;  %v53_v5 = vld [vmem:[%s9692_s3 + $0x18] sm:$0xff]  ;;  %vm4414_vm5 = vcmask 64512  }
   0x3   :  { %v6845_v6 = vpack.c.bf16 %v53_v5, %v51_v4  ;;  %v50_v7 = vld [vmem:[%s9692_s3] sm:$0xff]  ;;  %v52_v8 = vld [vmem:[%s9692_s3 + $0x10] sm:$0xff]  ;;  %v55_v9 = vld [vmem:[%s9692_s3 + $0x28] sm:$0xff] }
   0x4   :  { %v6856_v10 = vpack.c.bf16 %v52_v8, %v50_v7  ;;  %v57_v11 = vld [vmem:[%s9692_s3 + $0x38] sm:$0xff]  ;;  %v54_v12 = vld [vmem:[%s9692_s3 + $0x20] sm:$0xff]  ;;  %v56_v13 = vld [vmem:[%s9692_s3 + $0x30] sm:$0xff] }
   0x5   :  { %v6869_v14 = vpack.c.bf16 %v57_v11, %v55_v9  ;;  %v59_v15 = vld [vmem:[%s9692_s3 + $0x48] sm:$0xff]  ;;  %v61_v16 = vld [vmem:[%s9692_s3 + $0x58] sm:$0xff]  ;;  %5584 = vmatprep.subr.bf16.mxu0 %v6845_v6  ;;  %5608 = vmatprep.subr.bf16.mxu1 %v6845_v6  ;;  %v6885_v18 = vpack.c.bf16 %v56_v13, %v54_v12  ;;  %v58_v20 = vld [vmem:[%s9692_s3 + $0x40] sm:$0xff] }
   0x6   :  { %207 = vrot.lane.b32.xlu0 %v166_v3, %s6736_s22  ;;  %328 = vrot.lane.b32.xlu1 %v166_v3, %s6738_s29  ;;  %v6880_v17 = vld [vmem:[%s9691_s0 + $0x18] sm:$0xff]  ;;  %v6889_v19 = vpack.c.bf16 %v61_v16, %v59_v15  ;;  %v60_v21 = vld [vmem:[%s9692_s3 + $0x50] sm:$0xff] }
   0x7   :  { %5586 = vmatpush1.bf16.msra.mxu0 %v6856_v10  ;;  %5610 = vmatpush1.bf16.msra.mxu1 %v6856_v10  ;;  %v63_v22 = vld [vmem:[%s9692_s3 + $0x68] sm:$0xff]  ;;  %v65_v23 = vld [vmem:[%s9692_s3 + $0x78] sm:$0xff]  ;;  %v644_v24 = vld [vmem:[%s9691_s0 + $0x20] sm:$0xff]  ;;  %v6914_v26 = vpack.c.bf16 %v60_v21, %v58_v20 }
   0x8   :  { %5588 = vmatprep.subr.bf16.mxu0 %v6869_v14  ;;  %5612 = vmatprep.subr.bf16.mxu1 %v6869_v14  ;;  %v887_v25 = vld [vmem:[%s9691_s0 + $0x28] sm:$0xff]  ;;  %v6918_v27 = vpack.c.bf16 %v65_v23, %v63_v22  ;;  %v62_v28 = vld [vmem:[%s9692_s3 + $0x60] sm:$0xff]  ;;  %v64_v29 = vld [vmem:[%s9692_s3 + $0x70] sm:$0xff] }
   0x9   :  { %v67_v30 = vld [vmem:[%s9692_s3 + $0x88] sm:$0xff]  ;;  %v69_v31 = vld [vmem:[%s9692_s3 + $0x98] sm:$0xff]  ;;  %v6936_v32 = vpack.c.bf16 %v64_v29, %v62_v28  ;;  %v66_v34 = vld [vmem:[%s9692_s3 + $0x80] sm:$0xff] }
   0xa   :  { %330 = vrot.lane.b32.xlu0 %v411_v1, %s6738_s29  ;;  %683 = vrot.lane.b32.xlu1 %v6880_v17, %s6736_s22  ;;  %v6940_v33 = vpack.c.bf16 %v69_v31, %v67_v30  ;;  %v68_v35 = vld [vmem:[%s9692_s3 + $0x90] sm:$0xff]  ;;  %v71_v36 = vld [vmem:[%s9692_s3 + $0xa8] sm:$0xff] }
   0xb   :  { %5590 = vmatpush1.bf16.msra.mxu0 %v6885_v18  ;;  %5614 = vmatpush1.bf16.msra.mxu1 %v6885_v18  ;;  %v73_v37 = vld [vmem:[%s9692_s3 + $0xb8] sm:$0xff]  ;;  %v6960_v38 = vld [vmem:[%s9691_s0 + $0x30] sm:$0xff]  ;;  %v6966_v40 = vpack.c.bf16 %v68_v35, %v66_v34  ;;  %v70_v42 = vld [vmem:[%s9692_s3 + $0xa0] sm:$0xff] }
   0xc   :  { %5592 = vmatprep.subr.bf16.mxu0 %v6889_v19  ;;  %5616 = vmatprep.subr.bf16.mxu1 %v6889_v19  ;;  %v1120_v39 = vld [vmem:[%s9691_s0 + $0x38] sm:$0xff]  ;;  %v6970_v41 = vpack.c.bf16 %v73_v37, %v71_v36  ;;  %v72_v43 = vld [vmem:[%s9692_s3 + $0xb0] sm:$0xff]  ;;  %v1363_v44 = vld [vmem:[%s9691_s0 + $0x40] sm:$0xff] }
   0xd   :  { %v6986_v45 = vpack.c.bf16 %v72_v43, %v70_v42  ;;  %v6996_v46 = vld [vmem:[%s9691_s0 + $0x48] sm:$0xff]  ;;  %v1596_v47 = vld [vmem:[%s9691_s0 + $0x50] sm:$0xff]  ;;  %v1839_v48 = vld [vmem:[%s9691_s0 + $0x58] sm:$0xff] }
   0xe   :  { %685 = vrot.lane.b32.xlu0 %v644_v24, %s6736_s22  ;;  %925 = vrot.lane.b32.xlu1 %v887_v25, %s6737_s23  ;;  %v2072_v49 = vld [vmem:[%s9691_s0 + $0x68] sm:$0xff]  ;;  %v7036_v50 = vld [vmem:[%s9691_s0 + $0x60] sm:$0xff] }
   0xf   :  { %5594 = vmatpush1.bf16.msra.mxu0 %v6914_v26  ;;  %5618 = vmatpush1.bf16.msra.mxu1 %v6914_v26  ;;  %v2194_v51 = vld [vmem:[%s9691_s0 + $0x70] sm:$0xff]  ;;  %v1248_v3 = vld [vmem:[%s9692_s3 + $0x28] sm:$0xff]  ;;  %v1250_v4 = vld [vmem:[%s9692_s3 + $0x38] sm:$0xff] }
  0x10   :  { %5596 = vmatprep.subr.bf16.mxu0 %v6918_v27  ;;  %5620 = vmatprep.subr.bf16.mxu1 %v6918_v27  ;;  %v7144_v5 = vpack.c.bf16 %v1250_v4, %v1248_v3  ;;  %v1247_v7 = vld [vmem:[%s9692_s3 + $0x20] sm:$0xff]  ;;  %v1249_v8 = vld [vmem:[%s9692_s3 + $0x30] sm:$0xff]  ;;  %v1134_v9 = vld [vmem:[%s9692_s3 + $0x68] sm:$0xff] }
  0x11   :  { %v1136_v11 = vld [vmem:[%s9692_s3 + $0x78] sm:$0xff]  ;;  %v7169_v13 = vpack.c.bf16 %v1249_v8, %v1247_v7  ;;  %v1141_v31 = vld [vmem:[%s9692_s3 + $0xa0] sm:$0xff]  ;;  %v2354_v3 = vld [vmem:[%s9694_s5 + $0x8] sm:$0xff] }
  0x12   :  { %807 = vrot.lane.b32.xlu1 %v887_v25, %s6738_s29  ;;  %805 = vrot.lane.b32.xlu0 %v644_v24, %s6738_s29  ;;  %v1254_v12 = vld [vmem:[%s9692_s3 + $0x58] sm:$0xff]  ;;  %v7176_v15 = vpack.c.bf16 %v1136_v11, %v1134_v9  ;;  %v1137_v24 = vld [vmem:[%s9692_s3 + $0x80] sm:$0xff] }
  0x13   :  { %5598 = vmatpush1.bf16.msra.mxu0 %v6936_v32  ;;  %5622 = vmatpush1.bf16.msra.mxu1 %v6936_v32  ;;  %v1140_v20 = vld [vmem:[%s9692_s3 + $0x98] sm:$0xff]  ;;  %v1139_v25 = vld [vmem:[%s9692_s3 + $0x90] sm:$0xff]  ;;  %v2401_v7 = vld [vmem:[%s9694_s5 + $0x180] sm:$0xff] }
  0x14   :  { %5600 = vmatprep.subr.bf16.mxu0 %v6940_v33  ;;  %5624 = vmatprep.subr.bf16.mxu1 %v6940_v33  ;;  %v1144_v28 = vld [vmem:[%s9692_s3 + $0xb8] sm:$0xff]  ;;  %v7220_v29 = vpack.c.bf16 %v1139_v25, %v1137_v24  ;;  %v2371_v4 = vld [vmem:[%s9694_s5 + $0x90] sm:$0xff]  ;;  %v2402_v8 = vld [vmem:[%s9694_s5 + $0x188] sm:$0xff] }
  0x15   :  { %v1367_v34 = vld [vmem:[%s9692_s3 + $0x18] sm:$0xff] }
  0x16   :  { %1159 = vrot.lane.b32.xlu0 %v6960_v38, %s6736_s22  ;;  %1161 = vrot.lane.b32.xlu1 %v1120_v39, %s6736_s22 }
  0x17   :  { %5602 = vmatpush1.bf16.msra.mxu0 %v6966_v40  ;;  %5626 = vmatpush1.bf16.msra.mxu1 %v6966_v40 }
  0x18   :  { %5604 = vmatprep.subr.bf16.mxu0 %v6970_v41  ;;  %5628 = vmatprep.subr.bf16.mxu1 %v6970_v41 }
  0x1a   :  { %1401 = vrot.lane.b32.xlu0 %v1363_v44, %s6737_s23  ;;  %1281 = vrot.lane.b32.xlu1 %v1120_v39, %s6738_s29  ;;  %v1364_v39 = vld [vmem:[%s9692_s3] sm:$0xff] }
  0x1b   :  { %5606 = vmatpush1.bf16.msra.mxu0 %v6986_v45  ;;  %5630 = vmatpush1.bf16.msra.mxu1 %v6986_v45 }
  0x1c   :  { %5632 = vmatprep.subr.bf16.mxu0 %v6845_v6  ;;  %5656 = vmatprep.subr.bf16.mxu1 %v6845_v6 }
  0x1e   :  { %1283 = vrot.lane.b32.xlu0 %v1363_v44, %s6738_s29  ;;  %1635 = vrot.lane.b32.xlu1 %v6996_v46, %s6736_s22 }
  0x1f   :  { %4822 = vmatmul.mubr.msk.f32.vlgmr.msra.gmra.mrb[0].mxu0 %vm86_vm0, %v6826_v0 }
  0x20   :  { %5634 = vmatpush1.bf16.msra.mxu0 %v6856_v10  ;;  %400 = vmatprep.mubr.f32.mxu0 %v6735_v2 }
  0x21   :  { %5636 = vmatprep.subr.bf16.mxu0 %v6869_v14 }
  0x22   :  { %1637 = vrot.lane.b32.xlu0 %v1596_v47, %s6736_s22  ;;  %1877 = vrot.lane.b32.xlu1 %v1839_v48, %s6737_s23 }
  0x24   :  { %5638 = vmatpush1.bf16.msra.mxu0 %v6885_v18 }
  0x25   :  { %5640 = vmatprep.subr.bf16.mxu0 %v6889_v19 }
  0x26   :  { %1759 = vrot.lane.b32.xlu1 %v1839_v48, %s6738_s29  ;;  %1757 = vrot.lane.b32.xlu0 %v1596_v47, %s6738_s29 }
  0x28   :  { %5642 = vmatpush1.bf16.msra.mxu0 %v6914_v26 }
  0x29   :  { %5644 = vmatprep.subr.bf16.mxu0 %v6918_v27 }
  0x2a   :  { %2113 = vrot.lane.b32.xlu1 %v2072_v49, %s6736_s22  ;;  %2111 = vrot.lane.b32.xlu0 %v7036_v50, %s6736_s22 }
  0x2c   :  { %5646 = vmatpush1.bf16.msra.mxu0 %v6936_v32 }
  0x2d   :  { %5648 = vmatprep.subr.bf16.mxu0 %v6940_v33 }
  0x2e   :  { %2233 = vrot.lane.b32.xlu0 %v2072_v49, %s6738_s29  ;;  %2235 = vrot.lane.b32.xlu1 %v2194_v51, %s6738_s29 }
  0x30   :  { %5650 = vmatpush1.bf16.msra.mxu0 %v6966_v40 }
  0x31   :  { %5652 = vmatprep.subr.bf16.mxu0 %v6970_v41 }
  0x34   :  { %5654 = vmatpush1.bf16.msra.mxu0 %v6986_v45 }
  0x35   :  { %5680 = vmatprep.subr.bf16.mxu0 %v6845_v6 }
  0x74   :  { %v206_v52 = vpop.permute.xlu0 %205  ;;  %v450_v53 = vpop.permute.xlu1 %449 }
  0x78   :  { %v208_v54 = vpop.permute.xlu0 %207  ;;  %v329_v56 = vpop.permute.xlu1 %328 }
  0x79   :  { %v210_v55 = vsel %vm209_vm1, %v206_v52, %v208_v54 }
  0x7a   :  { %4823 = vmatmul.mubr.msk.f32.vlgmr.msra.gmra.mrb[0].mxu1 %vm86_vm0, %v210_v55 }
  0x7b   :  { %5658 = vmatpush1.bf16.msra.mxu1 %v6856_v10  ;;  %517 = vmatprep.mubr.f32.mxu1 %v6735_v2 }
  0x7c   :  { %v331_v57 = vpop.permute.xlu0 %330  ;;  %5660 = vmatprep.subr.bf16.mxu1 %v6869_v14  ;;  %v684_v59 = vpop.permute.xlu1 %683 }
  0x7d   :  { %v333_v58 = vsel %vm332_vm2, %v329_v56, %v331_v57  ;;  %v76_v56 = vlaneseq }
  0x7e   :  { %4824 = vmatmul.mubr.msk.f32.vlgmr.msra.gmra.mrb[2].mxu0 %vm86_vm0, %v333_v58 }
  0x7f   :  { %5662 = vmatpush1.bf16.msra.mxu1 %v6885_v18  ;;  %5682 = vmatpush1.bf16.msra.mxu0 %v6856_v10  ;;  %v7366_v57 = vshrl.u32 %v76_v56, 7 }
  0x80   :  { %5664 = vmatprep.subr.bf16.mxu1 %v6889_v19  ;;  %5684 = vmatprep.subr.bf16.mxu0 %v6869_v14  ;;  %v686_v60 = vpop.permute.xlu0 %685  ;;  %v926_v61 = vpop.permute.xlu1 %925 }
  0x81   :  { %632 = vmatprep.mubr.f32.mxu0 %v6735_v2  ;;  %v687_v62 = vsel %vm209_vm1, %v684_v59, %v686_v60  ;;  %v7378_v58 = vsub.s32 1, %v7366_v57  ;;  %v2369_v59 = vld [vmem:[%s9694_s5 + $0x80] sm:$0xff]  ;;  %v2370_v60 = vld [vmem:[%s9694_s5 + $0x88] sm:$0xff] }
  0x83   :  { %5666 = vmatpush1.bf16.msra.mxu1 %v6914_v26  ;;  %5686 = vmatpush1.bf16.msra.mxu0 %v6885_v18 }
  0x84   :  { %5668 = vmatprep.subr.bf16.mxu1 %v6918_v27  ;;  %5688 = vmatprep.subr.bf16.mxu0 %v6889_v19  ;;  %v808_v63 = vpop.permute.xlu1 %807  ;;  %v806_v0 = vpop.permute.xlu0 %805 }
  0x85   :  { %v809_v1 = vsel %vm332_vm2, %v806_v0, %v808_v63  ;;  %v6039_v0 = vpack.c.bf16 %v2370_v60, %v2369_v59  ;;  %v2391_v59 = vld [vmem:[%s9694_s5 + $0x130] sm:$0xff]  ;;  %v2392_v60 = vld [vmem:[%s9694_s5 + $0x138] sm:$0xff] }
  0x87   :  { %5670 = vmatpush1.bf16.msra.mxu1 %v6936_v32  ;;  %5690 = vmatpush1.bf16.msra.mxu0 %v6914_v26 }
  0x88   :  { %5672 = vmatprep.subr.bf16.mxu1 %v6940_v33  ;;  %5692 = vmatprep.subr.bf16.mxu0 %v6918_v27  ;;  %v1162_v35 = vpop.permute.xlu1 %1161 }
  0x8b   :  { %5674 = vmatpush1.bf16.msra.mxu1 %v6966_v40  ;;  %5694 = vmatpush1.bf16.msra.mxu0 %v6936_v32 }
  0x8c   :  { %5676 = vmatprep.subr.bf16.mxu1 %v6970_v41  ;;  %5696 = vmatprep.subr.bf16.mxu0 %v6940_v33  ;;  %v1282_v43 = vpop.permute.xlu1 %1281 }
  0x8f   :  { %5678 = vmatpush1.bf16.msra.mxu1 %v6986_v45  ;;  %5698 = vmatpush1.bf16.msra.mxu0 %v6966_v40 }
  0x90   :  { %5700 = vmatprep.subr.bf16.mxu0 %v6970_v41  ;;  %5704 = vmatprep.subr.bf16.mxu1 %v6845_v6  ;;  %v1636_v49 = vpop.permute.xlu1 %1635 }
  0x92   :  { %4825 = vmatmul.mubr.msk.f32.vlgmr.msra.gmra.mrb[2].mxu1 %vm86_vm0, %v450_v53 }
  0x93   :  { %5702 = vmatpush1.bf16.msra.mxu0 %v6986_v45  ;;  %5706 = vmatpush1.bf16.msra.mxu1 %v6856_v10 }
  0x94   :  { %5708 = vmatprep.subr.bf16.mxu1 %v6869_v14  ;;  %5728 = vmatprep.subr.bf16.mxu0 %v6845_v6  ;;  %v1878_v51 = vpop.permute.xlu1 %1877 }
  0x95   :  { %754 = vmatprep.mubr.f32.mxu1 %v6735_v2 }
  0x96   :  { %4826 = vmatmul.mubr.msk.f32.vlgmr.msra.gmra.mrb[4].mxu0 %vm86_vm0, %v6880_v17  ;;  %v1135_v17 = vld [vmem:[%s9692_s3 + $0x70] sm:$0xff] }
  0x97   :  { %5710 = vmatpush1.bf16.msra.mxu1 %v6885_v18  ;;  %5730 = vmatpush1.bf16.msra.mxu0 %v6856_v10 }
  0x98   :  { %5712 = vmatprep.subr.bf16.mxu1 %v6889_v19  ;;  %5732 = vmatprep.subr.bf16.mxu0 %v6869_v14  ;;  %v1760_v53 = vpop.permute.xlu1 %1759 }
  0x99   :  { %876 = vmatprep.mubr.f32.mxu0 %v6735_v2 }
  0x9b   :  { %5714 = vmatpush1.bf16.msra.mxu1 %v6914_v26  ;;  %5734 = vmatpush1.bf16.msra.mxu0 %v6885_v18 }
  0x9c   :  { %5716 = vmatprep.subr.bf16.mxu1 %v6918_v27  ;;  %5736 = vmatprep.subr.bf16.mxu0 %v6889_v19 }
  0x9f   :  { %5718 = vmatpush1.bf16.msra.mxu1 %v6936_v32  ;;  %5738 = vmatpush1.bf16.msra.mxu0 %v6914_v26 }
  0xa0   :  { %5720 = vmatprep.subr.bf16.mxu1 %v6940_v33  ;;  %5740 = vmatprep.subr.bf16.mxu0 %v6918_v27 }
  0xa3   :  { %5722 = vmatpush1.bf16.msra.mxu1 %v6966_v40  ;;  %5742 = vmatpush1.bf16.msra.mxu0 %v6936_v32 }
  0xa4   :  { %5724 = vmatprep.subr.bf16.mxu1 %v6970_v41  ;;  %5744 = vmatprep.subr.bf16.mxu0 %v6940_v33 }
  0xa7   :  { %5726 = vmatpush1.bf16.msra.mxu1 %v6986_v45  ;;  %5746 = vmatpush1.bf16.msra.mxu0 %v6966_v40 }
  0xa8   :  { %5748 = vmatprep.subr.bf16.mxu0 %v6970_v41  ;;  %5752 = vmatprep.subr.bf16.mxu1 %v6845_v6 }
  0xaa   :  { %4827 = vmatmul.mubr.msk.f32.vlgmr.msra.gmra.mrb[4].mxu1 %vm86_vm0, %v687_v62  ;;  %v2114_v62 = vpop.permute.xlu1 %2113 }
  0xab   :  { %5750 = vmatpush1.bf16.msra.mxu0 %v6986_v45  ;;  %5754 = vmatpush1.bf16.msra.mxu1 %v6856_v10 }
  0xac   :  { %5756 = vmatprep.subr.bf16.mxu1 %v6869_v14  ;;  %5776 = vmatprep.subr.bf16.mxu0 %v6845_v6 }
  0xad   :  { %993 = vmatprep.mubr.f32.mxu1 %v6735_v2 }
  0xae   :  { %4828 = vmatmul.mubr.msk.f32.vlgmr.msra.gmra.mrb[6].mxu0 %vm86_vm0, %v809_v1  ;;  %v2353_v1 = vld [vmem:[%s9694_s5] sm:$0xff] }
  0xaf   :  { %5758 = vmatpush1.bf16.msra.mxu1 %v6885_v18  ;;  %5778 = vmatpush1.bf16.msra.mxu0 %v6856_v10 }
  0xb0   :  { %5760 = vmatprep.subr.bf16.mxu1 %v6889_v19  ;;  %5780 = vmatprep.subr.bf16.mxu0 %v6869_v14 }
  0xb1   :  { %1108 = vmatprep.mubr.f32.mxu0 %v6735_v2 }
  0xb3   :  { %5762 = vmatpush1.bf16.msra.mxu1 %v6914_v26  ;;  %5782 = vmatpush1.bf16.msra.mxu0 %v6885_v18 }
  0xb4   :  { %5764 = vmatprep.subr.bf16.mxu1 %v6918_v27  ;;  %5784 = vmatprep.subr.bf16.mxu0 %v6889_v19 }
  0xb7   :  { %5766 = vmatpush1.bf16.msra.mxu1 %v6936_v32  ;;  %5786 = vmatpush1.bf16.msra.mxu0 %v6914_v26 }
  0xb8   :  { %5768 = vmatprep.subr.bf16.mxu1 %v6940_v33  ;;  %5788 = vmatprep.subr.bf16.mxu0 %v6918_v27  ;;  %v1142_v27 = vld [vmem:[%s9692_s3 + $0xa8] sm:$0xff] }
  0xb9   :  { %v7224_v30 = vpack.c.bf16 %v1144_v28, %v1142_v27  ;;  %v2357_v27 = vld [vmem:[%s9694_s5 + $0x20] sm:$0xff]  ;;  %v2358_v28 = vld [vmem:[%s9694_s5 + $0x28] sm:$0xff] }
  0xbb   :  { %5770 = vmatpush1.bf16.msra.mxu1 %v6966_v40  ;;  %5790 = vmatpush1.bf16.msra.mxu0 %v6936_v32  ;;  %v1143_v32 = vld [vmem:[%s9692_s3 + $0xb0] sm:$0xff] }
  0xbc   :  { %5772 = vmatprep.subr.bf16.mxu1 %v6970_v41  ;;  %5792 = vmatprep.subr.bf16.mxu0 %v6940_v33  ;;  %v1365_v33 = vld [vmem:[%s9692_s3 + $0x8] sm:$0xff]  ;;  %v7240_v37 = vpack.c.bf16 %v1143_v32, %v1141_v31  ;;  %v2387_v31 = vld [vmem:[%s9694_s5 + $0x110] sm:$0xff]  ;;  %v2388_v32 = vld [vmem:[%s9694_s5 + $0x118] sm:$0xff] }
  0xbf   :  { %5774 = vmatpush1.bf16.msra.mxu1 %v6986_v45  ;;  %5794 = vmatpush1.bf16.msra.mxu0 %v6966_v40  ;;  %v1366_v40 = vld [vmem:[%s9692_s3 + $0x10] sm:$0xff] }
  0xc0   :  { %5796 = vmatprep.subr.bf16.mxu0 %v6970_v41  ;;  %5800 = vmatprep.subr.bf16.mxu1 %v6845_v6  ;;  %v7255_v42 = vpack.c.bf16 %v1366_v40, %v1364_v39  ;;  %v2359_v39 = vld [vmem:[%s9694_s5 + $0x30] sm:$0xff]  ;;  %v2360_v40 = vld [vmem:[%s9694_s5 + $0x38] sm:$0xff] }
  0xc2   :  { %4829 = vmatmul.mubr.msk.f32.vlgmr.msra.gmra.mrb[6].mxu1 %vm86_vm0, %v926_v61 }
  0xc3   :  { %5798 = vmatpush1.bf16.msra.mxu0 %v6986_v45  ;;  %5802 = vmatpush1.bf16.msra.mxu1 %v6856_v10 }
  0xc4   :  { %5804 = vmatprep.subr.bf16.mxu1 %v6869_v14  ;;  %5824 = vmatprep.subr.bf16.mxu0 %v6845_v6  ;;  %v1252_v6 = vld [vmem:[%s9692_s3 + $0x48] sm:$0xff]  ;;  %v1133_v14 = vld [vmem:[%s9692_s3 + $0x60] sm:$0xff] }
  0xc5   :  { %1230 = vmatprep.mubr.f32.mxu1 %v6735_v2  ;;  %v7178_v16 = vpack.c.bf16 %v1254_v12, %v1252_v6  ;;  %v7198_v21 = vpack.c.bf16 %v1135_v17, %v1133_v14  ;;  %v6041_v6 = vpack.c.bf16 %v2354_v3, %v2353_v1  ;;  %v2355_v12 = vld [vmem:[%s9694_s5 + $0x10] sm:$0xff]  ;;  %v2236_v14 = vpop.permute.xlu1 %2235  ;;  %v6071_v17 = vpack.c.bf16 %v2402_v8, %v2401_v7  ;;  %v2364_v7 = vld [vmem:[%s9694_s5 + $0x58] sm:$0xff] }
  0xc6   :  { %4830 = vmatmul.mubr.msk.f32.vlgmr.msra.gmra.mrb[8].mxu0 %vm86_vm0, %v6960_v38  ;;  %v7244_v38 = vpack.c.bf16 %v1367_v34, %v1365_v33  ;;  %v2375_v33 = vld [vmem:[%s9694_s5 + $0xb0] sm:$0xff]  ;;  %v2376_v34 = vld [vmem:[%s9694_s5 + $0xb8] sm:$0xff]  ;;  %v6085_v3 = vpack.c.bf16 %v2392_v60, %v2391_v59  ;;  %v2417_v60 = vld [vmem:[%s9694_s5 + $0x200] sm:$0xff] }
  0xc7   :  { %5806 = vmatpush1.bf16.msra.mxu1 %v6885_v18  ;;  %5826 = vmatpush1.bf16.msra.mxu0 %v6856_v10  ;;  %v1251_v10 = vld [vmem:[%s9692_s3 + $0x40] sm:$0xff]  ;;  %v1253_v18 = vld [vmem:[%s9692_s3 + $0x50] sm:$0xff] }
  0xc8   :  { %5808 = vmatprep.subr.bf16.mxu1 %v6889_v19  ;;  %5828 = vmatprep.subr.bf16.mxu0 %v7144_v5  ;;  %v1138_v19 = vld [vmem:[%s9692_s3 + $0x88] sm:$0xff]  ;;  %v7200_v22 = vpack.c.bf16 %v1253_v18, %v1251_v10  ;;  %v2385_v10 = vld [vmem:[%s9694_s5 + $0x100] sm:$0xff] }
  0xc9   :  { %1352 = vmatprep.mubr.f32.mxu0 %v6735_v2  ;;  %v7204_v23 = vpack.c.bf16 %v1140_v20, %v1138_v19  ;;  %v2386_v18 = vld [vmem:[%s9694_s5 + $0x108] sm:$0xff]  ;;  %v2373_v19 = vld [vmem:[%s9694_s5 + $0xa0] sm:$0xff] }
  0xca   :  { %v2374_v20 = vld [vmem:[%s9694_s5 + $0xa8] sm:$0xff] }
  0xcb   :  { %5810 = vmatpush1.bf16.msra.mxu1 %v6914_v26  ;;  %5830 = vmatpush1.bf16.msra.mxu0 %v7169_v13  ;;  %v1160_v26 = vpop.permute.xlu0 %1159 }
  0xcc   :  { %5812 = vmatprep.subr.bf16.mxu1 %v7176_v15  ;;  %5832 = vmatprep.subr.bf16.mxu0 %v7178_v16  ;;  %v1163_v41 = vsel %vm209_vm1, %v1160_v26, %v1162_v35  ;;  %v6073_v26 = vpack.c.bf16 %v2386_v18, %v2385_v10  ;;  %v2405_v35 = vld [vmem:[%s9694_s5 + $0x1a0] sm:$0xff] }
  0xcd   :  { %v2365_v18 = vld [vmem:[%s9694_s5 + $0x60] sm:$0xff] }
  0xcf   :  { %5814 = vmatpush1.bf16.msra.mxu1 %v7198_v21  ;;  %5834 = vmatpush1.bf16.msra.mxu0 %v7200_v22  ;;  %v1402_v36 = vpop.permute.xlu0 %1401 }
  0xd0   :  { %5816 = vmatprep.subr.bf16.mxu1 %v7204_v23  ;;  %5836 = vmatprep.subr.bf16.mxu0 %v7176_v15 }
  0xd3   :  { %5818 = vmatpush1.bf16.msra.mxu1 %v7220_v29  ;;  %5838 = vmatpush1.bf16.msra.mxu0 %v7198_v21  ;;  %v1284_v44 = vpop.permute.xlu0 %1283 }
  0xd4   :  { %5820 = vmatprep.subr.bf16.mxu1 %v7224_v30  ;;  %5840 = vmatprep.subr.bf16.mxu0 %v7204_v23  ;;  %v1285_v45 = vsel %vm332_vm2, %v1282_v43, %v1284_v44  ;;  %v2389_v43 = vld [vmem:[%s9694_s5 + $0x120] sm:$0xff]  ;;  %v2390_v44 = vld [vmem:[%s9694_s5 + $0x128] sm:$0xff] }
  0xd7   :  { %5822 = vmatpush1.bf16.msra.mxu1 %v7240_v37  ;;  %5842 = vmatpush1.bf16.msra.mxu0 %v7220_v29 }
  0xd8   :  { %5844 = vmatprep.subr.bf16.mxu0 %v7224_v30  ;;  %5848 = vmatprep.subr.bf16.mxu1 %v7244_v38 }
  0xda   :  { %4831 = vmatmul.mubr.msk.f32.vlgmr.msra.gmra.mrb[8].mxu1 %vm86_vm0, %v1163_v41  ;;  %v6051_v41 = vpack.c.bf16 %v2376_v34, %v2375_v33 }
  0xdb   :  { %5846 = vmatpush1.bf16.msra.mxu0 %v7240_v37  ;;  %5850 = vmatpush1.bf16.msra.mxu1 %v7255_v42 }
  0xdc   :  { %5852 = vmatprep.subr.bf16.mxu1 %v7144_v5  ;;  %5872 = vmatprep.subr.bf16.mxu0 %v7244_v38 }
  0xdd   :  { %1469 = vmatprep.mubr.f32.mxu1 %v6735_v2 }
  0xde   :  { %4832 = vmatmul.mubr.msk.f32.vlgmr.msra.gmra.mrb[10].mxu0 %vm86_vm0, %v1285_v45  ;;  %v2377_v45 = vld [vmem:[%s9694_s5 + $0xc0] sm:$0xff] }
  0xdf   :  { %5854 = vmatpush1.bf16.msra.mxu1 %v7169_v13  ;;  %5874 = vmatpush1.bf16.msra.mxu0 %v7255_v42 }
  0xe0   :  { %5856 = vmatprep.subr.bf16.mxu1 %v7178_v16  ;;  %5876 = vmatprep.subr.bf16.mxu0 %v7144_v5 }
  0xe1   :  { %1584 = vmatprep.mubr.f32.mxu0 %v6735_v2 }
  0xe3   :  { %5858 = vmatpush1.bf16.msra.mxu1 %v7200_v22  ;;  %5878 = vmatpush1.bf16.msra.mxu0 %v7169_v13 }
  0xe4   :  { %5860 = vmatprep.subr.bf16.mxu1 %v7176_v15  ;;  %5880 = vmatprep.subr.bf16.mxu0 %v7178_v16 }
  0xe7   :  { %5862 = vmatpush1.bf16.msra.mxu1 %v7198_v21  ;;  %5882 = vmatpush1.bf16.msra.mxu0 %v7200_v22 }
  0xe8   :  { %5864 = vmatprep.subr.bf16.mxu1 %v7204_v23  ;;  %5884 = vmatprep.subr.bf16.mxu0 %v7176_v15 }
  0xeb   :  { %5866 = vmatpush1.bf16.msra.mxu1 %v7220_v29  ;;  %5886 = vmatpush1.bf16.msra.mxu0 %v7198_v21 }
  0xec   :  { %5868 = vmatprep.subr.bf16.mxu1 %v7224_v30  ;;  %5888 = vmatprep.subr.bf16.mxu0 %v7204_v23 }
  0xef   :  { %5870 = vmatpush1.bf16.msra.mxu1 %v7240_v37  ;;  %5890 = vmatpush1.bf16.msra.mxu0 %v7220_v29 }
  0xf0   :  { %5892 = vmatprep.subr.bf16.mxu0 %v7224_v30  ;;  %5896 = vmatprep.subr.bf16.mxu1 %v7244_v38 }
  0xf2   :  { %4833 = vmatmul.mubr.msk.f32.vlgmr.msra.gmra.mrb[10].mxu1 %vm86_vm0, %v1402_v36  ;;  %v7289_v47 = vpop.f32.mrb[0].mxu0  ;;  %v2406_v36 = vld [vmem:[%s9694_s5 + $0x1a8] sm:$0xff] }
  0xf3   :  { %5894 = vmatpush1.bf16.msra.mxu0 %v7240_v37  ;;  %5898 = vmatpush1.bf16.msra.mxu1 %v7255_v42  ;;  %v7293_v48 = vpop.f32.mrb[1].mxu0 }
  0xf4   :  { %5900 = vmatprep.subr.bf16.mxu1 %v7144_v5  ;;  %5920 = vmatprep.subr.bf16.mxu0 %v7244_v38 }
  0xf5   :  { %1706 = vmatprep.mubr.f32.mxu1 %v6735_v2 }
  0xf6   :  { %4834 = vmatmul.mubr.msk.f32.vlgmr.msra.gmra.mrb[12].mxu0 %vm86_vm0, %v6996_v46  ;;  %v1638_v46 = vpop.permute.xlu0 %1637 }
  0xf7   :  { %5902 = vmatpush1.bf16.msra.mxu1 %v7169_v13  ;;  %5922 = vmatpush1.bf16.msra.mxu0 %v7255_v42  ;;  %v1639_v52 = vsel %vm209_vm1, %v1636_v49, %v1638_v46  ;;  %v2407_v49 = vld [vmem:[%s9694_s5 + $0x1b0] sm:$0xff]  ;;  %v2408_v46 = vld [vmem:[%s9694_s5 + $0x1b8] sm:$0xff] }
  0xf8   :  { %5904 = vmatprep.subr.bf16.mxu1 %v7178_v16  ;;  %5924 = vmatprep.subr.bf16.mxu0 %v7144_v5  ;;  %v6083_v56 = vpack.c.bf16 %v2408_v46, %v2407_v49 }
  0xf9   :  { %1828 = vmatprep.mubr.f32.mxu0 %v6735_v2 }
  0xfa   :  { %v1758_v54 = vpop.permute.xlu0 %1757 }
  0xfb   :  { %5906 = vmatpush1.bf16.msra.mxu1 %v7200_v22  ;;  %5926 = vmatpush1.bf16.msra.mxu0 %v7169_v13  ;;  %v1761_v55 = vsel %vm332_vm2, %v1758_v54, %v1760_v53  ;;  %v2361_v53 = vld [vmem:[%s9694_s5 + $0x40] sm:$0xff]  ;;  %v2362_v54 = vld [vmem:[%s9694_s5 + $0x48] sm:$0xff] }
  0xfc   :  { %5908 = vmatprep.subr.bf16.mxu1 %v7176_v15  ;;  %5928 = vmatprep.subr.bf16.mxu0 %v7178_v16  ;;  %v6057_v1 = vpack.c.bf16 %v2362_v54, %v2361_v53  ;;  %v2399_v54 = vld [vmem:[%s9694_s5 + $0x170] sm:$0xff] }
  0xfe   :  { %v2112_v63 = vpop.permute.xlu0 %2111 }
  0xff   :  { %5910 = vmatpush1.bf16.msra.mxu1 %v7198_v21  ;;  %5930 = vmatpush1.bf16.msra.mxu0 %v7200_v22  ;;  %v2115_v11 = vsel %vm209_vm1, %v2112_v63, %v2114_v62  ;;  %v2380_v62 = vld [vmem:[%s9694_s5 + $0xd8] sm:$0xff]  ;;  %v2409_v63 = vld [vmem:[%s9694_s5 + $0x1c0] sm:$0xff] }
 0x100   :  { %5912 = vmatprep.subr.bf16.mxu1 %v7204_v23  ;;  %5932 = vmatprep.subr.bf16.mxu0 %v7176_v15 }
 0x103   :  { %5914 = vmatpush1.bf16.msra.mxu1 %v7220_v29  ;;  %5934 = vmatpush1.bf16.msra.mxu0 %v7198_v21 }
 0x104   :  { %5916 = vmatprep.subr.bf16.mxu1 %v7224_v30  ;;  %5936 = vmatprep.subr.bf16.mxu0 %v7204_v23 }
 0x107   :  { %5918 = vmatpush1.bf16.msra.mxu1 %v7240_v37  ;;  %5938 = vmatpush1.bf16.msra.mxu0 %v7220_v29 }
 0x108   :  { %5940 = vmatprep.subr.bf16.mxu0 %v7224_v30  ;;  %5944 = vmatprep.subr.bf16.mxu1 %v7244_v38 }
 0x10a   :  { %4835 = vmatmul.mubr.msk.f32.vlgmr.msra.gmra.mrb[12].mxu1 %vm86_vm0, %v1639_v52  ;;  %v6081_v52 = vpack.c.bf16 %v2390_v44, %v2389_v43  ;;  %v2416_v43 = vld [vmem:[%s9694_s5 + $0x1f8] sm:$0xff]  ;;  %v2433_v44 = vld [vmem:[%s9694_s5 + $0x280] sm:$0xff] }
 0x10b   :  { %5942 = vmatpush1.bf16.msra.mxu0 %v7240_v37  ;;  %5946 = vmatpush1.bf16.msra.mxu1 %v7255_v42 }
 0x10c   :  { %5948 = vmatprep.subr.bf16.mxu1 %v7144_v5  ;;  %5968 = vmatprep.subr.bf16.mxu0 %v7244_v38 }
 0x10d   :  { %1945 = vmatprep.mubr.f32.mxu1 %v6735_v2 }
 0x10e   :  { %4836 = vmatmul.mubr.msk.f32.vlgmr.msra.gmra.mrb[14].mxu0 %vm86_vm0, %v1761_v55 }
 0x10f   :  { %5950 = vmatpush1.bf16.msra.mxu1 %v7169_v13  ;;  %5970 = vmatpush1.bf16.msra.mxu0 %v7255_v42 }
 0x110   :  { %5952 = vmatprep.subr.bf16.mxu1 %v7178_v16  ;;  %5972 = vmatprep.subr.bf16.mxu0 %v7144_v5 }
 0x111   :  { %2060 = vmatprep.mubr.f32.mxu0 %v6735_v2 }
 0x113   :  { %5954 = vmatpush1.bf16.msra.mxu1 %v7200_v22  ;;  %5974 = vmatpush1.bf16.msra.mxu0 %v7169_v13 }
 0x114   :  { %5956 = vmatprep.subr.bf16.mxu1 %v7176_v15  ;;  %5976 = vmatprep.subr.bf16.mxu0 %v7178_v16 }
 0x117   :  { %5958 = vmatpush1.bf16.msra.mxu1 %v7198_v21  ;;  %5978 = vmatpush1.bf16.msra.mxu0 %v7200_v22 }
 0x118   :  { %5960 = vmatprep.subr.bf16.mxu1 %v7204_v23  ;;  %5980 = vmatprep.subr.bf16.mxu0 %v7176_v15 }
 0x11b   :  { %5962 = vmatpush1.bf16.msra.mxu1 %v7220_v29  ;;  %5982 = vmatpush1.bf16.msra.mxu0 %v7198_v21 }
 0x11c   :  { %5964 = vmatprep.subr.bf16.mxu1 %v7224_v30  ;;  %5984 = vmatprep.subr.bf16.mxu0 %v7204_v23 }
 0x11f   :  { %5966 = vmatpush1.bf16.msra.mxu1 %v7240_v37  ;;  %5986 = vmatpush1.bf16.msra.mxu0 %v7220_v29 }
 0x120   :  { %5988 = vmatprep.subr.bf16.mxu0 %v7224_v30  ;;  %5992 = vmatprep.subr.bf16.mxu1 %v7244_v38 }
 0x122   :  { %4837 = vmatmul.mubr.msk.f32.vlgmr.msra.gmra.mrb[14].mxu1 %vm86_vm0, %v1878_v51  ;;  %v6053_v51 = vpack.c.bf16 %v2360_v40, %v2359_v39  ;;  %v2398_v39 = vld [vmem:[%s9694_s5 + $0x168] sm:$0xff]  ;;  %v2415_v40 = vld [vmem:[%s9694_s5 + $0x1f0] sm:$0xff] }
 0x123   :  { %5990 = vmatpush1.bf16.msra.mxu0 %v7240_v37  ;;  %5994 = vmatpush1.bf16.msra.mxu1 %v7255_v42  ;;  %v6099_v59 = vpack.c.bf16 %v2416_v43, %v2415_v40  ;;  %v2453_v40 = vld [vmem:[%s9694_s5 + $0x320] sm:$0xff]  ;;  %v2442_v43 = vld [vmem:[%s9694_s5 + $0x2c8] sm:$0xff] }
 0x124   :  { %5996 = vmatprep.subr.bf16.mxu1 %v7144_v5  ;;  %6016 = vmatprep.subr.bf16.mxu0 %v7244_v38  ;;  %v6077_v38 = vpack.c.bf16 %v2388_v32, %v2387_v31  ;;  %v2414_v31 = vld [vmem:[%s9694_s5 + $0x1e8] sm:$0xff]  ;;  %v7580_v32 = vld [vmem:[%s9693_s4] sm:$0x3] }
 0x125   :  { %2182 = vmatprep.mubr.f32.mxu1 %v6735_v2  ;;  %v323_v49 = vrot.slane %v7580_v32, %v7378_v58 }
 0x126   :  { %4838 = vmatmul.mubr.msk.f32.vlgmr.msra.gmra.mrb[16].mxu0 %vm86_vm0, %v7036_v50  ;;  %v7373_v50 = vld [vmem:[%s9693_s4] sm:$0x3] }
 0x127   :  { %5998 = vmatpush1.bf16.msra.mxu1 %v7169_v13  ;;  %6018 = vmatpush1.bf16.msra.mxu0 %v7255_v42  ;;  %v83_v61 = vrot.slane %v7373_v50, %v7378_v58  ;;  %v6079_v42 = vpack.c.bf16 %v2406_v36, %v2405_v35  ;;  %v2368_v36 = vld [vmem:[%s9694_s5 + $0x78] sm:$0xff] }
 0x128   :  { %6000 = vmatprep.subr.bf16.mxu1 %v7178_v16  ;;  %6020 = vmatprep.subr.bf16.mxu0 %v7144_v5  ;;  %v2372_v5 = vld [vmem:[%s9694_s5 + $0x98] sm:$0xff] }
 0x129   :  { %2304 = vmatprep.mubr.f32.mxu0 %v6735_v2  ;;  %v159_v9 = vadd.f32 %v7293_v48, %v83_v61  ;;  %v2378_v48 = vld [vmem:[%s9694_s5 + $0xc8] sm:$0xff]  ;;  %v2379_v61 = vld [vmem:[%s9694_s5 + $0xd0] sm:$0xff] }
 0x12a   :  { %v6055_v55 = vpack.c.bf16 %v2378_v48, %v2377_v45  ;;  %v6059_v8 = vpack.c.bf16 %v2380_v62, %v2379_v61  ;;  %v2434_v45 = vld [vmem:[%s9694_s5 + $0x288] sm:$0xff]  ;;  %v2435_v62 = vld [vmem:[%s9694_s5 + $0x290] sm:$0xff] }
 0x12b   :  { %6002 = vmatpush1.bf16.msra.mxu1 %v7200_v22  ;;  %6022 = vmatpush1.bf16.msra.mxu0 %v7169_v13  ;;  %v2356_v13 = vld [vmem:[%s9694_s5 + $0x18] sm:$0xff]  ;;  %v2418_v61 = vld [vmem:[%s9694_s5 + $0x208] sm:$0xff] }
 0x12c   :  { %6004 = vmatprep.subr.bf16.mxu1 %v7176_v15  ;;  %6024 = vmatprep.subr.bf16.mxu0 %v7178_v16  ;;  %v6043_v16 = vpack.c.bf16 %v2372_v5, %v2371_v4  ;;  %v6045_v25 = vpack.c.bf16 %v2356_v13, %v2355_v12  ;;  %v7520_v4 = vld [vmem:[%s9693_s4] sm:$0x3]  ;;  %v2363_v5 = vld [vmem:[%s9694_s5 + $0x50] sm:$0xff]  ;;  %v2382_v13 = vld [vmem:[%s9694_s5 + $0xe8] sm:$0xff] }
 0x12d   :  { %v2381_v12 = vld [vmem:[%s9694_s5 + $0xe0] sm:$0xff] }
 0x12f   :  { %6006 = vmatpush1.bf16.msra.mxu1 %v7198_v21  ;;  %6026 = vmatpush1.bf16.msra.mxu0 %v7200_v22  ;;  %v2404_v22 = vld [vmem:[%s9694_s5 + $0x198] sm:$0xff] }
 0x130   :  { %6008 = vmatprep.subr.bf16.mxu1 %v7204_v23  ;;  %6028 = vmatprep.subr.bf16.mxu0 %v7176_v15  ;;  %v2234_v15 = vpop.permute.xlu0 %2233 }
 0x131   :  { %v2237_v24 = vsel %vm332_vm2, %v2234_v15, %v2236_v14  ;;  %v2411_v14 = vld [vmem:[%s9694_s5 + $0x1d0] sm:$0xff]  ;;  %v2412_v15 = vld [vmem:[%s9694_s5 + $0x1d8] sm:$0xff] }
 0x133   :  { %6010 = vmatpush1.bf16.msra.mxu1 %v7220_v29  ;;  %6030 = vmatpush1.bf16.msra.mxu0 %v7198_v21  ;;  %v2403_v21 = vld [vmem:[%s9694_s5 + $0x190] sm:$0xff] }
 0x134   :  { %6012 = vmatprep.subr.bf16.mxu1 %v7224_v30  ;;  %6032 = vmatprep.subr.bf16.mxu0 %v7204_v23  ;;  %v162_v23 = vmax.f32 %v159_v9, 0.0 }
 0x137   :  { %6014 = vmatpush1.bf16.msra.mxu1 %v7240_v37  ;;  %6034 = vmatpush1.bf16.msra.mxu0 %v7220_v29  ;;  %v6047_v29 = vpack.c.bf16 %v2374_v20, %v2373_v19  ;;  %v7552_v19 = vsub.s32 0, %v7366_v57  ;;  %v6063_v20 = vpack.c.bf16 %v2382_v13, %v2381_v12  ;;  %v2449_v13 = vld [vmem:[%s9694_s5 + $0x300] sm:$0xff] }
 0x138   :  { %6036 = vmatprep.subr.bf16.mxu0 %v7224_v30  ;;  %6040 = vmatprep.subr.bf16.mxu1 %v6039_v0  ;;  %v6075_v30 = vpack.c.bf16 %v2404_v22, %v2403_v21  ;;  %v2410_v0 = vld [vmem:[%s9694_s5 + $0x1c8] sm:$0xff]  ;;  %v6091_v21 = vpack.c.bf16 %v2412_v15, %v2411_v14  ;;  %v2437_v15 = vld [vmem:[%s9694_s5 + $0x2a0] sm:$0xff] }
 0x139   :  { %v6087_v9 = vpack.c.bf16 %v2410_v0, %v2409_v63  ;;  %v2366_v22 = vld [vmem:[%s9694_s5 + $0x68] sm:$0xff]  ;;  %v2436_v63 = vld [vmem:[%s9694_s5 + $0x298] sm:$0xff]  ;;  %v2465_v0 = vld [vmem:[%s9694_s5 + $0x380] sm:$0xff] }
 0x13a   :  { %4839 = vmatmul.mubr.msk.f32.vlgmr.msra.gmra.mrb[16].mxu1 %vm86_vm0, %v2115_v11  ;;  %v2393_v11 = vld [vmem:[%s9694_s5 + $0x140] sm:$0xff]  ;;  %v6065_v34 = vpack.c.bf16 %v2366_v22, %v2365_v18  ;;  %v2450_v14 = vld [vmem:[%s9694_s5 + $0x308] sm:$0xff] }
 0x13b   :  { %6038 = vmatpush1.bf16.msra.mxu0 %v7240_v37  ;;  %6042 = vmatpush3.bf16.msra.mxu1 %v6041_v6  ;;  %v6049_v37 = vpack.c.bf16 %v2358_v28, %v2357_v27  ;;  %v2394_v6 = vld [vmem:[%s9694_s5 + $0x148] sm:$0xff]  ;;  %v2384_v27 = vld [vmem:[%s9694_s5 + $0xf8] sm:$0xff]  ;;  %v2421_v22 = vld [vmem:[%s9694_s5 + $0x220] sm:$0xff] }
 0x13c   :  { %6044 = vmatprep.subr.bf16.mxu1 %v6043_v16  ;;  %6072 = vmatprep.subr.bf16.mxu0 %v6071_v17  ;;  %v200_v16 = vrot.slane %v7520_v4, %v7378_v58  ;;  %v6061_v17 = vpack.c.bf16 %v2364_v7, %v2363_v5  ;;  %v6089_v10 = vpack.c.bf16 %v2394_v6, %v2393_v11 }
 0x13d   :  { %3032 = vmatprep.mubr.f32.mxu1 %v162_v23  ;;  %v2395_v23 = vld [vmem:[%s9694_s5 + $0x150] sm:$0xff]  ;;  %v6105_v7 = vpack.c.bf16 %v2418_v61, %v2417_v60  ;;  %v6107_v6 = vpack.c.bf16 %v2436_v63, %v2435_v62  ;;  %v2444_v61 = vld [vmem:[%s9694_s5 + $0x2d8] sm:$0xff]  ;;  %v2473_v63 = vld [vmem:[%s9694_s5 + $0x3c0] sm:$0xff] }
 0x13e   :  { %4840 = vmatmul.mubr.msk.f32.vlgmr.msra.gmra.mrb[18].mxu0 %vm86_vm0, %v2237_v24  ;;  %v2396_v24 = vld [vmem:[%s9694_s5 + $0x158] sm:$0xff]  ;;  %v2443_v60 = vld [vmem:[%s9694_s5 + $0x2d0] sm:$0xff] }
 0x13f   :  { %6046 = vmatpush3.bf16.msra.mxu1 %v6045_v25  ;;  %6074 = vmatpush3.bf16.msra.mxu0 %v6073_v26  ;;  %v2383_v26 = vld [vmem:[%s9694_s5 + $0xf0] sm:$0xff]  ;;  %v6093_v35 = vpack.c.bf16 %v2396_v24, %v2395_v23  ;;  %v2422_v23 = vld [vmem:[%s9694_s5 + $0x228] sm:$0xff] }
 0x140   :  { %6048 = vmatprep.subr.bf16.mxu1 %v6047_v29  ;;  %6076 = vmatprep.subr.bf16.mxu0 %v6075_v30  ;;  %v79_v29 = vrot.slane %v7373_v50, %v7552_v19  ;;  %v2413_v30 = vld [vmem:[%s9694_s5 + $0x1e0] sm:$0xff]  ;;  %v2367_v50 = vld [vmem:[%s9694_s5 + $0x70] sm:$0xff] }
 0x142   :  { %v157_v46 = vadd.f32 %v7289_v47, %v79_v29  ;;  %v6103_v47 = vpack.c.bf16 %v2434_v45, %v2433_v44  ;;  %v2439_v29 = vld [vmem:[%s9694_s5 + $0x2b0] sm:$0xff]  ;;  %v2472_v45 = vld [vmem:[%s9694_s5 + $0x3b8] sm:$0xff] }
 0x143   :  { %6050 = vmatpush3.bf16.msra.mxu1 %v6049_v37  ;;  %6078 = vmatpush3.bf16.msra.mxu0 %v6077_v38  ;;  %v6067_v37 = vpack.c.bf16 %v2384_v27, %v2383_v26  ;;  %v2397_v38 = vld [vmem:[%s9694_s5 + $0x160] sm:$0xff]  ;;  %v2451_v27 = vld [vmem:[%s9694_s5 + $0x310] sm:$0xff] }
 0x144   :  { %6052 = vmatprep.subr.bf16.mxu1 %v6051_v41  ;;  %6080 = vmatprep.subr.bf16.mxu0 %v6079_v42  ;;  %v6095_v42 = vpack.c.bf16 %v2414_v31, %v2413_v30  ;;  %v6097_v53 = vpack.c.bf16 %v2398_v39, %v2397_v38  ;;  %v2440_v30 = vld [vmem:[%s9694_s5 + $0x2b8] sm:$0xff]  ;;  %v2469_v31 = vld [vmem:[%s9694_s5 + $0x3a0] sm:$0xff]  ;;  %v2471_v44 = vld [vmem:[%s9694_s5 + $0x3b0] sm:$0xff] }
 0x145   :  { %v6115_v38 = vpack.c.bf16 %v2440_v30, %v2439_v29  ;;  %v2477_v29 = vld [vmem:[%s9694_s5 + $0x3e0] sm:$0xff]  ;;  %v2478_v30 = vld [vmem:[%s9694_s5 + $0x3e8] sm:$0xff] }
 0x147   :  { %6054 = vmatpush3.bf16.msra.mxu1 %v6053_v51  ;;  %6082 = vmatpush3.bf16.msra.mxu0 %v6081_v52  ;;  %v6069_v52 = vpack.c.bf16 %v2368_v36, %v2367_v50  ;;  %v7688_v50 = vld [vmem:[%s9693_s4] sm:$0x3]  ;;  %v2423_v36 = vld [vmem:[%s9694_s5 + $0x230] sm:$0xff] }
 0x148   :  { %6056 = vmatprep.subr.bf16.mxu1 %v6055_v55  ;;  %6084 = vmatprep.subr.bf16.mxu0 %v6083_v56  ;;  %v2400_v55 = vld [vmem:[%s9694_s5 + $0x178] sm:$0xff]  ;;  %v196_v56 = vrot.slane %v7520_v4, %v7552_v19  ;;  %v161_v4 = vmax.f32 %v157_v46, 0.0 }
 0x149   :  { %v6101_v5 = vpack.c.bf16 %v2400_v55, %v2399_v54  ;;  %v6147_v54 = vpack.c.bf16 %v2472_v45, %v2471_v44  ;;  %v2426_v55 = vld [vmem:[%s9694_s5 + $0x248] sm:$0xff] }
 0x14a   :  { %v2498_v44 = vld [vmem:[%s9694_s5 + $0x488] sm:$0xff] }
 0x14b   :  { %6058 = vmatpush3.bf16.msra.mxu1 %v6057_v1  ;;  %6086 = vmatpush3.bf16.msra.mxu0 %v6085_v3  ;;  %v2466_v1 = vld [vmem:[%s9694_s5 + $0x388] sm:$0xff] }
 0x14c   :  { %6060 = vmatprep.subr.bf16.mxu1 %v6059_v8  ;;  %6088 = vmatprep.subr.bf16.mxu0 %v6087_v9  ;;  %v2419_v8 = vld [vmem:[%s9694_s5 + $0x210] sm:$0xff]  ;;  %v2420_v9 = vld [vmem:[%s9694_s5 + $0x218] sm:$0xff]  ;;  %v6135_v12 = vpack.c.bf16 %v2466_v1, %v2465_v0  ;;  %v2474_v0 = vld [vmem:[%s9694_s5 + $0x3c8] sm:$0xff] }
 0x14d   :  { %v279_v25 = vpop.f32.mrb[0].mxu1 }
 0x14e   :  { %v281_v28 = vpop.f32.mrb[1].mxu1  ;;  %v280_v11 = vadd.f32 %v279_v25, %v196_v56  ;;  %v2455_v56 = vld [vmem:[%s9694_s5 + $0x330] sm:$0xff] }
 0x14f   :  { %v282_v33 = vadd.f32 %v281_v28, %v200_v16  ;;  %6062 = vmatpush3.bf16.msra.mxu1 %v6061_v17  ;;  %6090 = vmatpush3.bf16.msra.mxu0 %v6089_v10  ;;  %v2438_v16 = vld [vmem:[%s9694_s5 + $0x2a8] sm:$0xff]  ;;  %v2467_v17 = vld [vmem:[%s9694_s5 + $0x390] sm:$0xff]  ;;  %v2468_v10 = vld [vmem:[%s9694_s5 + $0x398] sm:$0xff] }
 0x150   :  { %6064 = vmatprep.subr.bf16.mxu1 %v6063_v20  ;;  %6092 = vmatprep.subr.bf16.mxu0 %v6091_v21  ;;  %v6109_v20 = vpack.c.bf16 %v2420_v9, %v2419_v8  ;;  %v6137_v21 = vpack.c.bf16 %v2450_v14, %v2449_v13  ;;  %v284_v24 = vmax.f32 %v280_v11, 0.0  ;;  %v6111_v25 = vpack.c.bf16 %v2438_v16, %v2437_v15  ;;  %v2452_v28 = vld [vmem:[%s9694_s5 + $0x318] sm:$0xff]  ;;  %v2457_v9 = vld [vmem:[%s9694_s5 + $0x340] sm:$0xff]  ;;  %v2458_v11 = vld [vmem:[%s9694_s5 + $0x348] sm:$0xff] }
 0x151   :  { %v285_v41 = vmax.f32 %v282_v33, 0.0  ;;  %v7606_v48 = vpop.f32.mrb[2].mxu0  ;;  %v6139_v26 = vpack.c.bf16 %v2468_v10, %v2467_v17  ;;  %v2470_v33 = vld [vmem:[%s9694_s5 + $0x3a8] sm:$0xff]  ;;  %v6123_v8 = vpack.c.bf16 %v2444_v61, %v2443_v60  ;;  %v6151_v13 = vpack.c.bf16 %v2474_v0, %v2473_v63  ;;  %v2475_v15 = vld [vmem:[%s9694_s5 + $0x3d0] sm:$0xff]  ;;  %v2476_v16 = vld [vmem:[%s9694_s5 + $0x3d8] sm:$0xff] }
 0x152   :  { %v404_v51 = vpop.f32.mrb[3].mxu0  ;;  %v6143_v39 = vpack.c.bf16 %v2470_v33, %v2469_v31  ;;  %v2446_v14 = vld [vmem:[%s9694_s5 + $0x2e8] sm:$0xff]  ;;  %v7795_v31 = vld [vmem:[%s9693_s4] sm:$0x3]  ;;  %v2499_v60 = vld [vmem:[%s9694_s5 + $0x490] sm:$0xff] }
 0x153   :  { %6066 = vmatpush3.bf16.msra.mxu1 %v6065_v34  ;;  %6094 = vmatpush3.bf16.msra.mxu0 %v6093_v35  ;;  %v405_v3 = vadd.f32 %v404_v51, %v323_v49  ;;  %v6113_v34 = vpack.c.bf16 %v2422_v23, %v2421_v22  ;;  %v6141_v35 = vpack.c.bf16 %v2452_v28, %v2451_v27  ;;  %v2430_v22 = vld [vmem:[%s9694_s5 + $0x268] sm:$0xff]  ;;  %v2447_v27 = vld [vmem:[%s9694_s5 + $0x2f0] sm:$0xff]  ;;  %v2448_v28 = vld [vmem:[%s9694_s5 + $0x2f8] sm:$0xff] }
 0x154   :  { %3102 = vmatprep.mubr.f32.mxu0 %v285_v41  ;;  %6068 = vmatprep.subr.bf16.mxu1 %v6067_v37  ;;  %v2424_v37 = vld [vmem:[%s9694_s5 + $0x238] sm:$0xff]  ;;  %v2454_v41 = vld [vmem:[%s9694_s5 + $0x328] sm:$0xff]  ;;  %v445_v49 = vrot.slane %v7688_v50, %v7378_v58  ;;  %v562_v45 = vrot.slane %v7795_v31, %v7378_v58  ;;  %v2529_v61 = vld [vmem:[%s9694_s5 + $0x580] sm:$0xff] }
 0x155   :  { %6096 = vmatprep.subr.bf16.mxu0 %v6095_v42  ;;  %v408_v18 = vmax.f32 %v405_v3, 0.0  ;;  %v2441_v42 = vld [vmem:[%s9694_s5 + $0x2c0] sm:$0xff]  ;;  %v6117_v46 = vpack.c.bf16 %v2424_v37, %v2423_v36  ;;  %v6145_v51 = vpack.c.bf16 %v2454_v41, %v2453_v40  ;;  %v2432_v36 = vld [vmem:[%s9694_s5 + $0x278] sm:$0xff]  ;;  %v319_v37 = vrot.slane %v7580_v32, %v7552_v19  ;;  %v2462_v41 = vld [vmem:[%s9694_s5 + $0x368] sm:$0xff] }
 0x156   :  { %v2461_v40 = vld [vmem:[%s9694_s5 + $0x360] sm:$0xff]  ;;  %v2480_v32 = vld [vmem:[%s9694_s5 + $0x3f8] sm:$0xff] }
 0x157   :  { %6070 = vmatpush3.bf16.msra.mxu1 %v6069_v52  ;;  %6098 = vmatpush3.bf16.msra.mxu0 %v6097_v53  ;;  %v2425_v52 = vld [vmem:[%s9694_s5 + $0x240] sm:$0xff]  ;;  %v6119_v53 = vpack.c.bf16 %v2442_v43, %v2441_v42  ;;  %v2479_v42 = vld [vmem:[%s9694_s5 + $0x3f0] sm:$0xff] }
 0x158   :  { %6100 = vmatprep.subr.bf16.mxu0 %v6099_v59  ;;  %6104 = vmatprep.subr.bf16.mxu1 %v6103_v47  ;;  %v2456_v59 = vld [vmem:[%s9694_s5 + $0x338] sm:$0xff]  ;;  %v6121_v3 = vpack.c.bf16 %v2426_v55, %v2425_v52  ;;  %v2497_v43 = vld [vmem:[%s9694_s5 + $0x480] sm:$0xff]  ;;  %v2463_v52 = vld [vmem:[%s9694_s5 + $0x370] sm:$0xff]  ;;  %v6163_v55 = vpack.c.bf16 %v2480_v32, %v2479_v42 }
 0x159   :  { %v2517_v42 = vld [vmem:[%s9694_s5 + $0x520] sm:$0xff]  ;;  %v2518_v32 = vld [vmem:[%s9694_s5 + $0x528] sm:$0xff] }
 0x15a   :  { %3033 = vmatmul.mubr.f32.vlgmr.msra.gmra.mrb[18].mxu1 %v161_v4  ;;  %v6149_v4 = vpack.c.bf16 %v2456_v59, %v2455_v56  ;;  %v6167_v56 = vpack.c.bf16 %v2498_v44, %v2497_v43  ;;  %v2482_v59 = vld [vmem:[%s9694_s5 + $0x408] sm:$0xff]  ;;  %v2505_v43 = vld [vmem:[%s9694_s5 + $0x4c0] sm:$0xff] }
 0x15b   :  { %6102 = vmatpush3.bf16.msra.mxu0 %v6101_v5  ;;  %6106 = vmatpush3.bf16.msra.mxu1 %v6105_v7  ;;  %v2427_v5 = vld [vmem:[%s9694_s5 + $0x250] sm:$0xff]  ;;  %v2428_v7 = vld [vmem:[%s9694_s5 + $0x258] sm:$0xff] }
 0x15c   :  { %6108 = vmatprep.subr.bf16.mxu1 %v6107_v6  ;;  %6136 = vmatprep.subr.bf16.mxu0 %v6135_v12  ;;  %v2445_v6 = vld [vmem:[%s9694_s5 + $0x2e0] sm:$0xff] }
 0x15d   :  { %3172 = vmatprep.mubr.f32.mxu1 %v408_v18  ;;  %v6125_v18 = vpack.c.bf16 %v2428_v7, %v2427_v5  ;;  %v6127_v23 = vpack.c.bf16 %v2446_v14, %v2445_v6  ;;  %v2484_v5 = vld [vmem:[%s9694_s5 + $0x418] sm:$0xff]  ;;  %v2513_v6 = vld [vmem:[%s9694_s5 + $0x500] sm:$0xff]  ;;  %v2531_v14 = vld [vmem:[%s9694_s5 + $0x590] sm:$0xff] }
 0x15e   :  { %3103 = vmatmul.mubr.f32.vlgmr.msra.gmra.mrb[20].mxu0 %v284_v24  ;;  %v6155_v24 = vpack.c.bf16 %v2476_v16, %v2475_v15  ;;  %v2532_v15 = vld [vmem:[%s9694_s5 + $0x598] sm:$0xff] }
 0x15f   :  { %6110 = vmatpush3.bf16.msra.mxu1 %v6109_v20  ;;  %6138 = vmatpush3.bf16.msra.mxu0 %v6137_v21  ;;  %v6153_v20 = vpack.c.bf16 %v2458_v11, %v2457_v9  ;;  %v2429_v21 = vld [vmem:[%s9694_s5 + $0x260] sm:$0xff] }
 0x160   :  { %6112 = vmatprep.subr.bf16.mxu1 %v6111_v25  ;;  %6140 = vmatprep.subr.bf16.mxu0 %v6139_v26  ;;  %v2459_v25 = vld [vmem:[%s9694_s5 + $0x350] sm:$0xff]  ;;  %v2460_v26 = vld [vmem:[%s9694_s5 + $0x358] sm:$0xff]  ;;  %v6129_v33 = vpack.c.bf16 %v2430_v22, %v2429_v21  ;;  %v2485_v21 = vld [vmem:[%s9694_s5 + $0x420] sm:$0xff] }
 0x163   :  { %6114 = vmatpush3.bf16.msra.mxu1 %v6113_v34  ;;  %6142 = vmatpush3.bf16.msra.mxu0 %v6141_v35  ;;  %v6157_v34 = vpack.c.bf16 %v2460_v26, %v2459_v25  ;;  %v2431_v35 = vld [vmem:[%s9694_s5 + $0x270] sm:$0xff]  ;;  %v2486_v25 = vld [vmem:[%s9694_s5 + $0x428] sm:$0xff] }
 0x164   :  { %6116 = vmatprep.subr.bf16.mxu1 %v6115_v38  ;;  %6144 = vmatprep.subr.bf16.mxu0 %v6143_v39  ;;  %v6131_v38 = vpack.c.bf16 %v2448_v28, %v2447_v27  ;;  %v6159_v39 = vpack.c.bf16 %v2478_v30, %v2477_v29  ;;  %v2515_v26 = vld [vmem:[%s9694_s5 + $0x510] sm:$0xff]  ;;  %v2516_v27 = vld [vmem:[%s9694_s5 + $0x518] sm:$0xff] }
 0x165   :  { %v7728_v47 = vpop.f32.mrb[2].mxu1  ;;  %v2503_v29 = vld [vmem:[%s9694_s5 + $0x4b0] sm:$0xff]  ;;  %v2504_v30 = vld [vmem:[%s9694_s5 + $0x4b8] sm:$0xff] }
 0x166   :  { %v521_v62 = vpop.f32.mrb[3].mxu1 }
 0x167   :  { %v522_v1 = vadd.f32 %v521_v62, %v445_v49  ;;  %6118 = vmatpush3.bf16.msra.mxu1 %v6117_v46  ;;  %6146 = vmatpush3.bf16.msra.mxu0 %v6145_v51  ;;  %v441_v49 = vrot.slane %v7688_v50, %v7552_v19  ;;  %v6133_v46 = vpack.c.bf16 %v2432_v36, %v2431_v35  ;;  %v2481_v50 = vld [vmem:[%s9694_s5 + $0x400] sm:$0xff]  ;;  %v2530_v62 = vld [vmem:[%s9694_s5 + $0x588] sm:$0xff] }
 0x168   :  { %6120 = vmatprep.subr.bf16.mxu1 %v6119_v53  ;;  %6148 = vmatprep.subr.bf16.mxu0 %v6147_v54  ;;  %v6161_v51 = vpack.c.bf16 %v2462_v41, %v2461_v40  ;;  %v2464_v53 = vld [vmem:[%s9694_s5 + $0x378] sm:$0xff]  ;;  %v403_v54 = vadd.f32 %v7606_v48, %v319_v37  ;;  %v6199_v11 = vpack.c.bf16 %v2530_v62, %v2529_v61  ;;  %v2534_v35 = vld [vmem:[%s9694_s5 + $0x5a8] sm:$0xff]  ;;  %v2507_v62 = vld [vmem:[%s9694_s5 + $0x4d0] sm:$0xff] }
 0x169   :  { %v525_v12 = vmax.f32 %v522_v1, 0.0  ;;  %v7766_v17 = vpop.f32.mrb[4].mxu0  ;;  %v2500_v48 = vld [vmem:[%s9694_s5 + $0x498] sm:$0xff]  ;;  %v6165_v0 = vpack.c.bf16 %v2464_v53, %v2463_v52  ;;  %v6169_v1 = vpack.c.bf16 %v2482_v59, %v2481_v50  ;;  %v520_v7 = vadd.f32 %v7728_v47, %v441_v49  ;;  %v2502_v47 = vld [vmem:[%s9694_s5 + $0x4a8] sm:$0xff] }
 0x16a   :  { %v636_v10 = vpop.f32.mrb[5].mxu0  ;;  %v6171_v9 = vpack.c.bf16 %v2500_v48, %v2499_v60  ;;  %v6177_v37 = vpack.c.bf16 %v2486_v25, %v2485_v21  ;;  %v2488_v40 = vld [vmem:[%s9694_s5 + $0x438] sm:$0xff]  ;;  %v6179_v41 = vpack.c.bf16 %v2504_v30, %v2503_v29  ;;  %v2506_v49 = vld [vmem:[%s9694_s5 + $0x4c8] sm:$0xff]  ;;  %v2519_v48 = vld [vmem:[%s9694_s5 + $0x530] sm:$0xff] }
 0x16b   :  { %6122 = vmatpush3.bf16.msra.mxu1 %v6121_v3  ;;  %6150 = vmatpush3.bf16.msra.mxu0 %v6149_v4  ;;  %v637_v63 = vadd.f32 %v636_v10, %v562_v45  ;;  %v7855_v3 = vld [vmem:[%s9693_s4] sm:$0x3]  ;;  %v2483_v4 = vld [vmem:[%s9694_s5 + $0x410] sm:$0xff]  ;;  %v524_v22 = vmax.f32 %v520_v7, 0.0  ;;  %v2490_v50 = vld [vmem:[%s9694_s5 + $0x448] sm:$0xff]  ;;  %v6183_v59 = vpack.c.bf16 %v2506_v49, %v2505_v43 }
 0x16c   :  { %3242 = vmatprep.mubr.f32.mxu0 %v525_v12  ;;  %6124 = vmatprep.subr.bf16.mxu1 %v6123_v8  ;;  %v407_v8 = vmax.f32 %v403_v54, 0.0  ;;  %v2514_v12 = vld [vmem:[%s9694_s5 + $0x508] sm:$0xff]  ;;  %v678_v10 = vrot.slane %v7855_v3, %v7378_v58  ;;  %v2520_v61 = vld [vmem:[%s9694_s5 + $0x538] sm:$0xff]  ;;  %v2491_v7 = vld [vmem:[%s9694_s5 + $0x450] sm:$0xff] }
 0x16d   :  { %6152 = vmatprep.subr.bf16.mxu0 %v6151_v13  ;;  %v2501_v13 = vld [vmem:[%s9694_s5 + $0x4a0] sm:$0xff]  ;;  %v640_v16 = vmax.f32 %v637_v63, 0.0  ;;  %v2508_v63 = vld [vmem:[%s9694_s5 + $0x4d8] sm:$0xff]  ;;  %v2511_v25 = vld [vmem:[%s9694_s5 + $0x4f0] sm:$0xff] }
 0x16e   :  { %v2542_v29 = vld [vmem:[%s9694_s5 + $0x5e8] sm:$0xff]  ;;  %v8013_v30 = vld [vmem:[%s9693_s4] sm:$0x3] }
 0x16f   :  { %6126 = vmatpush3.bf16.msra.mxu1 %v6125_v18  ;;  %6154 = vmatpush3.bf16.msra.mxu0 %v6153_v20  ;;  %v6173_v18 = vpack.c.bf16 %v2484_v5, %v2483_v4  ;;  %v6201_v20 = vpack.c.bf16 %v2514_v12, %v2513_v6  ;;  %v6213_v5 = vpack.c.bf16 %v2520_v61, %v2519_v48  ;;  %v2521_v6 = vld [vmem:[%s9694_s5 + $0x540] sm:$0xff]  ;;  %v2522_v12 = vld [vmem:[%s9694_s5 + $0x548] sm:$0xff]  ;;  %v2563_v48 = vld [vmem:[%s9694_s5 + $0x690] sm:$0xff] }
 0x170   :  { %6128 = vmatprep.subr.bf16.mxu1 %v6127_v23  ;;  %6156 = vmatprep.subr.bf16.mxu0 %v6155_v24  ;;  %v6175_v23 = vpack.c.bf16 %v2502_v47, %v2501_v13  ;;  %v6203_v24 = vpack.c.bf16 %v2532_v15, %v2531_v14  ;;  %v2509_v13 = vld [vmem:[%s9694_s5 + $0x4e0] sm:$0xff]  ;;  %v2510_v47 = vld [vmem:[%s9694_s5 + $0x4e8] sm:$0xff]  ;;  %v2539_v14 = vld [vmem:[%s9694_s5 + $0x5d0] sm:$0xff] }
 0x171   :  { %v2540_v15 = vld [vmem:[%s9694_s5 + $0x5d8] sm:$0xff]  ;;  %v6191_v21 = vpack.c.bf16 %v2510_v47, %v2509_v13  ;;  %v2562_v43 = vld [vmem:[%s9694_s5 + $0x688] sm:$0xff]  ;;  %v8048_v49 = vld [vmem:[%s9693_s4] sm:$0x3] }
 0x172   :  { %v2577_v13 = vld [vmem:[%s9694_s5 + $0x700] sm:$0xff]  ;;  %v2578_v47 = vld [vmem:[%s9694_s5 + $0x708] sm:$0xff] }
 0x173   :  { %6130 = vmatpush3.bf16.msra.mxu1 %v6129_v33  ;;  %6158 = vmatpush3.bf16.msra.mxu0 %v6157_v34  ;;  %v2533_v34 = vld [vmem:[%s9694_s5 + $0x5a0] sm:$0xff] }
 0x174   :  { %6132 = vmatprep.subr.bf16.mxu1 %v6131_v38  ;;  %6160 = vmatprep.subr.bf16.mxu0 %v6159_v39  ;;  %v6205_v38 = vpack.c.bf16 %v2516_v27, %v2515_v26  ;;  %v2487_v39 = vld [vmem:[%s9694_s5 + $0x430] sm:$0xff]  ;;  %v6207_v45 = vpack.c.bf16 %v2534_v35, %v2533_v34  ;;  %v2512_v26 = vld [vmem:[%s9694_s5 + $0x4f8] sm:$0xff]  ;;  %v2541_v27 = vld [vmem:[%s9694_s5 + $0x5e0] sm:$0xff] }
 0x175   :  { %v6181_v54 = vpack.c.bf16 %v2488_v40, %v2487_v39  ;;  %v2495_v35 = vld [vmem:[%s9694_s5 + $0x470] sm:$0xff]  ;;  %v6223_v39 = vpack.c.bf16 %v2542_v29, %v2541_v27  ;;  %v2525_v40 = vld [vmem:[%s9694_s5 + $0x560] sm:$0xff] }
 0x176   :  { %v2579_v29 = vld [vmem:[%s9694_s5 + $0x710] sm:$0xff] }
 0x177   :  { %6134 = vmatpush3.bf16.msra.mxu1 %v6133_v46  ;;  %6162 = vmatpush3.bf16.msra.mxu0 %v6161_v51  ;;  %v2535_v46 = vld [vmem:[%s9694_s5 + $0x5b0] sm:$0xff]  ;;  %v2536_v51 = vld [vmem:[%s9694_s5 + $0x5b8] sm:$0xff] }
 0x178   :  { %6164 = vmatprep.subr.bf16.mxu0 %v6163_v55  ;;  %6168 = vmatprep.subr.bf16.mxu1 %v6167_v56  ;;  %v6209_v55 = vpack.c.bf16 %v2518_v32, %v2517_v42  ;;  %v2489_v56 = vld [vmem:[%s9694_s5 + $0x440] sm:$0xff]  ;;  %v6211_v60 = vpack.c.bf16 %v2536_v51, %v2535_v46  ;;  %v2543_v42 = vld [vmem:[%s9694_s5 + $0x5f0] sm:$0xff] }
 0x179   :  { %v6185_v4 = vpack.c.bf16 %v2490_v50, %v2489_v56  ;;  %v2561_v32 = vld [vmem:[%s9694_s5 + $0x680] sm:$0xff] }
 0x17a   :  { %3173 = vmatmul.mubr.f32.vlgmr.msra.gmra.mrb[20].mxu1 %v407_v8  ;;  %v2492_v8 = vld [vmem:[%s9694_s5 + $0x458] sm:$0xff]  ;;  %v6231_v50 = vpack.c.bf16 %v2562_v43, %v2561_v32 }
 0x17b   :  { %6166 = vmatpush3.bf16.msra.mxu0 %v6165_v0  ;;  %6170 = vmatpush3.bf16.msra.mxu1 %v6169_v1  ;;  %v2537_v0 = vld [vmem:[%s9694_s5 + $0x5c0] sm:$0xff]  ;;  %v2538_v1 = vld [vmem:[%s9694_s5 + $0x5c8] sm:$0xff] }
 0x17c   :  { %6172 = vmatprep.subr.bf16.mxu1 %v6171_v9  ;;  %6200 = vmatprep.subr.bf16.mxu0 %v6199_v11  ;;  %v6187_v9 = vpack.c.bf16 %v2508_v63, %v2507_v62  ;;  %v6215_v11 = vpack.c.bf16 %v2538_v1, %v2537_v0  ;;  %v2564_v62 = vld [vmem:[%s9694_s5 + $0x698] sm:$0xff]  ;;  %v2593_v63 = vld [vmem:[%s9694_s5 + $0x780] sm:$0xff]  ;;  %v2594_v0 = vld [vmem:[%s9694_s5 + $0x788] sm:$0xff]  ;;  %v921_v1 = vrot.slane %v8048_v49, %v7378_v58 }
 0x17d   :  { %v7896_v28 = vpop.f32.mrb[4].mxu1  ;;  %3312 = vmatprep.mubr.f32.mxu1 %v640_v16  ;;  %v6189_v16 = vpack.c.bf16 %v2492_v8, %v2491_v7  ;;  %v2547_v7 = vld [vmem:[%s9694_s5 + $0x610] sm:$0xff] }
 0x17e   :  { %v758_v33 = vpop.f32.mrb[5].mxu1  ;;  %3243 = vmatmul.mubr.f32.vlgmr.msra.gmra.mrb[22].mxu0 %v524_v22  ;;  %v6219_v22 = vpack.c.bf16 %v2540_v15, %v2539_v14  ;;  %v2566_v15 = vld [vmem:[%s9694_s5 + $0x6a8] sm:$0xff] }
 0x17f   :  { %v759_v36 = vadd.f32 %v758_v33, %v678_v10  ;;  %6174 = vmatpush3.bf16.msra.mxu1 %v6173_v18  ;;  %6202 = vmatpush3.bf16.msra.mxu0 %v6201_v20  ;;  %v6217_v10 = vpack.c.bf16 %v2522_v12, %v2521_v6  ;;  %v2493_v18 = vld [vmem:[%s9694_s5 + $0x460] sm:$0xff]  ;;  %v2494_v20 = vld [vmem:[%s9694_s5 + $0x468] sm:$0xff]  ;;  %v6263_v6 = vpack.c.bf16 %v2594_v0, %v2593_v63  ;;  %v2548_v12 = vld [vmem:[%s9694_s5 + $0x618] sm:$0xff] }
 0x180   :  { %6176 = vmatprep.subr.bf16.mxu1 %v6175_v23  ;;  %6204 = vmatprep.subr.bf16.mxu0 %v6203_v24  ;;  %v2523_v23 = vld [vmem:[%s9694_s5 + $0x550] sm:$0xff]  ;;  %v2524_v24 = vld [vmem:[%s9694_s5 + $0x558] sm:$0xff]  ;;  %v6193_v33 = vpack.c.bf16 %v2494_v20, %v2493_v18 }
 0x181   :  { %v762_v44 = vmax.f32 %v759_v36, 0.0  ;;  %v7934_v52 = vpop.f32.mrb[6].mxu0  ;;  %v6221_v34 = vpack.c.bf16 %v2524_v24, %v2523_v23  ;;  %v2496_v36 = vld [vmem:[%s9694_s5 + $0x478] sm:$0xff]  ;;  %v2595_v18 = vld [vmem:[%s9694_s5 + $0x790] sm:$0xff]  ;;  %v6265_v23 = vpack.c.bf16 %v2578_v47, %v2577_v13  ;;  %v2549_v24 = vld [vmem:[%s9694_s5 + $0x620] sm:$0xff] }
 0x182   :  { %v7936_v53 = vpop.f32.mrb[7].mxu0  ;;  %v6197_v46 = vpack.c.bf16 %v2496_v36, %v2495_v35  ;;  %v2596_v20 = vld [vmem:[%s9694_s5 + $0x798] sm:$0xff]  ;;  %v2571_v63 = vld [vmem:[%s9694_s5 + $0x6d0] sm:$0xff]  ;;  %v2573_v13 = vld [vmem:[%s9694_s5 + $0x6e0] sm:$0xff] }
 0x183   :  { %6178 = vmatpush3.bf16.msra.mxu1 %v6177_v37  ;;  %6206 = vmatpush3.bf16.msra.mxu0 %v6205_v38  ;;  %v558_v37 = vrot.slane %v7795_v31, %v7552_v19  ;;  %v6195_v38 = vpack.c.bf16 %v2512_v26, %v2511_v25  ;;  %v2544_v31 = vld [vmem:[%s9694_s5 + $0x5f8] sm:$0xff]  ;;  %v2550_v25 = vld [vmem:[%s9694_s5 + $0x628] sm:$0xff]  ;;  %v6267_v35 = vpack.c.bf16 %v2596_v20, %v2595_v18  ;;  %v2557_v18 = vld [vmem:[%s9694_s5 + $0x660] sm:$0xff] }
 0x184   :  { %3382 = vmatprep.mubr.f32.mxu0 %v762_v44  ;;  %6180 = vmatprep.subr.bf16.mxu1 %v6179_v41  ;;  %v2526_v41 = vld [vmem:[%s9694_s5 + $0x568] sm:$0xff]  ;;  %v800_v44 = vrot.slane %v8013_v30, %v7378_v58  ;;  %v2568_v36 = vld [vmem:[%s9694_s5 + $0x6b8] sm:$0xff] }
 0x185   :  { %6208 = vmatprep.subr.bf16.mxu0 %v6207_v45  ;;  %v674_v45 = vrot.slane %v7855_v3, %v7552_v19  ;;  %v6225_v51 = vpack.c.bf16 %v2526_v41, %v2525_v40  ;;  %v635_v56 = vadd.f32 %v7766_v17, %v558_v37  ;;  %v6227_v3 = vpack.c.bf16 %v2544_v31, %v2543_v42  ;;  %v2597_v37 = vld [vmem:[%s9694_s5 + $0x7a0] sm:$0xff]  ;;  %v2551_v42 = vld [vmem:[%s9694_s5 + $0x630] sm:$0xff]  ;;  %v2552_v31 = vld [vmem:[%s9694_s5 + $0x638] sm:$0xff] }
 0x186   :  { %v881_v17 = vadd.f32 %v7936_v53, %v800_v44  ;;  %v6241_v40 = vpack.c.bf16 %v2550_v25, %v2549_v24  ;;  %v2581_v44 = vld [vmem:[%s9694_s5 + $0x720] sm:$0xff]  ;;  %v2572_v0 = vld [vmem:[%s9694_s5 + $0x6d8] sm:$0xff]  ;;  %v2574_v47 = vld [vmem:[%s9694_s5 + $0x6e8] sm:$0xff] }
 0x187   :  { %6182 = vmatpush3.bf16.msra.mxu1 %v6181_v54  ;;  %6210 = vmatpush3.bf16.msra.mxu0 %v6209_v55  ;;  %v2527_v54 = vld [vmem:[%s9694_s5 + $0x570] sm:$0xff]  ;;  %v2528_v55 = vld [vmem:[%s9694_s5 + $0x578] sm:$0xff]  ;;  %v757_v8 = vadd.f32 %v7896_v28, %v674_v45  ;;  %v2565_v28 = vld [vmem:[%s9694_s5 + $0x6a0] sm:$0xff] }
 0x188   :  { %6184 = vmatprep.subr.bf16.mxu1 %v6183_v59  ;;  %6212 = vmatprep.subr.bf16.mxu0 %v6211_v60  ;;  %v2545_v59 = vld [vmem:[%s9694_s5 + $0x600] sm:$0xff]  ;;  %v2546_v60 = vld [vmem:[%s9694_s5 + $0x608] sm:$0xff]  ;;  %v884_v14 = vmax.f32 %v881_v17, 0.0  ;;  %v6239_v27 = vpack.c.bf16 %v2566_v15, %v2565_v28  ;;  %v2583_v17 = vld [vmem:[%s9694_s5 + $0x730] sm:$0xff] }
 0x189   :  { %v6233_v53 = vpack.c.bf16 %v2546_v60, %v2545_v59  ;;  %v761_v26 = vmax.f32 %v757_v8, 0.0  ;;  %v2582_v45 = vld [vmem:[%s9694_s5 + $0x728] sm:$0xff]  ;;  %v2556_v8 = vld [vmem:[%s9694_s5 + $0x658] sm:$0xff]  ;;  %v2587_v24 = vld [vmem:[%s9694_s5 + $0x750] sm:$0xff] }
 0x18a   :  { %v2554_v59 = vld [vmem:[%s9694_s5 + $0x648] sm:$0xff]  ;;  %v2604_v28 = vld [vmem:[%s9694_s5 + $0x7d8] sm:$0xff] }
 0x18b   :  { %6186 = vmatpush3.bf16.msra.mxu1 %v6185_v4  ;;  %6214 = vmatpush3.bf16.msra.mxu0 %v6213_v5  ;;  %v6229_v5 = vpack.c.bf16 %v2528_v55, %v2527_v54  ;;  %v2599_v54 = vld [vmem:[%s9694_s5 + $0x7b0] sm:$0xff]  ;;  %v2600_v55 = vld [vmem:[%s9694_s5 + $0x7b8] sm:$0xff]  ;;  %v2558_v20 = vld [vmem:[%s9694_s5 + $0x668] sm:$0xff] }
 0x18c   :  { %6188 = vmatprep.subr.bf16.mxu1 %v6187_v9  ;;  %6216 = vmatprep.subr.bf16.mxu0 %v6215_v11  ;;  %v639_v9 = vmax.f32 %v635_v56, 0.0  ;;  %v6235_v11 = vpack.c.bf16 %v2564_v62, %v2563_v48  ;;  %v6245_v56 = vpack.c.bf16 %v2552_v31, %v2551_v42  ;;  %v6275_v48 = vpack.c.bf16 %v2600_v55, %v2599_v54  ;;  %v2584_v62 = vld [vmem:[%s9694_s5 + $0x738] sm:$0xff] }
 0x18d   :  { %v2588_v25 = vld [vmem:[%s9694_s5 + $0x758] sm:$0xff] }
 0x18f   :  { %6190 = vmatpush3.bf16.msra.mxu1 %v6189_v16  ;;  %6218 = vmatpush3.bf16.msra.mxu0 %v6217_v10 }
 0x190   :  { %6192 = vmatprep.subr.bf16.mxu1 %v6191_v21  ;;  %6220 = vmatprep.subr.bf16.mxu0 %v6219_v22  ;;  %v6237_v22 = vpack.c.bf16 %v2548_v12, %v2547_v7  ;;  %v2555_v7 = vld [vmem:[%s9694_s5 + $0x650] sm:$0xff]  ;;  %v2586_v12 = vld [vmem:[%s9694_s5 + $0x748] sm:$0xff] }
 0x191   :  { %v6253_v15 = vpack.c.bf16 %v2556_v8, %v2555_v7  ;;  %v2658_v7 = vld [vmem:[%s9694_s5 + $0x988] sm:$0xff] }
 0x193   :  { %6194 = vmatpush3.bf16.msra.mxu1 %v6193_v33  ;;  %6222 = vmatpush3.bf16.msra.mxu0 %v6221_v34  ;;  %v2580_v33 = vld [vmem:[%s9694_s5 + $0x718] sm:$0xff]  ;;  %v2567_v34 = vld [vmem:[%s9694_s5 + $0x6b0] sm:$0xff] }
 0x194   :  { %6196 = vmatprep.subr.bf16.mxu1 %v6195_v38  ;;  %6224 = vmatprep.subr.bf16.mxu0 %v6223_v39  ;;  %v2598_v38 = vld [vmem:[%s9694_s5 + $0x7a8] sm:$0xff]  ;;  %v6269_v41 = vpack.c.bf16 %v2580_v33, %v2579_v29  ;;  %v6243_v32 = vpack.c.bf16 %v2568_v36, %v2567_v34  ;;  %v2576_v29 = vld [vmem:[%s9694_s5 + $0x6f8] sm:$0xff]  ;;  %v2605_v33 = vld [vmem:[%s9694_s5 + $0x7e0] sm:$0xff] }
 0x195   :  { %v8066_v61 = vpop.f32.mrb[6].mxu1  ;;  %v6271_v43 = vpack.c.bf16 %v2598_v38, %v2597_v37  ;;  %v2606_v34 = vld [vmem:[%s9694_s5 + $0x7e8] sm:$0xff]  ;;  %v8234_v36 = vld [vmem:[%s9693_s4] sm:$0x3]  ;;  %v6257_v37 = vpack.c.bf16 %v2558_v20, %v2557_v18  ;;  %v6285_v38 = vpack.c.bf16 %v2588_v25, %v2587_v24  ;;  %v2659_v20 = vld [vmem:[%s9694_s5 + $0x990] sm:$0xff] }
 0x196   :  { %v997_v4 = vpop.f32.mrb[7].mxu1  ;;  %v6287_v31 = vpack.c.bf16 %v2606_v34, %v2605_v33  ;;  %v1038_v54 = vrot.slane %v8234_v36, %v7378_v58  ;;  %v2613_v25 = vld [vmem:[%s9694_s5 + $0x820] sm:$0xff]  ;;  %v2643_v34 = vld [vmem:[%s9694_s5 + $0x910] sm:$0xff] }
 0x197   :  { %6198 = vmatpush3.bf16.msra.mxu1 %v6197_v46  ;;  %6226 = vmatpush3.bf16.msra.mxu0 %v6225_v51  ;;  %v998_v10 = vadd.f32 %v997_v4, %v921_v1  ;;  %v2569_v46 = vld [vmem:[%s9694_s5 + $0x6c0] sm:$0xff]  ;;  %v2570_v51 = vld [vmem:[%s9694_s5 + $0x6c8] sm:$0xff] }
 0x198   :  { %6228 = vmatprep.subr.bf16.mxu0 %v6227_v3  ;;  %6232 = vmatprep.subr.bf16.mxu1 %v6231_v50  ;;  %v6273_v3 = vpack.c.bf16 %v2582_v45, %v2581_v44  ;;  %v2553_v50 = vld [vmem:[%s9694_s5 + $0x640] sm:$0xff]  ;;  %v6247_v60 = vpack.c.bf16 %v2570_v51, %v2569_v46  ;;  %v2602_v4 = vld [vmem:[%s9694_s5 + $0x7c8] sm:$0xff]  ;;  %v2607_v44 = vld [vmem:[%s9694_s5 + $0x7f0] sm:$0xff] }
 0x199   :  { %v8099_v16 = vpop.f32.mrb[8].mxu0  ;;  %v1001_v39 = vmax.f32 %v998_v10, 0.0  ;;  %v2601_v1 = vld [vmem:[%s9694_s5 + $0x7c0] sm:$0xff]  ;;  %v2626_v46 = vld [vmem:[%s9694_s5 + $0x888] sm:$0xff] }
 0x19a   :  { %3313 = vmatmul.mubr.f32.vlgmr.msra.gmra.mrb[22].mxu1 %v639_v9  ;;  %v8107_v21 = vpop.f32.mrb[9].mxu0  ;;  %v6251_v9 = vpack.c.bf16 %v2572_v0, %v2571_v63  ;;  %v2625_v45 = vld [vmem:[%s9694_s5 + $0x880] sm:$0xff]  ;;  %v2610_v0 = vld [vmem:[%s9694_s5 + $0x808] sm:$0xff] }
 0x19b   :  { %6230 = vmatpush3.bf16.msra.mxu0 %v6229_v5  ;;  %6234 = vmatpush3.bf16.msra.mxu1 %v6233_v53  ;;  %v6249_v5 = vpack.c.bf16 %v2554_v59, %v2553_v50  ;;  %v6277_v53 = vpack.c.bf16 %v2584_v62, %v2583_v17  ;;  %v6295_v62 = vpack.c.bf16 %v2626_v46, %v2625_v45  ;;  %v2609_v63 = vld [vmem:[%s9694_s5 + $0x800] sm:$0xff] }
 0x19c   :  { %6236 = vmatprep.subr.bf16.mxu1 %v6235_v11  ;;  %6264 = vmatprep.subr.bf16.mxu0 %v6263_v6  ;;  %v6279_v11 = vpack.c.bf16 %v2602_v4, %v2601_v1  ;;  %v2585_v6 = vld [vmem:[%s9694_s5 + $0x740] sm:$0xff]  ;;  %v2628_v1 = vld [vmem:[%s9694_s5 + $0x898] sm:$0xff] }
 0x19d   :  { %3452 = vmatprep.mubr.f32.mxu1 %v884_v14  ;;  %v2603_v14 = vld [vmem:[%s9694_s5 + $0x7d0] sm:$0xff]  ;;  %v6281_v10 = vpack.c.bf16 %v2586_v12, %v2585_v6  ;;  %v2645_v46 = vld [vmem:[%s9694_s5 + $0x920] sm:$0xff] }
 0x19e   :  { %3383 = vmatmul.mubr.f32.vlgmr.msra.gmra.mrb[24].mxu0 %v761_v26  ;;  %v2575_v26 = vld [vmem:[%s9694_s5 + $0x6f0] sm:$0xff] }
 0x19f   :  { %6238 = vmatpush3.bf16.msra.mxu1 %v6237_v22  ;;  %6266 = vmatpush3.bf16.msra.mxu0 %v6265_v23  ;;  %v6255_v22 = vpack.c.bf16 %v2574_v47, %v2573_v13  ;;  %v6283_v23 = vpack.c.bf16 %v2604_v28, %v2603_v14  ;;  %v6259_v42 = vpack.c.bf16 %v2576_v29, %v2575_v26  ;;  %v2612_v13 = vld [vmem:[%s9694_s5 + $0x818] sm:$0xff]  ;;  %v2641_v47 = vld [vmem:[%s9694_s5 + $0x900] sm:$0xff]  ;;  %v2642_v14 = vld [vmem:[%s9694_s5 + $0x908] sm:$0xff] }
 0x1a0   :  { %3522 = vmatprep.mubr.f32.mxu0 %v1001_v39  ;;  %6240 = vmatprep.subr.bf16.mxu1 %v6239_v27  ;;  %v2559_v39 = vld [vmem:[%s9694_s5 + $0x670] sm:$0xff]  ;;  %v6329_v24 = vpack.c.bf16 %v2642_v14, %v2641_v47  ;;  %v2614_v26 = vld [vmem:[%s9694_s5 + $0x828] sm:$0xff]  ;;  %v2649_v14 = vld [vmem:[%s9694_s5 + $0x940] sm:$0xff] }
 0x1a1   :  { %6268 = vmatprep.subr.bf16.mxu0 %v6267_v35 }
 0x1a3   :  { %6242 = vmatpush3.bf16.msra.mxu1 %v6241_v40  ;;  %6270 = vmatpush3.bf16.msra.mxu0 %v6269_v41  ;;  %v2560_v40 = vld [vmem:[%s9694_s5 + $0x678] sm:$0xff]  ;;  %v796_v41 = vrot.slane %v8013_v30, %v7552_v19 }
 0x1a4   :  { %6244 = vmatprep.subr.bf16.mxu1 %v6243_v32  ;;  %6272 = vmatprep.subr.bf16.mxu0 %v6271_v43  ;;  %v2589_v32 = vld [vmem:[%s9694_s5 + $0x760] sm:$0xff]  ;;  %v2590_v43 = vld [vmem:[%s9694_s5 + $0x768] sm:$0xff]  ;;  %v2608_v30 = vld [vmem:[%s9694_s5 + $0x7f8] sm:$0xff]  ;;  %v6261_v50 = vpack.c.bf16 %v2560_v40, %v2559_v39 }
 0x1a5   :  { %v6289_v59 = vpack.c.bf16 %v2590_v43, %v2589_v32  ;;  %v6291_v17 = vpack.c.bf16 %v2608_v30, %v2607_v44  ;;  %v2632_v39 = vld [vmem:[%s9694_s5 + $0x8b8] sm:$0xff]  ;;  %v2661_v40 = vld [vmem:[%s9694_s5 + $0x9a0] sm:$0xff]  ;;  %v2615_v43 = vld [vmem:[%s9694_s5 + $0x830] sm:$0xff] }
 0x1a6   :  { %v2616_v44 = vld [vmem:[%s9694_s5 + $0x838] sm:$0xff] }
 0x1a7   :  { %6246 = vmatpush3.bf16.msra.mxu1 %v6245_v56  ;;  %6274 = vmatpush3.bf16.msra.mxu0 %v6273_v3  ;;  %v917_v56 = vrot.slane %v8048_v49, %v7552_v19  ;;  %v8273_v3 = vld [vmem:[%s9693_s4] sm:$0x3]  ;;  %v2592_v49 = vld [vmem:[%s9694_s5 + $0x778] sm:$0xff] }
 0x1a8   :  { %6248 = vmatprep.subr.bf16.mxu1 %v6247_v60  ;;  %6276 = vmatprep.subr.bf16.mxu0 %v6275_v48  ;;  %v2591_v60 = vld [vmem:[%s9694_s5 + $0x770] sm:$0xff]  ;;  %v879_v48 = vadd.f32 %v7934_v52, %v796_v41  ;;  %v1154_v4 = vrot.slane %v8273_v3, %v7378_v58  ;;  %v2662_v41 = vld [vmem:[%s9694_s5 + $0x9a8] sm:$0xff] }
 0x1a9   :  { %v2627_v52 = vld [vmem:[%s9694_s5 + $0x890] sm:$0xff]  ;;  %v6293_v8 = vpack.c.bf16 %v2592_v49, %v2591_v60  ;;  %v996_v6 = vadd.f32 %v8066_v61, %v917_v56  ;;  %v2629_v61 = vld [vmem:[%s9694_s5 + $0x8a0] sm:$0xff]  ;;  %v6335_v45 = vpack.c.bf16 %v2662_v41, %v2661_v40  ;;  %v2664_v60 = vld [vmem:[%s9694_s5 + $0x9b8] sm:$0xff] }
 0x1aa   :  { %v883_v12 = vmax.f32 %v879_v48, 0.0  ;;  %v2633_v56 = vld [vmem:[%s9694_s5 + $0x8c0] sm:$0xff]  ;;  %v6309_v48 = vpack.c.bf16 %v2616_v44, %v2615_v43  ;;  %v2618_v49 = vld [vmem:[%s9694_s5 + $0x848] sm:$0xff]  ;;  %v2624_v43 = vld [vmem:[%s9694_s5 + $0x878] sm:$0xff]  ;;  %v1034_v44 = vrot.slane %v8234_v36, %v7552_v19 }
 0x1ab   :  { %6250 = vmatpush3.bf16.msra.mxu1 %v6249_v5  ;;  %6278 = vmatpush3.bf16.msra.mxu0 %v6277_v53  ;;  %v1113_v5 = vadd.f32 %v8107_v21, %v1038_v54  ;;  %v2657_v53 = vld [vmem:[%s9694_s5 + $0x980] sm:$0xff]  ;;  %v6299_v21 = vpack.c.bf16 %v2628_v1, %v2627_v52  ;;  %v1000_v29 = vmax.f32 %v996_v6, 0.0  ;;  %v2646_v54 = vld [vmem:[%s9694_s5 + $0x928] sm:$0xff]  ;;  %v2647_v52 = vld [vmem:[%s9694_s5 + $0x930] sm:$0xff] }
 0x1ac   :  { %6252 = vmatprep.subr.bf16.mxu1 %v6251_v9  ;;  %6280 = vmatprep.subr.bf16.mxu0 %v6279_v11  ;;  %v6297_v9 = vpack.c.bf16 %v2610_v0, %v2609_v63  ;;  %v2611_v11 = vld [vmem:[%s9694_s5 + $0x810] sm:$0xff]  ;;  %v6327_v28 = vpack.c.bf16 %v2658_v7, %v2657_v53  ;;  %v2648_v1 = vld [vmem:[%s9694_s5 + $0x938] sm:$0xff]  ;;  %v2665_v7 = vld [vmem:[%s9694_s5 + $0x9c0] sm:$0xff] }
 0x1ad   :  { %v8220_v27 = vpop.f32.mrb[8].mxu1  ;;  %v1116_v18 = vmax.f32 %v1113_v5, 0.0  ;;  %v2636_v53 = vld [vmem:[%s9694_s5 + $0x8d8] sm:$0xff]  ;;  %v6341_v6 = vpack.c.bf16 %v2648_v1, %v2647_v52  ;;  %v2670_v40 = vld [vmem:[%s9694_s5 + $0x9e8] sm:$0xff]  ;;  %v8459_v41 = vld [vmem:[%s9693_s4] sm:$0x3] }
 0x1ae   :  { %v1234_v35 = vpop.f32.mrb[9].mxu1  ;;  %v2672_v36 = vld [vmem:[%s9694_s5 + $0x9f8] sm:$0xff] }
 0x1af   :  { %6254 = vmatpush3.bf16.msra.mxu1 %v6253_v15  ;;  %6282 = vmatpush3.bf16.msra.mxu0 %v6281_v10  ;;  %v2630_v15 = vld [vmem:[%s9694_s5 + $0x8a8] sm:$0xff]  ;;  %v1235_v10 = vadd.f32 %v1234_v35, %v1154_v4  ;;  %v2644_v35 = vld [vmem:[%s9694_s5 + $0x918] sm:$0xff]  ;;  %v2635_v4 = vld [vmem:[%s9694_s5 + $0x8d0] sm:$0xff] }
 0x1b0   :  { %6256 = vmatprep.subr.bf16.mxu1 %v6255_v22  ;;  %6284 = vmatprep.subr.bf16.mxu0 %v6283_v23  ;;  %v2660_v22 = vld [vmem:[%s9694_s5 + $0x998] sm:$0xff]  ;;  %v6301_v23 = vpack.c.bf16 %v2612_v13, %v2611_v11  ;;  %v6303_v33 = vpack.c.bf16 %v2630_v15, %v2629_v61  ;;  %v6333_v32 = vpack.c.bf16 %v2644_v35, %v2643_v34  ;;  %v2637_v61 = vld [vmem:[%s9694_s5 + $0x8e0] sm:$0xff]  ;;  %v2638_v15 = vld [vmem:[%s9694_s5 + $0x8e8] sm:$0xff] }
 0x1b1   :  { %v8262_v51 = vpop.f32.mrb[10].mxu0  ;;  %v6315_v13 = vpack.c.bf16 %v2636_v53, %v2635_v4  ;;  %v2651_v34 = vld [vmem:[%s9694_s5 + $0x950] sm:$0xff]  ;;  %v2652_v35 = vld [vmem:[%s9694_s5 + $0x958] sm:$0xff]  ;;  %v2673_v4 = vld [vmem:[%s9694_s5 + $0xa00] sm:$0xff] }
 0x1b2   :  { %v8266_v55 = vpop.f32.mrb[11].mxu0  ;;  %v2674_v53 = vld [vmem:[%s9694_s5 + $0xa08] sm:$0xff] }
 0x1b3   :  { %6258 = vmatpush3.bf16.msra.mxu1 %v6257_v37  ;;  %6286 = vmatpush3.bf16.msra.mxu0 %v6285_v38  ;;  %v2631_v37 = vld [vmem:[%s9694_s5 + $0x8b0] sm:$0xff]  ;;  %v6331_v38 = vpack.c.bf16 %v2660_v22, %v2659_v20 }
 0x1b4   :  { %6260 = vmatprep.subr.bf16.mxu1 %v6259_v42  ;;  %6288 = vmatprep.subr.bf16.mxu0 %v6287_v31  ;;  %v1238_v42 = vmax.f32 %v1235_v10, 0.0  ;;  %v6305_v31 = vpack.c.bf16 %v2614_v26, %v2613_v25  ;;  %v6307_v30 = vpack.c.bf16 %v2632_v39, %v2631_v37  ;;  %v2667_v10 = vld [vmem:[%s9694_s5 + $0x9d0] sm:$0xff]  ;;  %v2621_v25 = vld [vmem:[%s9694_s5 + $0x860] sm:$0xff]  ;;  %v2622_v26 = vld [vmem:[%s9694_s5 + $0x868] sm:$0xff] }
 0x1b5   :  { %v2639_v37 = vld [vmem:[%s9694_s5 + $0x8f0] sm:$0xff]  ;;  %v2669_v39 = vld [vmem:[%s9694_s5 + $0x9e0] sm:$0xff] }
 0x1b7   :  { %6262 = vmatpush3.bf16.msra.mxu1 %v6261_v50  ;;  %6290 = vmatpush3.bf16.msra.mxu0 %v6289_v59  ;;  %v2634_v50 = vld [vmem:[%s9694_s5 + $0x8c8] sm:$0xff]  ;;  %v2663_v59 = vld [vmem:[%s9694_s5 + $0x9b0] sm:$0xff] }
 0x1b8   :  { %6292 = vmatprep.subr.bf16.mxu0 %v6291_v17  ;;  %6296 = vmatprep.subr.bf16.mxu1 %v6295_v62  ;;  %v6337_v17 = vpack.c.bf16 %v2646_v54, %v2645_v46  ;;  %v2617_v62 = vld [vmem:[%s9694_s5 + $0x840] sm:$0xff]  ;;  %v6311_v63 = vpack.c.bf16 %v2634_v50, %v2633_v56  ;;  %v6339_v0 = vpack.c.bf16 %v2664_v60, %v2663_v59  ;;  %v2654_v54 = vld [vmem:[%s9694_s5 + $0x968] sm:$0xff]  ;;  %v2671_v56 = vld [vmem:[%s9694_s5 + $0x9f0] sm:$0xff] }
 0x1b9   :  { %v6313_v11 = vpack.c.bf16 %v2618_v49, %v2617_v62  ;;  %v2653_v46 = vld [vmem:[%s9694_s5 + $0x960] sm:$0xff]  ;;  %v2690_v59 = vld [vmem:[%s9694_s5 + $0xa88] sm:$0xff]  ;;  %v1276_v60 = vrot.slane %v8459_v41, %v7378_v58  ;;  %v6355_v52 = vpack.c.bf16 %v2672_v36, %v2671_v56  ;;  %v2679_v36 = vld [vmem:[%s9694_s5 + $0xa30] sm:$0xff] }
 0x1ba   :  { %3453 = vmatmul.mubr.f32.vlgmr.msra.gmra.mrb[24].mxu1 %v883_v12  ;;  %v2619_v12 = vld [vmem:[%s9694_s5 + $0x850] sm:$0xff]  ;;  %v2689_v50 = vld [vmem:[%s9694_s5 + $0xa80] sm:$0xff]  ;;  %v6353_v49 = vpack.c.bf16 %v2654_v54, %v2653_v46 }
 0x1bb   :  { %6294 = vmatpush3.bf16.msra.mxu0 %v6293_v8  ;;  %6298 = vmatpush3.bf16.msra.mxu1 %v6297_v9  ;;  %v2666_v8 = vld [vmem:[%s9694_s5 + $0x9c8] sm:$0xff]  ;;  %v6359_v1 = vpack.c.bf16 %v2690_v59, %v2689_v50  ;;  %v2680_v50 = vld [vmem:[%s9694_s5 + $0xa38] sm:$0xff] }
 0x1bc   :  { %3592 = vmatprep.mubr.f32.mxu1 %v1116_v18  ;;  %6300 = vmatprep.subr.bf16.mxu1 %v6299_v21  ;;  %v2620_v21 = vld [vmem:[%s9694_s5 + $0x858] sm:$0xff]  ;;  %v6343_v47 = vpack.c.bf16 %v2666_v8, %v2665_v7 }
 0x1bd   :  { %6328 = vmatprep.subr.bf16.mxu0 %v6327_v28  ;;  %v2650_v28 = vld [vmem:[%s9694_s5 + $0x948] sm:$0xff]  ;;  %v2668_v18 = vld [vmem:[%s9694_s5 + $0x9d8] sm:$0xff] }
 0x1be   :  { %3523 = vmatmul.mubr.f32.vlgmr.msra.gmra.mrb[26].mxu0 %v1000_v29  ;;  %v6319_v29 = vpack.c.bf16 %v2638_v15, %v2637_v61  ;;  %v2692_v7 = vld [vmem:[%s9694_s5 + $0xa98] sm:$0xff]  ;;  %v2705_v15 = vld [vmem:[%s9694_s5 + $0xb00] sm:$0xff] }
 0x1bf   :  { %6302 = vmatpush3.bf16.msra.mxu1 %v6301_v23  ;;  %6330 = vmatpush3.bf16.msra.mxu0 %v6329_v24  ;;  %v6317_v23 = vpack.c.bf16 %v2620_v21, %v2619_v12  ;;  %v6345_v24 = vpack.c.bf16 %v2650_v28, %v2649_v14  ;;  %v2722_v12 = vld [vmem:[%s9694_s5 + $0xb88] sm:$0xff]  ;;  %v2676_v61 = vld [vmem:[%s9694_s5 + $0xa18] sm:$0xff] }
 0x1c0   :  { %3662 = vmatprep.mubr.f32.mxu0 %v1238_v42  ;;  %6304 = vmatprep.subr.bf16.mxu1 %v6303_v33  ;;  %v6347_v33 = vpack.c.bf16 %v2668_v18, %v2667_v10  ;;  %v6321_v42 = vpack.c.bf16 %v2622_v26, %v2621_v25  ;;  %v2706_v10 = vld [vmem:[%s9694_s5 + $0xb08] sm:$0xff]  ;;  %v2723_v26 = vld [vmem:[%s9694_s5 + $0xb90] sm:$0xff] }
 0x1c1   :  { %6332 = vmatprep.subr.bf16.mxu0 %v6331_v38  ;;  %v2640_v38 = vld [vmem:[%s9694_s5 + $0x8f8] sm:$0xff] }
 0x1c3   :  { %6306 = vmatpush3.bf16.msra.mxu1 %v6305_v31  ;;  %6334 = vmatpush3.bf16.msra.mxu0 %v6333_v32  ;;  %v6349_v31 = vpack.c.bf16 %v2652_v35, %v2651_v34  ;;  %v2623_v32 = vld [vmem:[%s9694_s5 + $0x870] sm:$0xff]  ;;  %v6393_v34 = vpack.c.bf16 %v2706_v10, %v2705_v15  ;;  %v2677_v35 = vld [vmem:[%s9694_s5 + $0xa20] sm:$0xff]  ;;  %v2684_v15 = vld [vmem:[%s9694_s5 + $0xa58] sm:$0xff] }
 0x1c4   :  { %6308 = vmatprep.subr.bf16.mxu1 %v6307_v30  ;;  %6336 = vmatprep.subr.bf16.mxu0 %v6335_v45  ;;  %v6323_v30 = vpack.c.bf16 %v2640_v38, %v2639_v37  ;;  %v6351_v45 = vpack.c.bf16 %v2670_v40, %v2669_v39  ;;  %v6325_v62 = vpack.c.bf16 %v2624_v43, %v2623_v32  ;;  %v2707_v39 = vld [vmem:[%s9694_s5 + $0xb10] sm:$0xff]  ;;  %v2708_v40 = vld [vmem:[%s9694_s5 + $0xb18] sm:$0xff] }
 0x1c5   :  { %v8391_v5 = vpop.f32.mrb[10].mxu1  ;;  %v2696_v43 = vld [vmem:[%s9694_s5 + $0xab8] sm:$0xff]  ;;  %v6397_v56 = vpack.c.bf16 %v2708_v40, %v2707_v39  ;;  %v2715_v39 = vld [vmem:[%s9694_s5 + $0xb50] sm:$0xff] }
 0x1c6   :  { %v8402_v9 = vpop.f32.mrb[11].mxu1  ;;  %v2716_v40 = vld [vmem:[%s9694_s5 + $0xb58] sm:$0xff] }
 0x1c7   :  { %6310 = vmatpush3.bf16.msra.mxu1 %v6309_v48  ;;  %6338 = vmatpush3.bf16.msra.mxu0 %v6337_v17  ;;  %v1150_v48 = vrot.slane %v8273_v3, %v7552_v19  ;;  %v8494_v17 = vld [vmem:[%s9693_s4] sm:$0x3]  ;;  %v2656_v3 = vld [vmem:[%s9694_s5 + $0x978] sm:$0xff] }
 0x1c8   :  { %6312 = vmatprep.subr.bf16.mxu1 %v6311_v63  ;;  %6340 = vmatprep.subr.bf16.mxu0 %v6339_v0  ;;  %v2655_v63 = vld [vmem:[%s9694_s5 + $0x970] sm:$0xff]  ;;  %v1111_v0 = vadd.f32 %v8099_v16, %v1034_v44  ;;  %v1397_v8 = vrot.slane %v8494_v17, %v7378_v58  ;;  %v2725_v44 = vld [vmem:[%s9694_s5 + $0xba0] sm:$0xff] }
 0x1c9   :  { %v8428_v20 = vpop.f32.mrb[12].mxu0  ;;  %v2691_v16 = vld [vmem:[%s9694_s5 + $0xa90] sm:$0xff]  ;;  %v6357_v21 = vpack.c.bf16 %v2656_v3, %v2655_v63  ;;  %v1233_v14 = vadd.f32 %v8220_v27, %v1150_v48  ;;  %v2693_v27 = vld [vmem:[%s9694_s5 + $0xaa0] sm:$0xff]  ;;  %v2698_v63 = vld [vmem:[%s9694_s5 + $0xac8] sm:$0xff] }
 0x1ca   :  { %v8430_v22 = vpop.f32.mrb[13].mxu0  ;;  %v1115_v28 = vmax.f32 %v1111_v0, 0.0  ;;  %v2709_v48 = vld [vmem:[%s9694_s5 + $0xb20] sm:$0xff]  ;;  %v2727_v0 = vld [vmem:[%s9694_s5 + $0xbb0] sm:$0xff] }
 0x1cb   :  { %6314 = vmatpush3.bf16.msra.mxu1 %v6313_v11  ;;  %6342 = vmatpush3.bf16.msra.mxu0 %v6341_v6  ;;  %v1357_v11 = vadd.f32 %v8266_v55, %v1276_v60  ;;  %v2721_v6 = vld [vmem:[%s9694_s5 + $0xb80] sm:$0xff]  ;;  %v6363_v55 = vpack.c.bf16 %v2692_v7, %v2691_v16  ;;  %v1237_v37 = vmax.f32 %v1233_v14, 0.0  ;;  %v2682_v7 = vld [vmem:[%s9694_s5 + $0xa48] sm:$0xff] }
 0x1cc   :  { %6316 = vmatprep.subr.bf16.mxu1 %v6315_v13  ;;  %6344 = vmatprep.subr.bf16.mxu0 %v6343_v47  ;;  %v6361_v13 = vpack.c.bf16 %v2674_v53, %v2673_v4  ;;  %v2675_v47 = vld [vmem:[%s9694_s5 + $0xa10] sm:$0xff]  ;;  %v6391_v18 = vpack.c.bf16 %v2722_v12, %v2721_v6  ;;  %v6373_v4 = vpack.c.bf16 %v2680_v50, %v2679_v36  ;;  %v2681_v16 = vld [vmem:[%s9694_s5 + $0xa40] sm:$0xff]  ;;  %v2712_v12 = vld [vmem:[%s9694_s5 + $0xb38] sm:$0xff] }
 0x1cd   :  { %v1360_v25 = vmax.f32 %v1357_v11, 0.0  ;;  %v2711_v6 = vld [vmem:[%s9694_s5 + $0xb30] sm:$0xff]  ;;  %v2730_v14 = vld [vmem:[%s9694_s5 + $0xbc8] sm:$0xff]  ;;  %v2688_v36 = vld [vmem:[%s9694_s5 + $0xa78] sm:$0xff]  ;;  %v1272_v50 = vrot.slane %v8459_v41, %v7552_v19 }
 0x1ce   :  { %v2736_v41 = vld [vmem:[%s9694_s5 + $0xbf8] sm:$0xff] }
 0x1cf   :  { %6318 = vmatpush3.bf16.msra.mxu1 %v6317_v23  ;;  %6346 = vmatpush3.bf16.msra.mxu0 %v6345_v24  ;;  %v2694_v23 = vld [vmem:[%s9694_s5 + $0xaa8] sm:$0xff]  ;;  %v1474_v24 = vadd.f32 %v8402_v9, %v1397_v8 }
 0x1d0   :  { %6320 = vmatprep.subr.bf16.mxu1 %v6319_v29  ;;  %6348 = vmatprep.subr.bf16.mxu0 %v6347_v33  ;;  %v2724_v29 = vld [vmem:[%s9694_s5 + $0xb98] sm:$0xff]  ;;  %v6365_v33 = vpack.c.bf16 %v2676_v61, %v2675_v47  ;;  %v2678_v9 = vld [vmem:[%s9694_s5 + $0xa28] sm:$0xff]  ;;  %v6367_v38 = vpack.c.bf16 %v2694_v23, %v2693_v27  ;;  %v2729_v47 = vld [vmem:[%s9694_s5 + $0xbc0] sm:$0xff] }
 0x1d1   :  { %v6395_v32 = vpack.c.bf16 %v2724_v29, %v2723_v26  ;;  %v6369_v54 = vpack.c.bf16 %v2678_v9, %v2677_v35  ;;  %v2683_v61 = vld [vmem:[%s9694_s5 + $0xa50] sm:$0xff]  ;;  %v2713_v27 = vld [vmem:[%s9694_s5 + $0xb40] sm:$0xff]  ;;  %v2714_v23 = vld [vmem:[%s9694_s5 + $0xb48] sm:$0xff] }
 0x1d2   :  { %v2731_v26 = vld [vmem:[%s9694_s5 + $0xbd0] sm:$0xff]  ;;  %v2732_v29 = vld [vmem:[%s9694_s5 + $0xbd8] sm:$0xff]  ;;  %v2685_v35 = vld [vmem:[%s9694_s5 + $0xa60] sm:$0xff] }
 0x1d3   :  { %6322 = vmatpush3.bf16.msra.mxu1 %v6321_v42  ;;  %6350 = vmatpush3.bf16.msra.mxu0 %v6349_v31  ;;  %v2695_v42 = vld [vmem:[%s9694_s5 + $0xab0] sm:$0xff]  ;;  %v2686_v9 = vld [vmem:[%s9694_s5 + $0xa68] sm:$0xff] }
 0x1d4   :  { %6324 = vmatprep.subr.bf16.mxu1 %v6323_v30  ;;  %6352 = vmatprep.subr.bf16.mxu0 %v6351_v45  ;;  %v2726_v30 = vld [vmem:[%s9694_s5 + $0xba8] sm:$0xff]  ;;  %v1477_v45 = vmax.f32 %v1474_v24, 0.0  ;;  %v6371_v59 = vpack.c.bf16 %v2696_v43, %v2695_v42  ;;  %v2701_v24 = vld [vmem:[%s9694_s5 + $0xae0] sm:$0xff]  ;;  %v2703_v42 = vld [vmem:[%s9694_s5 + $0xaf0] sm:$0xff] }
 0x1d5   :  { %v6399_v60 = vpack.c.bf16 %v2726_v30, %v2725_v44  ;;  %v2733_v43 = vld [vmem:[%s9694_s5 + $0xbe0] sm:$0xff]  ;;  %v2734_v44 = vld [vmem:[%s9694_s5 + $0xbe8] sm:$0xff] }
 0x1d6   :  { %v8681_v30 = vld [vmem:[%s9693_s4] sm:$0x3] }
 0x1d7   :  { %6326 = vmatpush3.bf16.msra.mxu1 %v6325_v62  ;;  %6354 = vmatpush3.bf16.msra.mxu0 %v6353_v49  ;;  %v2710_v62 = vld [vmem:[%s9694_s5 + $0xb28] sm:$0xff]  ;;  %v2697_v49 = vld [vmem:[%s9694_s5 + $0xac0] sm:$0xff] }
 0x1d8   :  { %6356 = vmatprep.subr.bf16.mxu0 %v6355_v52  ;;  %6360 = vmatprep.subr.bf16.mxu1 %v6359_v1  ;;  %v2728_v52 = vld [vmem:[%s9694_s5 + $0xbb8] sm:$0xff]  ;;  %v6401_v53 = vpack.c.bf16 %v2710_v62, %v2709_v48  ;;  %v6375_v8 = vpack.c.bf16 %v2698_v63, %v2697_v49  ;;  %v2717_v48 = vld [vmem:[%s9694_s5 + $0xb60] sm:$0xff]  ;;  %v2718_v62 = vld [vmem:[%s9694_s5 + $0xb68] sm:$0xff] }
 0x1d9   :  { %v6403_v11 = vpack.c.bf16 %v2728_v52, %v2727_v0  ;;  %v2735_v49 = vld [vmem:[%s9694_s5 + $0xbf0] sm:$0xff]  ;;  %v2753_v63 = vld [vmem:[%s9694_s5 + $0xc80] sm:$0xff]  ;;  %v2754_v0 = vld [vmem:[%s9694_s5 + $0xc88] sm:$0xff]  ;;  %v1514_v52 = vrot.slane %v8681_v30, %v7378_v58 }
 0x1da   :  { %3593 = vmatmul.mubr.f32.vlgmr.msra.gmra.mrb[26].mxu1 %v1115_v28  ;;  %v6377_v28 = vpack.c.bf16 %v2682_v7, %v2681_v16  ;;  %v6417_v7 = vpack.c.bf16 %v2718_v62, %v2717_v48  ;;  %v2789_v48 = vld [vmem:[%s9694_s5 + $0xda0] sm:$0xff]  ;;  %v2790_v62 = vld [vmem:[%s9694_s5 + $0xda8] sm:$0xff] }
 0x1db   :  { %6358 = vmatpush3.bf16.msra.mxu0 %v6357_v21  ;;  %6362 = vmatpush3.bf16.msra.mxu1 %v6361_v13  ;;  %v2699_v21 = vld [vmem:[%s9694_s5 + $0xad0] sm:$0xff]  ;;  %v2700_v13 = vld [vmem:[%s9694_s5 + $0xad8] sm:$0xff] }
 0x1dc   :  { %3732 = vmatprep.mubr.f32.mxu1 %v1360_v25  ;;  %6364 = vmatprep.subr.bf16.mxu1 %v6363_v55  ;;  %v6405_v55 = vpack.c.bf16 %v2712_v12, %v2711_v6  ;;  %v6379_v10 = vpack.c.bf16 %v2700_v13, %v2699_v21  ;;  %v2702_v25 = vld [vmem:[%s9694_s5 + $0xae8] sm:$0xff]  ;;  %v6419_v6 = vpack.c.bf16 %v2736_v41, %v2735_v49  ;;  %v2737_v21 = vld [vmem:[%s9694_s5 + $0xc00] sm:$0xff] }
 0x1dd   :  { %v8565_v31 = vpop.f32.mrb[12].mxu1  ;;  %6392 = vmatprep.subr.bf16.mxu0 %v6391_v18  ;;  %v6407_v18 = vpack.c.bf16 %v2730_v14, %v2729_v47  ;;  %v6423_v12 = vpack.c.bf16 %v2754_v0, %v2753_v63  ;;  %v2738_v13 = vld [vmem:[%s9694_s5 + $0xc08] sm:$0xff]  ;;  %v2756_v14 = vld [vmem:[%s9694_s5 + $0xc98] sm:$0xff]  ;;  %v2743_v0 = vld [vmem:[%s9694_s5 + $0xc30] sm:$0xff] }
 0x1de   :  { %v8576_v46 = vpop.f32.mrb[13].mxu1  ;;  %3663 = vmatmul.mubr.f32.vlgmr.msra.gmra.mrb[28].mxu0 %v1237_v37  ;;  %v6383_v37 = vpack.c.bf16 %v2702_v25, %v2701_v24 }
 0x1df   :  { %6366 = vmatpush3.bf16.msra.mxu1 %v6365_v33  ;;  %6394 = vmatpush3.bf16.msra.mxu0 %v6393_v34  ;;  %v6381_v33 = vpack.c.bf16 %v2684_v15, %v2683_v61  ;;  %v6409_v34 = vpack.c.bf16 %v2714_v23, %v2713_v27  ;;  %v2785_v15 = vld [vmem:[%s9694_s5 + $0xd80] sm:$0xff]  ;;  %v6425_v27 = vpack.c.bf16 %v2738_v13, %v2737_v21  ;;  %v2739_v23 = vld [vmem:[%s9694_s5 + $0xc10] sm:$0xff] }
 0x1e0   :  { %3802 = vmatprep.mubr.f32.mxu0 %v1477_v45  ;;  %6368 = vmatprep.subr.bf16.mxu1 %v6367_v38  ;;  %v6411_v38 = vpack.c.bf16 %v2732_v29, %v2731_v26  ;;  %v6385_v45 = vpack.c.bf16 %v2686_v9, %v2685_v35  ;;  %v2740_v26 = vld [vmem:[%s9694_s5 + $0xc18] sm:$0xff]  ;;  %v2769_v29 = vld [vmem:[%s9694_s5 + $0xd00] sm:$0xff]  ;;  %v2758_v35 = vld [vmem:[%s9694_s5 + $0xca8] sm:$0xff] }
 0x1e1   :  { %6396 = vmatprep.subr.bf16.mxu0 %v6395_v32  ;;  %v8602_v1 = vpop.f32.mrb[14].mxu0  ;;  %v2704_v32 = vld [vmem:[%s9694_s5 + $0xaf8] sm:$0xff] }
 0x1e2   :  { %v8604_v3 = vpop.f32.mrb[15].mxu0 }
 0x1e3   :  { %6370 = vmatpush3.bf16.msra.mxu1 %v6369_v54  ;;  %6398 = vmatpush3.bf16.msra.mxu0 %v6397_v56  ;;  %v6413_v54 = vpack.c.bf16 %v2716_v40, %v2715_v39  ;;  %v2687_v56 = vld [vmem:[%s9694_s5 + $0xa70] sm:$0xff]  ;;  %v2788_v40 = vld [vmem:[%s9694_s5 + $0xd98] sm:$0xff] }
 0x1e4   :  { %6372 = vmatprep.subr.bf16.mxu1 %v6371_v59  ;;  %6400 = vmatprep.subr.bf16.mxu0 %v6399_v60  ;;  %v6387_v59 = vpack.c.bf16 %v2704_v32, %v2703_v42  ;;  %v6415_v60 = vpack.c.bf16 %v2734_v44, %v2733_v43  ;;  %v6389_v16 = vpack.c.bf16 %v2688_v36, %v2687_v56  ;;  %v2787_v39 = vld [vmem:[%s9694_s5 + $0xd90] sm:$0xff]  ;;  %v2742_v44 = vld [vmem:[%s9694_s5 + $0xc28] sm:$0xff]  ;;  %v2772_v36 = vld [vmem:[%s9694_s5 + $0xd18] sm:$0xff] }
 0x1e5   :  { %v6429_v32 = vpack.c.bf16 %v2740_v26, %v2739_v23  ;;  %v2771_v56 = vld [vmem:[%s9694_s5 + $0xd10] sm:$0xff]  ;;  %v2793_v23 = vld [vmem:[%s9694_s5 + $0xdc0] sm:$0xff] }
 0x1e6   :  { %v6461_v63 = vpack.c.bf16 %v2772_v36, %v2771_v56  ;;  %v2747_v26 = vld [vmem:[%s9694_s5 + $0xc50] sm:$0xff]  ;;  %v2780_v36 = vld [vmem:[%s9694_s5 + $0xd58] sm:$0xff] }
 0x1e7   :  { %6374 = vmatpush3.bf16.msra.mxu1 %v6373_v4  ;;  %6402 = vmatpush3.bf16.msra.mxu0 %v6401_v53  ;;  %v1393_v4 = vrot.slane %v8494_v17, %v7552_v19  ;;  %v8716_v53 = vld [vmem:[%s9693_s4] sm:$0x3]  ;;  %v2720_v17 = vld [vmem:[%s9694_s5 + $0xb78] sm:$0xff]  ;;  %v2779_v56 = vld [vmem:[%s9694_s5 + $0xd50] sm:$0xff] }
 0x1e8   :  { %6376 = vmatprep.subr.bf16.mxu1 %v6375_v8  ;;  %6404 = vmatprep.subr.bf16.mxu0 %v6403_v11  ;;  %v2719_v8 = vld [vmem:[%s9694_s5 + $0xb70] sm:$0xff]  ;;  %v1355_v11 = vadd.f32 %v8262_v51, %v1272_v50 }
 0x1e9   :  { %v2755_v51 = vld [vmem:[%s9694_s5 + $0xc90] sm:$0xff] }
 0x1ea   :  { %v1359_v24 = vmax.f32 %v1355_v11, 0.0  ;;  %v6427_v25 = vpack.c.bf16 %v2756_v14, %v2755_v51  ;;  %v2759_v50 = vld [vmem:[%s9694_s5 + $0xcb0] sm:$0xff]  ;;  %v2761_v11 = vld [vmem:[%s9694_s5 + $0xcc0] sm:$0xff]  ;;  %v2746_v14 = vld [vmem:[%s9694_s5 + $0xc48] sm:$0xff] }
 0x1eb   :  { %6378 = vmatpush3.bf16.msra.mxu1 %v6377_v28  ;;  %6406 = vmatpush3.bf16.msra.mxu0 %v6405_v55  ;;  %v1630_v28 = vrot.slane %v8716_v53, %v7378_v58  ;;  %v1589_v55 = vadd.f32 %v8430_v22, %v1514_v52  ;;  %v1472_v22 = vadd.f32 %v8391_v5, %v1393_v4  ;;  %v2757_v5 = vld [vmem:[%s9694_s5 + $0xca0] sm:$0xff]  ;;  %v2744_v52 = vld [vmem:[%s9694_s5 + $0xc38] sm:$0xff] }
 0x1ec   :  { %6380 = vmatprep.subr.bf16.mxu1 %v6379_v10  ;;  %6408 = vmatprep.subr.bf16.mxu0 %v6407_v18  ;;  %v2786_v10 = vld [vmem:[%s9694_s5 + $0xd88] sm:$0xff]  ;;  %v6421_v18 = vpack.c.bf16 %v2720_v17, %v2719_v8  ;;  %v2792_v17 = vld [vmem:[%s9694_s5 + $0xdb8] sm:$0xff]  ;;  %v6437_v21 = vpack.c.bf16 %v2744_v52, %v2743_v0  ;;  %v2745_v51 = vld [vmem:[%s9694_s5 + $0xc40] sm:$0xff]  ;;  %v6477_v0 = vpack.c.bf16 %v2780_v36, %v2779_v56 }
 0x1ed   :  { %v2774_v8 = vld [vmem:[%s9694_s5 + $0xd28] sm:$0xff]  ;;  %v2751_v52 = vld [vmem:[%s9694_s5 + $0xc70] sm:$0xff] }
 0x1ee   :  { %v2851_v36 = vld [vmem:[%s9694_s5 + $0xf90] sm:$0xff] }
 0x1ef   :  { %6382 = vmatpush3.bf16.msra.mxu1 %v6381_v33  ;;  %6410 = vmatpush3.bf16.msra.mxu0 %v6409_v34  ;;  %v2770_v33 = vld [vmem:[%s9694_s5 + $0xd08] sm:$0xff]  ;;  %v6455_v34 = vpack.c.bf16 %v2786_v10, %v2785_v15  ;;  %v2775_v15 = vld [vmem:[%s9694_s5 + $0xd30] sm:$0xff]  ;;  %v2776_v10 = vld [vmem:[%s9694_s5 + $0xd38] sm:$0xff] }
 0x1f0   :  { %6384 = vmatprep.subr.bf16.mxu1 %v6383_v37  ;;  %6412 = vmatprep.subr.bf16.mxu0 %v6411_v38  ;;  %v1711_v37 = vadd.f32 %v8576_v46, %v1630_v28  ;;  %v1592_v38 = vmax.f32 %v1589_v55, 0.0  ;;  %v6457_v43 = vpack.c.bf16 %v2770_v33, %v2769_v29  ;;  %v2741_v46 = vld [vmem:[%s9694_s5 + $0xc20] sm:$0xff]  ;;  %v2748_v29 = vld [vmem:[%s9694_s5 + $0xc58] sm:$0xff] }
 0x1f1   :  { %v6433_v41 = vpack.c.bf16 %v2742_v44, %v2741_v46  ;;  %v2749_v46 = vld [vmem:[%s9694_s5 + $0xc60] sm:$0xff]  ;;  %v2750_v44 = vld [vmem:[%s9694_s5 + $0xc68] sm:$0xff] }
 0x1f2   :  { %v1714_v49 = vmax.f32 %v1711_v37, 0.0  ;;  %v2765_v37 = vld [vmem:[%s9694_s5 + $0xce0] sm:$0xff] }
 0x1f3   :  { %6386 = vmatpush3.bf16.msra.mxu1 %v6385_v45  ;;  %6414 = vmatpush3.bf16.msra.mxu0 %v6413_v54  ;;  %v1476_v45 = vmax.f32 %v1472_v22, 0.0  ;;  %v6431_v54 = vpack.c.bf16 %v2758_v35, %v2757_v5  ;;  %v2794_v22 = vld [vmem:[%s9694_s5 + $0xdc8] sm:$0xff]  ;;  %v2777_v5 = vld [vmem:[%s9694_s5 + $0xd40] sm:$0xff] }
 0x1f4   :  { %6388 = vmatprep.subr.bf16.mxu1 %v6387_v59  ;;  %6416 = vmatprep.subr.bf16.mxu0 %v6415_v60  ;;  %v6459_v59 = vpack.c.bf16 %v2788_v40, %v2787_v39  ;;  %v2760_v60 = vld [vmem:[%s9694_s5 + $0xcb8] sm:$0xff]  ;;  %v2778_v35 = vld [vmem:[%s9694_s5 + $0xd48] sm:$0xff]  ;;  %v2795_v39 = vld [vmem:[%s9694_s5 + $0xdd0] sm:$0xff] }
 0x1f5   :  { %v8731_v47 = vpop.f32.mrb[14].mxu1  ;;  %v6435_v4 = vpack.c.bf16 %v2760_v60, %v2759_v50  ;;  %v2796_v40 = vld [vmem:[%s9694_s5 + $0xdd8] sm:$0xff]  ;;  %v2767_v50 = vld [vmem:[%s9694_s5 + $0xcf0] sm:$0xff] }
 0x1f6   :  { %v8742_v61 = vpop.f32.mrb[15].mxu1  ;;  %v2768_v60 = vld [vmem:[%s9694_s5 + $0xcf8] sm:$0xff] }
 0x1f7   :  { %6390 = vmatpush3.bf16.msra.mxu1 %v6389_v16  ;;  %6418 = vmatpush3.bf16.msra.mxu0 %v6417_v7  ;;  %v6463_v16 = vpack.c.bf16 %v2790_v62, %v2789_v48  ;;  %v2773_v7 = vld [vmem:[%s9694_s5 + $0xd20] sm:$0xff]  ;;  %v2798_v62 = vld [vmem:[%s9694_s5 + $0xde8] sm:$0xff] }
 0x1f8   :  { %6420 = vmatprep.subr.bf16.mxu0 %v6419_v6  ;;  %6424 = vmatprep.subr.bf16.mxu1 %v6423_v12  ;;  %v2762_v6 = vld [vmem:[%s9694_s5 + $0xcc8] sm:$0xff]  ;;  %v2791_v12 = vld [vmem:[%s9694_s5 + $0xdb0] sm:$0xff]  ;;  %v6465_v13 = vpack.c.bf16 %v2774_v8, %v2773_v7  ;;  %v2797_v48 = vld [vmem:[%s9694_s5 + $0xde0] sm:$0xff]  ;;  %v6451_v7 = vpack.c.bf16 %v2768_v60, %v2767_v50 }
 0x1f9   :  { %v8769_v9 = vpop.f32.mrb[16].mxu0  ;;  %v6439_v28 = vpack.c.bf16 %v2762_v6, %v2761_v11  ;;  %v6467_v55 = vpack.c.bf16 %v2792_v17, %v2791_v12  ;;  %v6479_v8 = vpack.c.bf16 %v2798_v62, %v2797_v48  ;;  %v2781_v11 = vld [vmem:[%s9694_s5 + $0xd60] sm:$0xff]  ;;  %v2782_v6 = vld [vmem:[%s9694_s5 + $0xd68] sm:$0xff]  ;;  %v2799_v12 = vld [vmem:[%s9694_s5 + $0xdf0] sm:$0xff] }
 0x1fa   :  { %3733 = vmatmul.mubr.f32.vlgmr.msra.gmra.mrb[28].mxu1 %v1359_v24  ;;  %v8778_v42 = vpop.f32.mrb[17].mxu0  ;;  %v6441_v24 = vpack.c.bf16 %v2746_v14, %v2745_v51  ;;  %v2817_v17 = vld [vmem:[%s9694_s5 + $0xe80] sm:$0xff]  ;;  %v2852_v50 = vld [vmem:[%s9694_s5 + $0xf98] sm:$0xff] }
 0x1fb   :  { %6422 = vmatpush3.bf16.msra.mxu0 %v6421_v18  ;;  %6426 = vmatpush3.bf16.msra.mxu1 %v6425_v27  ;;  %v2763_v18 = vld [vmem:[%s9694_s5 + $0xcd0] sm:$0xff]  ;;  %v2764_v27 = vld [vmem:[%s9694_s5 + $0xcd8] sm:$0xff]  ;;  %v2805_v62 = vld [vmem:[%s9694_s5 + $0xe20] sm:$0xff] }
 0x1fc   :  { %3872 = vmatprep.mubr.f32.mxu1 %v1592_v38  ;;  %6428 = vmatprep.subr.bf16.mxu1 %v6427_v25  ;;  %v6469_v25 = vpack.c.bf16 %v2776_v10, %v2775_v15  ;;  %v6443_v33 = vpack.c.bf16 %v2764_v27, %v2763_v18  ;;  %v2766_v38 = vld [vmem:[%s9694_s5 + $0xce8] sm:$0xff]  ;;  %v6481_v10 = vpack.c.bf16 %v2782_v6, %v2781_v11  ;;  %v2783_v18 = vld [vmem:[%s9694_s5 + $0xd70] sm:$0xff]  ;;  %v2853_v11 = vld [vmem:[%s9694_s5 + $0xfa0] sm:$0xff] }
 0x1fd   :  { %6456 = vmatprep.subr.bf16.mxu0 %v6455_v34  ;;  %v6471_v34 = vpack.c.bf16 %v2794_v22, %v2793_v23  ;;  %v2854_v6 = vld [vmem:[%s9694_s5 + $0xfa8] sm:$0xff] }
 0x1fe   :  { %3803 = vmatmul.mubr.f32.vlgmr.msra.gmra.mrb[30].mxu0 %v1476_v45  ;;  %v6447_v45 = vpack.c.bf16 %v2766_v38, %v2765_v37  ;;  %v2803_v38 = vld [vmem:[%s9694_s5 + $0xe10] sm:$0xff] }
 0x1ff   :  { %6430 = vmatpush3.bf16.msra.mxu1 %v6429_v32  ;;  %6458 = vmatpush3.bf16.msra.mxu0 %v6457_v43  ;;  %v6445_v32 = vpack.c.bf16 %v2748_v29, %v2747_v26  ;;  %v6473_v43 = vpack.c.bf16 %v2778_v35, %v2777_v5  ;;  %v2820_v26 = vld [vmem:[%s9694_s5 + $0xe98] sm:$0xff]  ;;  %v2850_v5 = vld [vmem:[%s9694_s5 + $0xf88] sm:$0xff] }
 0x200   :  { %3942 = vmatprep.mubr.f32.mxu0 %v1714_v49  ;;  %6432 = vmatprep.subr.bf16.mxu1 %v6431_v54  ;;  %v6475_v54 = vpack.c.bf16 %v2796_v40, %v2795_v39 }
 0x201   :  { %6460 = vmatprep.subr.bf16.mxu0 %v6459_v59 }
 0x203   :  { %6434 = vmatpush3.bf16.msra.mxu1 %v6433_v41  ;;  %6462 = vmatpush3.bf16.msra.mxu0 %v6461_v63  ;;  %v8907_v41 = vld [vmem:[%s9693_s4] sm:$0x3]  ;;  %v6449_v63 = vpack.c.bf16 %v2750_v44, %v2749_v46  ;;  %v2834_v46 = vld [vmem:[%s9694_s5 + $0xf08] sm:$0xff] }
 0x204   :  { %6436 = vmatprep.subr.bf16.mxu1 %v6435_v4  ;;  %6464 = vmatprep.subr.bf16.mxu0 %v6463_v16  ;;  %v2752_v4 = vld [vmem:[%s9694_s5 + $0xc78] sm:$0xff]  ;;  %v1510_v16 = vrot.slane %v8681_v30, %v7552_v19  ;;  %v1752_v51 = vrot.slane %v8907_v41, %v7378_v58 }
 0x205   :  { %v2800_v30 = vld [vmem:[%s9694_s5 + $0xdf8] sm:$0xff]  ;;  %v6453_v15 = vpack.c.bf16 %v2752_v4, %v2751_v52  ;;  %v2835_v52 = vld [vmem:[%s9694_s5 + $0xf10] sm:$0xff] }
 0x206   :  { %v1587_v27 = vadd.f32 %v8428_v20, %v1510_v16  ;;  %v6483_v23 = vpack.c.bf16 %v2800_v30, %v2799_v12  ;;  %v2819_v20 = vld [vmem:[%s9694_s5 + $0xe90] sm:$0xff]  ;;  %v2836_v4 = vld [vmem:[%s9694_s5 + $0xf18] sm:$0xff] }
 0x207   :  { %6438 = vmatpush3.bf16.msra.mxu1 %v6437_v21  ;;  %6466 = vmatpush3.bf16.msra.mxu0 %v6465_v13  ;;  %v2818_v21 = vld [vmem:[%s9694_s5 + $0xe88] sm:$0xff]  ;;  %v2823_v16 = vld [vmem:[%s9694_s5 + $0xeb0] sm:$0xff] }
 0x208   :  { %6440 = vmatprep.subr.bf16.mxu1 %v6439_v28  ;;  %6468 = vmatprep.subr.bf16.mxu0 %v6467_v55  ;;  %v1626_v28 = vrot.slane %v8716_v53, %v7552_v19  ;;  %v8946_v55 = vld [vmem:[%s9693_s4] sm:$0x3]  ;;  %v6487_v22 = vpack.c.bf16 %v2818_v21, %v2817_v17  ;;  %v2784_v53 = vld [vmem:[%s9694_s5 + $0xd78] sm:$0xff]  ;;  %v1591_v40 = vmax.f32 %v1587_v27, 0.0  ;;  %v6525_v17 = vpack.c.bf16 %v2836_v4, %v2835_v52  ;;  %v2807_v21 = vld [vmem:[%s9694_s5 + $0xe30] sm:$0xff] }
 0x209   :  { %v1873_v29 = vrot.slane %v8946_v55, %v7378_v58  ;;  %v6485_v35 = vpack.c.bf16 %v2784_v53, %v2783_v18  ;;  %v2838_v18 = vld [vmem:[%s9694_s5 + $0xf28] sm:$0xff]  ;;  %v2825_v27 = vld [vmem:[%s9694_s5 + $0xec0] sm:$0xff]  ;;  %v2856_v53 = vld [vmem:[%s9694_s5 + $0xfb8] sm:$0xff] }
 0x20a   :  { %v1709_v39 = vadd.f32 %v8565_v31, %v1626_v28  ;;  %v2821_v31 = vld [vmem:[%s9694_s5 + $0xea0] sm:$0xff]  ;;  %v2843_v52 = vld [vmem:[%s9694_s5 + $0xf50] sm:$0xff]  ;;  %v2844_v4 = vld [vmem:[%s9694_s5 + $0xf58] sm:$0xff] }
 0x20b   :  { %6442 = vmatpush3.bf16.msra.mxu1 %v6441_v24  ;;  %6470 = vmatpush3.bf16.msra.mxu0 %v6469_v25  ;;  %v2801_v24 = vld [vmem:[%s9694_s5 + $0xe00] sm:$0xff]  ;;  %v2802_v25 = vld [vmem:[%s9694_s5 + $0xe08] sm:$0xff] }
 0x20c   :  { %6444 = vmatprep.subr.bf16.mxu1 %v6443_v33  ;;  %6472 = vmatprep.subr.bf16.mxu0 %v6471_v34  ;;  %v1833_v33 = vadd.f32 %v8604_v3, %v1752_v51  ;;  %v2849_v34 = vld [vmem:[%s9694_s5 + $0xf80] sm:$0xff]  ;;  %v6489_v37 = vpack.c.bf16 %v2802_v25, %v2801_v24  ;;  %v6491_v3 = vpack.c.bf16 %v2820_v26, %v2819_v20  ;;  %v2808_v51 = vld [vmem:[%s9694_s5 + $0xe38] sm:$0xff]  ;;  %v2810_v26 = vld [vmem:[%s9694_s5 + $0xe48] sm:$0xff] }
 0x20d   :  { %v8891_v59 = vpop.f32.mrb[16].mxu1  ;;  %v6519_v44 = vpack.c.bf16 %v2850_v5, %v2849_v34  ;;  %v6501_v24 = vpack.c.bf16 %v2808_v51, %v2807_v21  ;;  %v2809_v20 = vld [vmem:[%s9694_s5 + $0xe40] sm:$0xff]  ;;  %v2839_v34 = vld [vmem:[%s9694_s5 + $0xf30] sm:$0xff]  ;;  %v2840_v5 = vld [vmem:[%s9694_s5 + $0xf38] sm:$0xff] }
 0x20e   :  { %v8902_v49 = vpop.f32.mrb[17].mxu1  ;;  %v1836_v56 = vmax.f32 %v1833_v33, 0.0 }
 0x20f   :  { %6446 = vmatpush3.bf16.msra.mxu1 %v6445_v32  ;;  %6474 = vmatpush3.bf16.msra.mxu0 %v6473_v43  ;;  %v2804_v32 = vld [vmem:[%s9694_s5 + $0xe18] sm:$0xff]  ;;  %v2833_v43 = vld [vmem:[%s9694_s5 + $0xf00] sm:$0xff] }
 0x210   :  { %6448 = vmatprep.subr.bf16.mxu1 %v6447_v45  ;;  %6476 = vmatprep.subr.bf16.mxu0 %v6475_v54  ;;  %v2822_v45 = vld [vmem:[%s9694_s5 + $0xea8] sm:$0xff]  ;;  %v1950_v54 = vadd.f32 %v8742_v61, %v1873_v29  ;;  %v6493_v60 = vpack.c.bf16 %v2804_v32, %v2803_v38  ;;  %v6521_v48 = vpack.c.bf16 %v2834_v46, %v2833_v43  ;;  %v2857_v38 = vld [vmem:[%s9694_s5 + $0xfc0] sm:$0xff]  ;;  %v2811_v32 = vld [vmem:[%s9694_s5 + $0xe50] sm:$0xff] }
 0x211   :  { %v8935_v13 = vpop.f32.mrb[18].mxu0  ;;  %v2806_v61 = vld [vmem:[%s9694_s5 + $0xe28] sm:$0xff]  ;;  %v2812_v43 = vld [vmem:[%s9694_s5 + $0xe58] sm:$0xff] }
 0x212   :  { %v8939_v14 = vpop.f32.mrb[19].mxu0  ;;  %v1953_v12 = vmax.f32 %v1950_v54, 0.0  ;;  %v6497_v30 = vpack.c.bf16 %v2806_v61, %v2805_v62  ;;  %v2829_v54 = vld [vmem:[%s9694_s5 + $0xee0] sm:$0xff]  ;;  %v2814_v61 = vld [vmem:[%s9694_s5 + $0xe68] sm:$0xff] }
 0x213   :  { %6450 = vmatpush3.bf16.msra.mxu1 %v6449_v63  ;;  %6478 = vmatpush3.bf16.msra.mxu0 %v6477_v0  ;;  %v1713_v63 = vmax.f32 %v1709_v39, 0.0  ;;  %v6495_v0 = vpack.c.bf16 %v2822_v45, %v2821_v31  ;;  %v2858_v39 = vld [vmem:[%s9694_s5 + $0xfc8] sm:$0xff]  ;;  %v2841_v31 = vld [vmem:[%s9694_s5 + $0xf40] sm:$0xff] }
 0x214   :  { %6452 = vmatprep.subr.bf16.mxu1 %v6451_v7  ;;  %6480 = vmatprep.subr.bf16.mxu0 %v6479_v8  ;;  %v6523_v7 = vpack.c.bf16 %v2852_v50, %v2851_v36  ;;  %v2824_v8 = vld [vmem:[%s9694_s5 + $0xeb8] sm:$0xff]  ;;  %v2842_v45 = vld [vmem:[%s9694_s5 + $0xf48] sm:$0xff]  ;;  %v2859_v36 = vld [vmem:[%s9694_s5 + $0xfd0] sm:$0xff] }
 0x215   :  { %v6499_v28 = vpack.c.bf16 %v2824_v8, %v2823_v16  ;;  %v2860_v50 = vld [vmem:[%s9694_s5 + $0xfd8] sm:$0xff]  ;;  %v2813_v62 = vld [vmem:[%s9694_s5 + $0xe60] sm:$0xff]  ;;  %v2831_v16 = vld [vmem:[%s9694_s5 + $0xef0] sm:$0xff] }
 0x216   :  { %v2832_v8 = vld [vmem:[%s9694_s5 + $0xef8] sm:$0xff]  ;;  %v6513_v51 = vpack.c.bf16 %v2814_v61, %v2813_v62  ;;  %v2867_v62 = vld [vmem:[%s9694_s5 + $0x1010] sm:$0xff] }
 0x217   :  { %6454 = vmatpush3.bf16.msra.mxu1 %v6453_v15  ;;  %6482 = vmatpush3.bf16.msra.mxu0 %v6481_v10  ;;  %v6527_v15 = vpack.c.bf16 %v2854_v6, %v2853_v11  ;;  %v2837_v10 = vld [vmem:[%s9694_s5 + $0xf20] sm:$0xff]  ;;  %v2862_v6 = vld [vmem:[%s9694_s5 + $0xfe8] sm:$0xff] }
 0x218   :  { %6484 = vmatprep.subr.bf16.mxu0 %v6483_v23  ;;  %6488 = vmatprep.subr.bf16.mxu1 %v6487_v22  ;;  %v2826_v23 = vld [vmem:[%s9694_s5 + $0xec8] sm:$0xff]  ;;  %v2855_v22 = vld [vmem:[%s9694_s5 + $0xfb0] sm:$0xff]  ;;  %v6529_v25 = vpack.c.bf16 %v2838_v18, %v2837_v10  ;;  %v2861_v11 = vld [vmem:[%s9694_s5 + $0xfe0] sm:$0xff]  ;;  %v1748_v18 = vrot.slane %v8907_v41, %v7552_v19 }
 0x219   :  { %v6503_v29 = vpack.c.bf16 %v2826_v23, %v2825_v27  ;;  %v6531_v33 = vpack.c.bf16 %v2856_v53, %v2855_v22  ;;  %v2816_v10 = vld [vmem:[%s9694_s5 + $0xe78] sm:$0xff]  ;;  %v6515_v27 = vpack.c.bf16 %v2832_v8, %v2831_v16  ;;  %v6543_v23 = vpack.c.bf16 %v2862_v6, %v2861_v11  ;;  %v2845_v22 = vld [vmem:[%s9694_s5 + $0xf60] sm:$0xff]  ;;  %v2846_v53 = vld [vmem:[%s9694_s5 + $0xf68] sm:$0xff] }
 0x21a   :  { %3873 = vmatmul.mubr.f32.vlgmr.msra.gmra.mrb[30].mxu1 %v1591_v40  ;;  %v6505_v40 = vpack.c.bf16 %v2810_v26, %v2809_v20  ;;  %v2864_v41 = vld [vmem:[%s9694_s5 + $0xff8] sm:$0xff]  ;;  %v2881_v20 = vld [vmem:[%s9694_s5 + $0x1080] sm:$0xff]  ;;  %v2882_v26 = vld [vmem:[%s9694_s5 + $0x1088] sm:$0xff] }
 0x21b   :  { %6486 = vmatpush3.bf16.msra.mxu0 %v6485_v35  ;;  %6490 = vmatpush3.bf16.msra.mxu1 %v6489_v37  ;;  %v2827_v35 = vld [vmem:[%s9694_s5 + $0xed0] sm:$0xff]  ;;  %v2828_v37 = vld [vmem:[%s9694_s5 + $0xed8] sm:$0xff] }
 0x21c   :  { %4012 = vmatprep.mubr.f32.mxu1 %v1836_v56  ;;  %6492 = vmatprep.subr.bf16.mxu1 %v6491_v3  ;;  %v6533_v3 = vpack.c.bf16 %v2840_v5, %v2839_v34  ;;  %v6507_v46 = vpack.c.bf16 %v2828_v37, %v2827_v35  ;;  %v2830_v56 = vld [vmem:[%s9694_s5 + $0xee8] sm:$0xff]  ;;  %v9163_v35 = vld [vmem:[%s9693_s4] sm:$0x3]  ;;  %v2915_v6 = vld [vmem:[%s9694_s5 + $0x1190] sm:$0xff] }
 0x21d   :  { %6520 = vmatprep.subr.bf16.mxu0 %v6519_v44  ;;  %v6535_v44 = vpack.c.bf16 %v2858_v39, %v2857_v38  ;;  %v6545_v39 = vpack.c.bf16 %v2846_v53, %v2845_v22  ;;  %v2888_v22 = vld [vmem:[%s9694_s5 + $0x10b8] sm:$0xff]  ;;  %v2917_v53 = vld [vmem:[%s9694_s5 + $0x11a0] sm:$0xff] }
 0x21e   :  { %3943 = vmatmul.mubr.f32.vlgmr.msra.gmra.mrb[32].mxu0 %v1713_v63  ;;  %v6511_v63 = vpack.c.bf16 %v2830_v56, %v2829_v54  ;;  %v2106_v54 = vrot.slane %v9163_v35, %v7378_v58 }
 0x21f   :  { %6494 = vmatpush3.bf16.msra.mxu1 %v6493_v60  ;;  %6522 = vmatpush3.bf16.msra.mxu0 %v6521_v48  ;;  %v6509_v60 = vpack.c.bf16 %v2812_v43, %v2811_v32  ;;  %v6537_v48 = vpack.c.bf16 %v2842_v45, %v2841_v31  ;;  %v6551_v32 = vpack.c.bf16 %v2882_v26, %v2881_v20  ;;  %v2848_v43 = vld [vmem:[%s9694_s5 + $0xf78] sm:$0xff]  ;;  %v2871_v26 = vld [vmem:[%s9694_s5 + $0x1030] sm:$0xff] }
 0x220   :  { %4082 = vmatprep.mubr.f32.mxu0 %v1953_v12  ;;  %6496 = vmatprep.subr.bf16.mxu1 %v6495_v0  ;;  %v6539_v0 = vpack.c.bf16 %v2860_v50, %v2859_v36  ;;  %v9125_v12 = vld [vmem:[%s9693_s4] sm:$0x3]  ;;  %v2884_v45 = vld [vmem:[%s9694_s5 + $0x1098] sm:$0xff]  ;;  %v2914_v50 = vld [vmem:[%s9694_s5 + $0x1188] sm:$0xff]  ;;  %v2187_v8 = vadd.f32 %v8902_v49, %v2106_v54 }
 0x221   :  { %6524 = vmatprep.subr.bf16.mxu0 %v6523_v7  ;;  %v2913_v36 = vld [vmem:[%s9694_s5 + $0x1180] sm:$0xff]  ;;  %v2870_v49 = vld [vmem:[%s9694_s5 + $0x1028] sm:$0xff]  ;;  %v2904_v54 = vld [vmem:[%s9694_s5 + $0x1138] sm:$0xff] }
 0x222   :  { %v6583_v16 = vpack.c.bf16 %v2914_v50, %v2913_v36  ;;  %v2892_v36 = vld [vmem:[%s9694_s5 + $0x10d8] sm:$0xff]  ;;  %v2921_v50 = vld [vmem:[%s9694_s5 + $0x11c0] sm:$0xff] }
 0x223   :  { %6498 = vmatpush3.bf16.msra.mxu1 %v6497_v30  ;;  %6526 = vmatpush3.bf16.msra.mxu0 %v6525_v17  ;;  %v4841_v17 = vld [vmem:[%s9695_s6] ss:$0 sm:$0xff] }
 0x224   :  { %6500 = vmatprep.subr.bf16.mxu1 %v6499_v28  ;;  %6528 = vmatprep.subr.bf16.mxu0 %v6527_v15  ;;  %v6541_v28 = vpack.c.bf16 %v2844_v4, %v2843_v52  ;;  %v2815_v15 = vld [vmem:[%s9694_s5 + $0xe70] sm:$0xff]  ;;  %v2897_v52 = vld [vmem:[%s9694_s5 + $0x1100] sm:$0xff]  ;;  %v2898_v4 = vld [vmem:[%s9694_s5 + $0x1108] sm:$0xff] }
 0x225   :  { %v6517_v5 = vpack.c.bf16 %v2816_v10, %v2815_v15  ;;  %v2899_v10 = vld [vmem:[%s9694_s5 + $0x1110] sm:$0xff] }
 0x227   :  { %6502 = vmatpush3.bf16.msra.mxu1 %v6501_v24  ;;  %6530 = vmatpush3.bf16.msra.mxu0 %v6529_v25  ;;  %v2863_v24 = vld [vmem:[%s9694_s5 + $0xff0] sm:$0xff] }
 0x228   :  { %6504 = vmatprep.subr.bf16.mxu1 %v6503_v29  ;;  %6532 = vmatprep.subr.bf16.mxu0 %v6531_v33  ;;  %v1869_v29 = vrot.slane %v8946_v55, %v7552_v19  ;;  %v1990_v33 = vrot.slane %v9125_v12, %v7378_v58  ;;  %v1831_v55 = vadd.f32 %v8602_v1, %v1748_v18  ;;  %v2883_v1 = vld [vmem:[%s9694_s5 + $0x1090] sm:$0xff]  ;;  %v2900_v18 = vld [vmem:[%s9694_s5 + $0x1118] sm:$0xff] }
 0x229   :  { %v6589_v20 = vpack.c.bf16 %v2900_v18, %v2899_v10  ;;  %v2896_v18 = vld [vmem:[%s9694_s5 + $0x10f8] sm:$0xff] }
 0x22a   :  { %v2065_v56 = vadd.f32 %v8778_v42, %v1990_v33  ;;  %v1948_v61 = vadd.f32 %v8731_v47, %v1869_v29  ;;  %v6555_v42 = vpack.c.bf16 %v2884_v45, %v2883_v1  ;;  %v2885_v47 = vld [vmem:[%s9694_s5 + $0x10a0] sm:$0xff]  ;;  %v2872_v29 = vld [vmem:[%s9694_s5 + $0x1038] sm:$0xff]  ;;  %v2903_v45 = vld [vmem:[%s9694_s5 + $0x1130] sm:$0xff] }
 0x22b   :  { %6506 = vmatpush3.bf16.msra.mxu1 %v6505_v40  ;;  %6534 = vmatpush3.bf16.msra.mxu0 %v6533_v3  ;;  %v2847_v40 = vld [vmem:[%s9694_s5 + $0xf70] sm:$0xff]  ;;  %v6547_v3 = vpack.c.bf16 %v2864_v41, %v2863_v24  ;;  %v2918_v24 = vld [vmem:[%s9694_s5 + $0x11a8] sm:$0xff] }
 0x22c   :  { %6508 = vmatprep.subr.bf16.mxu1 %v6507_v46  ;;  %6536 = vmatprep.subr.bf16.mxu0 %v6535_v44  ;;  %v2865_v46 = vld [vmem:[%s9694_s5 + $0x1000] sm:$0xff]  ;;  %v2866_v44 = vld [vmem:[%s9694_s5 + $0x1008] sm:$0xff]  ;;  %v2068_v11 = vmax.f32 %v2065_v56, 0.0  ;;  %v2891_v56 = vld [vmem:[%s9694_s5 + $0x10d0] sm:$0xff] }
 0x22d   :  { %v4887_v7 = vpop.f32.mrb[18].mxu1 }
 0x22e   :  { %v4888_v30 = vpop.f32.mrb[19].mxu1 }
 0x22f   :  { %v4889_v21 = vadd.f32 %v4888_v30, %v4887_v7  ;;  %6510 = vmatpush3.bf16.msra.mxu1 %v6509_v60  ;;  %6538 = vmatpush3.bf16.msra.mxu0 %v6537_v48  ;;  %v6549_v60 = vpack.c.bf16 %v2848_v43, %v2847_v40  ;;  %v6553_v48 = vpack.c.bf16 %v2866_v44, %v2865_v46  ;;  %v2886_v7 = vld [vmem:[%s9694_s5 + $0x10a8] sm:$0xff]  ;;  %v2916_v30 = vld [vmem:[%s9694_s5 + $0x1198] sm:$0xff]  ;;  %v2919_v40 = vld [vmem:[%s9694_s5 + $0x11b0] sm:$0xff] }
 0x230   :  { %6512 = vmatprep.subr.bf16.mxu1 %v6511_v63  ;;  %6540 = vmatprep.subr.bf16.mxu0 %v6539_v0  ;;  %v1835_v63 = vmax.f32 %v1831_v55, 0.0  ;;  %v2868_v0 = vld [vmem:[%s9694_s5 + $0x1018] sm:$0xff]  ;;  %v6559_v15 = vpack.c.bf16 %v2886_v7, %v2885_v47  ;;  %v2873_v43 = vld [vmem:[%s9694_s5 + $0x1040] sm:$0xff]  ;;  %v2874_v46 = vld [vmem:[%s9694_s5 + $0x1048] sm:$0xff] }
 0x231   :  { %v4922_v25 = vpop.f32.mrb[20].mxu0  ;;  %v3035_v37 = vadd.f32 %v4889_v21, %v4841_v17  ;;  %v6557_v17 = vpack.c.bf16 %v2868_v0, %v2867_v62  ;;  %v6585_v21 = vpack.c.bf16 %v2898_v4, %v2897_v52  ;;  %v2920_v55 = vld [vmem:[%s9694_s5 + $0x11b8] sm:$0xff]  ;;  %v6597_v62 = vpack.c.bf16 %v2904_v54, %v2903_v45  ;;  %v2905_v52 = vld [vmem:[%s9694_s5 + $0x1140] sm:$0xff]  ;;  %v2906_v4 = vld [vmem:[%s9694_s5 + $0x1148] sm:$0xff] }
 0x232   :  { %v4923_v34 = vpop.f32.mrb[21].mxu0  ;;  %v6595_v1 = vpack.c.bf16 %v2920_v55, %v2919_v40  ;;  %v2894_v47 = vld [vmem:[%s9694_s5 + $0x10e8] sm:$0xff]  ;;  %v2923_v7 = vld [vmem:[%s9694_s5 + $0x11d0] sm:$0xff]  ;;  %v2945_v55 = vld [vmem:[%s9694_s5 + $0x1280] sm:$0xff] }
 0x233   :  { %v4924_v38 = vadd.f32 %v4923_v34, %v4922_v25  ;;  %6514 = vmatpush3.bf16.msra.mxu1 %v6513_v51  ;;  %6542 = vmatpush3.bf16.msra.mxu0 %v6541_v28  ;;  %v2869_v51 = vld [vmem:[%s9694_s5 + $0x1020] sm:$0xff]  ;;  %v1952_v28 = vmax.f32 %v1948_v61, 0.0  ;;  %v2190_v25 = vmax.f32 %v2187_v8, 0.0  ;;  %v6591_v34 = vpack.c.bf16 %v2918_v24, %v2917_v53  ;;  %v2875_v61 = vld [vmem:[%s9694_s5 + $0x1050] sm:$0xff]  ;;  %v2924_v8 = vld [vmem:[%s9694_s5 + $0x11d8] sm:$0xff] }
 0x234   :  { %6516 = vmatprep.subr.bf16.mxu1 %v6515_v27  ;;  %6544 = vmatprep.subr.bf16.mxu0 %v6543_v23  ;;  %v2887_v27 = vld [vmem:[%s9694_s5 + $0x10b0] sm:$0xff]  ;;  %v6587_v23 = vpack.c.bf16 %v2916_v30, %v2915_v6  ;;  %v6561_v41 = vpack.c.bf16 %v2870_v49, %v2869_v51  ;;  %v6601_v6 = vpack.c.bf16 %v2906_v4, %v2905_v52  ;;  %v2877_v30 = vld [vmem:[%s9694_s5 + $0x1060] sm:$0xff] }
 0x235   :  { %v9178_v31 = vadd.f32 %v4924_v38, %v3035_v37  ;;  %v6563_v33 = vpack.c.bf16 %v2888_v22, %v2887_v27  ;;  %v2902_v37 = vld [vmem:[%s9694_s5 + $0x1128] sm:$0xff]  ;;  %v2889_v38 = vld [vmem:[%s9694_s5 + $0x10c0] sm:$0xff]  ;;  %v6603_v51 = vpack.c.bf16 %v2924_v8, %v2923_v7  ;;  %v2907_v49 = vld [vmem:[%s9694_s5 + $0x1150] sm:$0xff] }
 0x236   :  { %v2925_v27 = vld [vmem:[%s9694_s5 + $0x11e0] sm:$0xff]  ;;  %v2911_v45 = vld [vmem:[%s9694_s5 + $0x1170] sm:$0xff] }
 0x237   :  { %6518 = vmatpush3.bf16.msra.mxu1 %v6517_v5  ;;  %6546 = vmatpush3.bf16.msra.mxu0 %v6545_v39  ;;  %v2901_v5 = vld [vmem:[%s9694_s5 + $0x1120] sm:$0xff]  ;;  %v2890_v39 = vld [vmem:[%s9694_s5 + $0x10c8] sm:$0xff] }
 0x238   :  { %6548 = vmatprep.subr.bf16.mxu0 %v6547_v3  ;;  %6552 = vmatprep.subr.bf16.mxu1 %v6551_v32  ;;  %v6565_v3 = vpack.c.bf16 %v2872_v29, %v2871_v26  ;;  %v6593_v32 = vpack.c.bf16 %v2902_v37, %v2901_v5  ;;  %v6567_v44 = vpack.c.bf16 %v2890_v39, %v2889_v38  ;;  %v9344_v53 = vld [vmem:[%s9693_s4] sm:$0x3]  ;;  %v2880_v26 = vld [vmem:[%s9694_s5 + $0x1078] sm:$0xff]  ;;  %v2910_v37 = vld [vmem:[%s9694_s5 + $0x1168] sm:$0xff] }
 0x239   :  { %v1986_v29 = vrot.slane %v9125_v12, %v7552_v19  ;;  %v2909_v5 = vld [vmem:[%s9694_s5 + $0x1160] sm:$0xff]  ;;  %v2927_v38 = vld [vmem:[%s9694_s5 + $0x11f0] sm:$0xff]  ;;  %v2928_v12 = vld [vmem:[%s9694_s5 + $0x11f8] sm:$0xff] }
 0x23a   :  { %4013 = vmatmul.mubr.f32.vlgmr.msra.gmra.mrb[32].mxu1 %v1835_v63  ;;  %v2876_v63 = vld [vmem:[%s9694_s5 + $0x1058] sm:$0xff] }
 0x23b   :  { %6550 = vmatpush3.bf16.msra.mxu0 %v6549_v60  ;;  %6554 = vmatpush3.bf16.msra.mxu1 %v6553_v48  ;;  %v2922_v60 = vld [vmem:[%s9694_s5 + $0x11c8] sm:$0xff]  ;;  %v6569_v48 = vpack.c.bf16 %v2874_v46, %v2873_v43  ;;  %v2228_v43 = vrot.slane %v9344_v53, %v7378_v58  ;;  %v2063_v54 = vadd.f32 %v8769_v9, %v1986_v29  ;;  %v2947_v9 = vld [vmem:[%s9694_s5 + $0x1290] sm:$0xff] }
 0x23c   :  { %4152 = vmatprep.mubr.f32.mxu1 %v2068_v11  ;;  %6556 = vmatprep.subr.bf16.mxu1 %v6555_v42  ;;  %v6571_v42 = vpack.c.bf16 %v2892_v36, %v2891_v56  ;;  %v6599_v0 = vpack.c.bf16 %v2922_v60, %v2921_v50  ;;  %v6573_v11 = vpack.c.bf16 %v2876_v63, %v2875_v61  ;;  %v2929_v50 = vld [vmem:[%s9694_s5 + $0x1200] sm:$0xff]  ;;  %v2930_v60 = vld [vmem:[%s9694_s5 + $0x1208] sm:$0xff] }
 0x23d   :  { %6584 = vmatprep.subr.bf16.mxu0 %v6583_v16  ;;  %v2893_v16 = vld [vmem:[%s9694_s5 + $0x10e0] sm:$0xff]  ;;  %v6611_v56 = vpack.c.bf16 %v2928_v12, %v2927_v38  ;;  %v2309_v61 = vadd.f32 %v8939_v14, %v2228_v43  ;;  %v2067_v52 = vmax.f32 %v2063_v54, 0.0  ;;  %v2942_v12 = vld [vmem:[%s9694_s5 + $0x1268] sm:$0xff]  ;;  %v2944_v54 = vld [vmem:[%s9694_s5 + $0x1278] sm:$0xff] }
 0x23e   :  { %4083 = vmatmul.mubr.f32.vlgmr.msra.gmra.mrb[34].mxu0 %v1952_v28  ;;  %v2908_v28 = vld [vmem:[%s9694_s5 + $0x1158] sm:$0xff]  ;;  %v2949_v14 = vld [vmem:[%s9694_s5 + $0x12a0] sm:$0xff] }
 0x23f   :  { %6558 = vmatpush3.bf16.msra.mxu1 %v6557_v17  ;;  %6586 = vmatpush3.bf16.msra.mxu0 %v6585_v21  ;;  %v2878_v17 = vld [vmem:[%s9694_s5 + $0x1068] sm:$0xff]  ;;  %v6575_v21 = vpack.c.bf16 %v2894_v47, %v2893_v16  ;;  %v2931_v16 = vld [vmem:[%s9694_s5 + $0x1210] sm:$0xff]  ;;  %v2932_v47 = vld [vmem:[%s9694_s5 + $0x1218] sm:$0xff]  ;;  %v2312_v7 = vmax.f32 %v2309_v61, 0.0 }
 0x240   :  { %4222 = vmatprep.mubr.f32.mxu0 %v2190_v25  ;;  %6560 = vmatprep.subr.bf16.mxu1 %v6559_v15  ;;  %v2895_v15 = vld [vmem:[%s9694_s5 + $0x10f0] sm:$0xff]  ;;  %v6577_v25 = vpack.c.bf16 %v2878_v17, %v2877_v30  ;;  %v6621_v8 = vpack.c.bf16 %v2932_v47, %v2931_v16  ;;  %v2933_v30 = vld [vmem:[%s9694_s5 + $0x1220] sm:$0xff]  ;;  %v2934_v17 = vld [vmem:[%s9694_s5 + $0x1228] sm:$0xff] }
 0x241   :  { %6588 = vmatprep.subr.bf16.mxu0 %v6587_v23  ;;  %v2926_v23 = vld [vmem:[%s9694_s5 + $0x11e8] sm:$0xff] }
 0x243   :  { %6562 = vmatpush3.bf16.msra.mxu1 %v6561_v41  ;;  %6590 = vmatpush3.bf16.msra.mxu0 %v6589_v20  ;;  %v6605_v41 = vpack.c.bf16 %v2908_v28, %v2907_v49  ;;  %v2879_v20 = vld [vmem:[%s9694_s5 + $0x1070] sm:$0xff]  ;;  %v6625_v49 = vpack.c.bf16 %v2934_v17, %v2933_v30  ;;  %v6739_v30 = vmov 0.0|0.0   ;;  %v4299_v17 = vld [vmem:[%s9696_s7] sm:$0xff] }
 0x244   :  { %6564 = vmatprep.subr.bf16.mxu1 %v6563_v33  ;;  %6592 = vmatprep.subr.bf16.mxu0 %v6591_v34  ;;  %v6579_v33 = vpack.c.bf16 %v2896_v18, %v2895_v15  ;;  %v6607_v34 = vpack.c.bf16 %v2926_v23, %v2925_v27  ;;  %v2935_v15 = vld [vmem:[%s9694_s5 + $0x1230] sm:$0xff]  ;;  %v2953_v18 = vld [vmem:[%s9694_s5 + $0x12c0] sm:$0xff]  ;;  %v2954_v27 = vld [vmem:[%s9694_s5 + $0x12c8] sm:$0xff] }
 0x247   :  { %6566 = vmatpush3.bf16.msra.mxu1 %v6565_v3  ;;  %6594 = vmatpush3.bf16.msra.mxu0 %v6593_v32  ;;  %v2946_v3 = vld [vmem:[%s9694_s5 + $0x1288] sm:$0xff]  ;;  %v2102_v32 = vrot.slane %v9163_v35, %v7552_v19  ;;  %v2912_v35 = vld [vmem:[%s9694_s5 + $0x1178] sm:$0xff] }
 0x248   :  { %6568 = vmatprep.subr.bf16.mxu1 %v6567_v44  ;;  %6596 = vmatprep.subr.bf16.mxu0 %v6595_v1  ;;  %v6581_v44 = vpack.c.bf16 %v2880_v26, %v2879_v20  ;;  %v6609_v1 = vpack.c.bf16 %v2910_v37, %v2909_v5  ;;  %v6615_v36 = vpack.c.bf16 %v2946_v3, %v2945_v55  ;;  %v2956_v20 = vld [vmem:[%s9694_s5 + $0x12d8] sm:$0xff]  ;;  %v2957_v5 = vld [vmem:[%s9694_s5 + $0x12e0] sm:$0xff]  ;;  %v2958_v37 = vld [vmem:[%s9694_s5 + $0x12e8] sm:$0xff] }
 0x249   :  { %v6613_v63 = vpack.c.bf16 %v2912_v35, %v2911_v45  ;;  %v2959_v3 = vld [vmem:[%s9694_s5 + $0x12f0] sm:$0xff] }
 0x24a   :  { %v2943_v45 = vld [vmem:[%s9694_s5 + $0x1270] sm:$0xff] }
 0x24b   :  { %6570 = vmatpush3.bf16.msra.mxu1 %v6569_v48  ;;  %6598 = vmatpush3.bf16.msra.mxu0 %v6597_v62  ;;  %v2948_v62 = vld [vmem:[%s9694_s5 + $0x1298] sm:$0xff] }
 0x24c   :  { %6572 = vmatprep.subr.bf16.mxu1 %v6571_v42  ;;  %6600 = vmatprep.subr.bf16.mxu0 %v6599_v0  ;;  %v6617_v42 = vpack.c.bf16 %v2930_v60, %v2929_v50  ;;  %v2185_v0 = vadd.f32 %v8891_v59, %v2102_v32  ;;  %v6619_v4 = vpack.c.bf16 %v2948_v62, %v2947_v9  ;;  %v2950_v59 = vld [vmem:[%s9694_s5 + $0x12a8] sm:$0xff]  ;;  %v2960_v32 = vld [vmem:[%s9694_s5 + $0x12f8] sm:$0xff] }
 0x24d   :  { %v4957_v10 = vpop.f32.mrb[20].mxu1  ;;  %v6645_v60 = vpack.c.bf16 %v2944_v54, %v2943_v45 }
 0x24e   :  { %v4958_v22 = vpop.f32.mrb[21].mxu1 }
 0x24f   :  { %v4959_v24 = vadd.f32 %v4958_v22, %v4957_v10  ;;  %6574 = vmatpush3.bf16.msra.mxu1 %v6573_v11  ;;  %6602 = vmatpush3.bf16.msra.mxu0 %v6601_v6  ;;  %v2189_v11 = vmax.f32 %v2185_v0, 0.0  ;;  %v6623_v6 = vpack.c.bf16 %v2950_v59, %v2949_v14  ;;  %v2936_v10 = vld [vmem:[%s9694_s5 + $0x1238] sm:$0xff]  ;;  %v6631_v22 = vpack.c.bf16 %v2954_v27, %v2953_v18  ;;  %v4304_v18 = vld [vmem:[%s9696_s7 + $0x28] sm:$0xff] }
 0x250   :  { %6576 = vmatprep.subr.bf16.mxu1 %v6575_v21  ;;  %6604 = vmatprep.subr.bf16.mxu0 %v6603_v51  ;;  %v2951_v21 = vld [vmem:[%s9694_s5 + $0x12b0] sm:$0xff]  ;;  %v2952_v51 = vld [vmem:[%s9694_s5 + $0x12b8] sm:$0xff]  ;;  %v6629_v23 = vpack.c.bf16 %v2936_v10, %v2935_v15  ;;  %v4303_v10 = vld [vmem:[%s9696_s7 + $0x20] sm:$0xff] }
 0x251   :  { %v3175_v39 = vadd.f32 %v4959_v24, %v9178_v31  ;;  %v4992_v40 = vpop.f32.mrb[22].mxu0  ;;  %v6627_v28 = vpack.c.bf16 %v2952_v51, %v2951_v21  ;;  %v2937_v24 = vld [vmem:[%s9694_s5 + $0x1240] sm:$0xff]  ;;  %v4300_v21 = vld [vmem:[%s9696_s7 + $0x8] sm:$0xff]  ;;  %v4301_v51 = vld [vmem:[%s9696_s7 + $0x10] sm:$0xff] }
 0x252   :  { %v4993_v31 = vpop.f32.mrb[23].mxu0 }
 0x253   :  { %v4994_v46 = vadd.f32 %v4993_v31, %v4992_v40  ;;  %6578 = vmatpush3.bf16.msra.mxu1 %v6577_v25  ;;  %6606 = vmatpush3.bf16.msra.mxu0 %v6605_v41  ;;  %v2938_v25 = vld [vmem:[%s9694_s5 + $0x1248] sm:$0xff]  ;;  %v2955_v41 = vld [vmem:[%s9694_s5 + $0x12d0] sm:$0xff]  ;;  %v2941_v40 = vld [vmem:[%s9694_s5 + $0x1260] sm:$0xff] }
 0x254   :  { %6580 = vmatprep.subr.bf16.mxu1 %v6579_v33  ;;  %6608 = vmatprep.subr.bf16.mxu0 %v6607_v34  ;;  %v6633_v26 = vpack.c.bf16 %v2938_v25, %v2937_v24  ;;  %v6635_v29 = vpack.c.bf16 %v2956_v20, %v2955_v41  ;;  %v2939_v33 = vld [vmem:[%s9694_s5 + $0x1250] sm:$0xff]  ;;  %v2940_v34 = vld [vmem:[%s9694_s5 + $0x1258] sm:$0xff] }
 0x255   :  { %v9390_v48 = vadd.f32 %v4994_v46, %v3175_v39  ;;  %v6637_v38 = vpack.c.bf16 %v2940_v34, %v2939_v33  ;;  %v6639_v39 = vpack.c.bf16 %v2958_v37, %v2957_v5  ;;  %v6641_v46 = vpack.c.bf16 %v2942_v12, %v2941_v40  ;;  %v4305_v25 = vld [vmem:[%s9696_s7 + $0x30] sm:$0xff]  ;;  %v4306_v41 = vld [vmem:[%s9696_s7 + $0x38] sm:$0xff] }
 0x257   :  { %6582 = vmatpush3.bf16.msra.mxu1 %v6581_v44  ;;  %6610 = vmatpush3.bf16.msra.mxu0 %v6609_v1  ;;  %v2224_v44 = vrot.slane %v9344_v53, %v7552_v19  ;;  %v6643_v1 = vpack.c.bf16 %v2960_v32, %v2959_v3 }
 0x258   :  { %6612 = vmatprep.subr.bf16.mxu0 %v6611_v56  ;;  %6616 = vmatprep.subr.bf16.mxu1 %v6615_v36 }
 0x259   :  { %v2307_v9 = vadd.f32 %v8935_v13, %v2224_v44 }
 0x25a   :  { %4153 = vmatmul.mubr.f32.vlgmr.msra.gmra.mrb[34].mxu1 %v2067_v52 }
 0x25b   :  { %6614 = vmatpush3.bf16.msra.mxu0 %v6613_v63  ;;  %6618 = vmatpush3.bf16.msra.mxu1 %v6617_v42  ;;  %v2311_v62 = vmax.f32 %v2307_v9, 0.0 }
 0x25c   :  { %4292 = vmatprep.mubr.f32.mxu1 %v2312_v7  ;;  %6620 = vmatprep.subr.bf16.mxu1 %v6619_v4 }
 0x25d   :  { %6647 = vmatprep.subr.bf16.mxu0 %v6739_v30 }
 0x25e   :  { %4223 = vmatmul.mubr.f32.vlgmr.msra.gmra.mrb[36].mxu0 %v2189_v11 }
 0x25f   :  { %6622 = vmatpush3.bf16.msra.mxu1 %v6621_v8  ;;  %5556 = vmatprep.mubr.msk.f32.mxu0 %vm6740_vm3, %v6735_v2 }
 0x260   :  { %6624 = vmatprep.subr.bf16.mxu1 %v6623_v6 }
 0x263   :  { %6626 = vmatpush3.bf16.msra.mxu1 %v6625_v49  ;;  %v6648_v49 = vpack.c.bf16 %v4300_v21, %v4299_v17  ;;  %v4503_v17 = vld [vmem:[%s9701_s12 + $0x30] sm:$0xff] }
 0x264   :  { %6628 = vmatprep.subr.bf16.mxu1 %v6627_v28  ;;  %v4302_v28 = vld [vmem:[%s9696_s7 + $0x18] sm:$0xff] }
 0x265   :  { %6649 = vmatpush3.bf16.msra.mxu0 %v6648_v49  ;;  %v6651_v15 = vpack.c.bf16 %v4302_v28, %v4301_v51  ;;  %v4497_v51 = vld [vmem:[%s9701_s12] sm:$0xff]  ;;  %v4502_v49 = vld [vmem:[%s9701_s12 + $0x28] sm:$0xff]  ;;  %v4500_v28 = vld [vmem:[%s9701_s12 + $0x18] sm:$0xff] }
 0x266   :  { %6650 = vmatprep.subr.bf16.mxu0 %v6739_v30 }
 0x267   :  { %6630 = vmatpush3.bf16.msra.mxu1 %v6629_v23  ;;  %v6654_v23 = vpack.c.bf16 %v4304_v18, %v4303_v10  ;;  %v4505_v10 = vld [vmem:[%s9701_s12 + $0x40] sm:$0xff] }
 0x268   :  { %6632 = vmatprep.subr.bf16.mxu1 %v6631_v22  ;;  %v6675_v18 = vpack.c.bf16 %v4505_v10, %v4500_v28  ;;  %v4516_v10 = vld [vmem:[%s9701_s12 + $0x98] sm:$0xff] }
 0x269   :  { %6652 = vmatpush3.bf16.msra.mxu0 %v6651_v15  ;;  %v6661_v15 = vpack.c.bf16 %v4502_v49, %v4497_v51 }
 0x26a   :  { %6653 = vmatprep.subr.bf16.mxu0 %v6739_v30 }
 0x26b   :  { %6634 = vmatpush3.bf16.msra.mxu1 %v6633_v26 }
 0x26c   :  { %6636 = vmatprep.subr.bf16.mxu1 %v6635_v29  ;;  %v6657_v29 = vpack.c.bf16 %v4306_v41, %v4305_v25  ;;  %v4512_v25 = vld [vmem:[%s9701_s12 + $0x78] sm:$0xff] }
 0x26d   :  { %v5027_v55 = vpop.f32.mrb[22].mxu1  ;;  %6655 = vmatpush3.bf16.msra.mxu0 %v6654_v23  ;;  %v4513_v23 = vld [vmem:[%s9701_s12 + $0x80] sm:$0xff] }
 0x26e   :  { %v5028_v43 = vpop.f32.mrb[23].mxu1  ;;  %6656 = vmatprep.subr.bf16.mxu0 %v6739_v30 }
 0x26f   :  { %v5029_v31 = vadd.f32 %v5028_v43, %v5027_v55  ;;  %6638 = vmatpush3.bf16.msra.mxu1 %v6637_v38 }
 0x270   :  { %6640 = vmatprep.subr.bf16.mxu1 %v6639_v39 }
 0x271   :  { %v3315_v56 = vadd.f32 %v5029_v31, %v9390_v48  ;;  %v5062_v36 = vpop.f32.mrb[24].mxu0  ;;  %6658 = vmatpush3.bf16.msra.mxu0 %v6657_v29  ;;  %v4517_v29 = vld [vmem:[%s9701_s12 + $0xa0] sm:$0xff] }
 0x272   :  { %v5063_v35 = vpop.f32.mrb[25].mxu0  ;;  %5559 = vmatprep.subr.mxu0 %v6735_v2 }
 0x273   :  { %v5064_v50 = vadd.f32 %v5063_v35, %v5062_v36  ;;  %6642 = vmatpush3.bf16.msra.mxu1 %v6641_v46 }
 0x274   :  { %6644 = vmatprep.subr.bf16.mxu1 %v6643_v1 }
 0x275   :  { %v3385_v53 = vadd.f32 %v5064_v50, %v3315_v56 }
 0x277   :  { %6646 = vmatpush3.bf16.msra.mxu1 %v6645_v60 }
 0x27a   :  { %4293 = vmatmul.mubr.f32.vlgmr.msra.gmra.mrb[36].mxu1 %v2311_v62 }
 0x27b   :  { %4631 = vmatprep.mubr.f32.mxu1 %v6735_v2 }
 0x28d   :  { %v5097_v61 = vpop.f32.mrb[24].mxu1 }
 0x28e   :  { %v5098_v63 = vpop.f32.mrb[25].mxu1 }
 0x28f   :  { %v5099_v42 = vadd.f32 %v5098_v63, %v5097_v61 }
 0x291   :  { %v3455_v0 = vadd.f32 %v5099_v42, %v3385_v53  ;;  %v5132_v52 = vpop.f32.mrb[26].mxu0 }
 0x292   :  { %v5133_v48 = vpop.f32.mrb[27].mxu0 }
 0x293   :  { %v5134_v4 = vadd.f32 %v5133_v48, %v5132_v52 }
 0x295   :  { %v3525_v16 = vadd.f32 %v5134_v4, %v3455_v0  ;;  %v4842_v4 = vld [vmem:[%s9697_s8] ss:$0 sm:$0xff] }
 0x2ad   :  { %v5167_v47 = vpop.f32.mrb[26].mxu1 }
 0x2ae   :  { %v5168_v14 = vpop.f32.mrb[27].mxu1 }
 0x2af   :  { %v5169_v59 = vadd.f32 %v5168_v14, %v5167_v47 }
 0x2b1   :  { %v3595_v7 = vadd.f32 %v5169_v59, %v3525_v16  ;;  %v5202_v13 = vpop.f32.mrb[28].mxu0 }
 0x2b2   :  { %v5203_v8 = vpop.f32.mrb[29].mxu0 }
 0x2b3   :  { %v5204_v11 = vadd.f32 %v5203_v8, %v5202_v13  ;;  %v4399_v13 = vld [vmem:[%s9699_s9] sm:$0xff]  ;;  %v6741_v8 = vmov 0  }
 0x2b4   :  { %6711 = vset.pattern.permute.xlu1 %v6741_v8  ;;  %6712 = vset.pattern.permute.xlu0 %v6741_v8  ;;  %v4846_v8 = vld [vmem:[%s9704_s11] ss:$0 sm:$0xff] }
 0x2b5   :  { %v3665_v6 = vadd.f32 %v5204_v11, %v3595_v7  ;;  %v4400_v11 = vld [vmem:[%s9700_s2] sm:$0xff] }
 0x2b6   :  { %4404 = vperm.xlu1 %6711, %v4400_v11  }
 0x2cd   :  { %v5237_v27 = vpop.f32.mrb[28].mxu1 }
 0x2ce   :  { %v5238_v22 = vpop.f32.mrb[29].mxu1 }
 0x2cf   :  { %v5239_v24 = vadd.f32 %v5238_v22, %v5237_v27  ;;  %v4508_v27 = vld [vmem:[%s9701_s12 + $0x58] sm:$0xff]  ;;  %v4507_v22 = vld [vmem:[%s9701_s12 + $0x50] sm:$0xff] }
 0x2d0   :  { %v6665_v41 = vpack.c.bf16 %v4512_v25, %v4507_v22 }
 0x2d1   :  { %v3735_v20 = vadd.f32 %v5239_v24, %v3665_v6  ;;  %v5272_v26 = vpop.f32.mrb[30].mxu0  ;;  %v4498_v6 = vld [vmem:[%s9701_s12 + $0x8] sm:$0xff]  ;;  %v6663_v24 = vpack.c.bf16 %v4513_v23, %v4508_v27  ;;  %v4521_v27 = vld [vmem:[%s9701_s12 + $0xc0] sm:$0xff] }
 0x2d2   :  { %v5273_v33 = vpop.f32.mrb[31].mxu0  ;;  %v6659_v21 = vpack.c.bf16 %v4503_v17, %v4498_v6  ;;  %v4501_v17 = vld [vmem:[%s9701_s12 + $0x20] sm:$0xff]  ;;  %v4526_v23 = vld [vmem:[%s9701_s12 + $0xe8] sm:$0xff] }
 0x2d3   :  { %v5274_v34 = vadd.f32 %v5273_v33, %v5272_v26  ;;  %v4523_v26 = vld [vmem:[%s9701_s12 + $0xd0] sm:$0xff]  ;;  %v6698_v22 = vpack.c.bf16 %v4526_v23, %v4521_v27 }
 0x2d4   :  { %6660 = vmatprep.subr.bf16.mxu1 %v6659_v21  ;;  %v4506_v21 = vld [vmem:[%s9701_s12 + $0x48] sm:$0xff] }
 0x2d5   :  { %v3805_v5 = vadd.f32 %v5274_v34, %v3735_v20  ;;  %6662 = vmatpush1.bf16.msra.mxu1 %v6661_v15  ;;  %v4518_v20 = vld [vmem:[%s9701_s12 + $0xa8] sm:$0xff]  ;;  %v6692_v49 = vpack.c.bf16 %v4506_v21, %v4501_v17  ;;  %v4511_v15 = vld [vmem:[%s9701_s12 + $0x70] sm:$0xff] }
 0x2d6   :  { %6664 = vmatprep.subr.bf16.mxu1 %v6663_v24  ;;  %v6667_v34 = vpack.c.bf16 %v4523_v26, %v4518_v20  ;;  %v4531_v24 = vld [vmem:[%s9701_s12 + $0x110] sm:$0xff]  ;;  %v4537_v20 = vld [vmem:[%s9705_s13] sm:$0x1f]  ;;  %v4553_v26 = vsub.s32 3, %v7366_v57 }
 0x2d9   :  { %6666 = vmatpush1.bf16.msra.mxu1 %v6665_v41  ;;  %v4549_v41 = vsub.s32 2, %v7366_v57 }
 0x2da   :  { %6668 = vmatprep.subr.bf16.mxu1 %v6667_v34  ;;  %v4546_v34 = vrot.slane %v4537_v20, %v7378_v58 }
 0x2ed   :  { %v5307_v37 = vpop.f32.mrb[30].mxu1 }
 0x2ee   :  { %v5308_v38 = vpop.f32.mrb[31].mxu1 }
 0x2ef   :  { %v5309_v39 = vadd.f32 %v5308_v38, %v5307_v37  ;;  %v4389_v38 = vld [vmem:[%s9702_s1] sm:$0xff] }
 0x2f1   :  { %v3875_v40 = vadd.f32 %v5309_v39, %v3805_v5  ;;  %v5342_v12 = vpop.f32.mrb[32].mxu0  ;;  %v4522_v5 = vld [vmem:[%s9701_s12 + $0xc8] sm:$0xff]  ;;  %v4499_v39 = vld [vmem:[%s9701_s12 + $0x10] sm:$0xff] }
 0x2f2   :  { %v5343_v55 = vpop.f32.mrb[33].mxu0  ;;  %v6669_v37 = vpack.c.bf16 %v4522_v5, %v4517_v29  ;;  %v4542_v29 = vrot.slane %v4537_v20, %v7552_v19  ;;  %v4554_v5 = vrot.slane %v4537_v20, %v4553_v26  ;;  %v4557_v19 = vsub.s32 4, %v7366_v57 }
 0x2f3   :  { %v5344_v3 = vadd.f32 %v5343_v55, %v5342_v12  ;;  %v4510_v55 = vld [vmem:[%s9701_s12 + $0x68] sm:$0xff] }
 0x2f4   :  { %6670 = vmatpush1.bf16.msra.mxu1 %v6669_v37  ;;  %v4558_v58 = vrot.slane %v4537_v20, %v4557_v19 }
 0x2f5   :  { %v3945_v32 = vadd.f32 %v5344_v3, %v3875_v40  ;;  %v4504_v40 = vld [vmem:[%s9701_s12 + $0x38] sm:$0xff]  ;;  %v4515_v3 = vld [vmem:[%s9701_s12 + $0x90] sm:$0xff] }
 0x30d   :  { %v5377_v43 = vpop.f32.mrb[32].mxu1 }
 0x30e   :  { %v5378_v31 = vpop.f32.mrb[33].mxu1 }
 0x30f   :  { %v5379_v46 = vadd.f32 %v5378_v31, %v5377_v43  ;;  %v6677_v43 = vpack.c.bf16 %v4504_v40, %v4499_v39 }
 0x311   :  { %v4015_v44 = vadd.f32 %v5379_v46, %v3945_v32  ;;  %v5412_v1 = vpop.f32.mrb[34].mxu0  ;;  %v6679_v46 = vpack.c.bf16 %v4515_v3, %v4510_v55 }
 0x312   :  { %v5413_v45 = vpop.f32.mrb[35].mxu0 }
 0x313   :  { %v5414_v54 = vadd.f32 %v5413_v45, %v5412_v1  ;;  %v4514_v1 = vld [vmem:[%s9701_s12 + $0x88] sm:$0xff]  ;;  %v4520_v45 = vld [vmem:[%s9701_s12 + $0xb8] sm:$0xff] }
 0x315   :  { %v4085_v56 = vadd.f32 %v5414_v54, %v4015_v44  ;;  %v4509_v44 = vld [vmem:[%s9701_s12 + $0x60] sm:$0xff] }
 0x316   :  { %v4525_v54 = vld [vmem:[%s9701_s12 + $0xe0] sm:$0xff] }
 0x32d   :  { %v5447_v36 = vpop.f32.mrb[34].mxu1 }
 0x32e   :  { %v5448_v35 = vpop.f32.mrb[35].mxu1 }
 0x32f   :  { %v5449_v50 = vadd.f32 %v5448_v35, %v5447_v36  ;;  %v6683_v36 = vpack.c.bf16 %v4525_v54, %v4520_v45  ;;  %v4519_v35 = vld [vmem:[%s9701_s12 + $0xb0] sm:$0xff] }
 0x331   :  { %v4155_v60 = vadd.f32 %v5449_v50, %v4085_v56  ;;  %v5482_v9 = vpop.f32.mrb[36].mxu0  ;;  %v6681_v56 = vpack.c.bf16 %v4514_v1, %v4509_v44  ;;  %v4524_v50 = vld [vmem:[%s9701_s12 + $0xd8] sm:$0xff] }
 0x332   :  { %v5483_v53 = vpop.f32.mrb[37].mxu0 }
 0x333   :  { %v5484_v62 = vadd.f32 %v5483_v53, %v5482_v9  ;;  %v4528_v9 = vld [vmem:[%s9701_s12 + $0xf8] sm:$0xff]  ;;  %v4533_v53 = vld [vmem:[%s9701_s12 + $0x120] sm:$0xff] }
 0x335   :  { %v4225_v61 = vadd.f32 %v5484_v62, %v4155_v60  ;;  %v6685_v60 = vpack.c.bf16 %v4524_v50, %v4519_v35  ;;  %v6671_v62 = vpack.c.bf16 %v4533_v53, %v4528_v9 }
 0x337   :  { %6672 = vmatprep.subr.bf16.mxu1 %v6671_v62 }
 0x34d   :  { %v5517_v63 = vpop.f32.mrb[36].mxu1 }
 0x34e   :  { %v5518_v42 = vpop.f32.mrb[37].mxu1 }
 0x34f   :  { %v5519_v0 = vadd.f32 %v5518_v42, %v5517_v63  ;;  %v4532_v63 = vld [vmem:[%s9701_s12 + $0x118] sm:$0xff] }
 0x351   :  { %v4295_v52 = vadd.f32 %v5519_v0, %v4225_v61  ;;  %v4527_v61 = vld [vmem:[%s9701_s12 + $0xf0] sm:$0xff]  ;;  %v4530_v0 = vld [vmem:[%s9701_s12 + $0x108] sm:$0xff] }
 0x352   :  { %v6673_v42 = vpack.c.bf16 %v4532_v63, %v4527_v61 }
 0x353   :  { %v4298_v48 = vmax.f32 %v4295_v52, 0.0  ;;  %v4535_v52 = vld [vmem:[%s9701_s12 + $0x130] sm:$0xff] }
 0x354   :  { %6674 = vmatpush1.bf16.msra.mxu1 %v6673_v42 }
 0x355   :  { %5557 = vmatmul.mubr.msk.f32.vlgmr.msra.gmra.mrb[38].mxu0 %vm332_vm2, %v4298_v48  ;;  %v4529_v48 = vld [vmem:[%s9701_s12 + $0x100] sm:$0xff]  ;;  %6691 = vmatprep.subr.bf16.mxu1 %v6739_v30 }
 0x356   :  { %5561 = vmatprep.mubr.msk.f32.mxu0 %vm6740_vm3, %v6735_v2  ;;  %5560 = vmatpush3.msra.mxu0 %v4399_v13 }
 0x357   :  { %6676 = vmatprep.subr.bf16.mxu0 %v6675_v18  ;;  %v6695_v18 = vpack.c.bf16 %v4516_v10, %v4511_v15 }
 0x428   :  { %v4383_v16 = vpop.f32.mrb[38].mxu0 }
 0x429   :  { %v4384_v47 = vadd.f32 %v4842_v4, %v4383_v16  ;;  %v5558_v14 = vpop.f32.mrb[39].mxu0  ;;  %v6687_v4 = vpack.c.bf16 %v4535_v52, %v4530_v0  ;;  %v4534_v16 = vld [vmem:[%s9701_s12 + $0x128] sm:$0xff] }
 0x42a   :  { %v4844_v14 = vld [vmem:[%s9703_s10] ss:$0 sm:$0xff] }
 0x42b   :  { %4388 = vst.msk [vmem:[%s9698_s15] sm:$0xff] %vm4387_vm4, %v4384_v47  ;;  %v4390_v59 = vmul.f32 0.5, %v4384_v47  ;;  %s6742_s15 = smov 120  }
 0x42d   :  { %v4391_v7 = vmul.f32 1.442695, %v4390_v59  ;;  %v4405_v59 = vpop.permute.xlu1 %4404 }
 0x42f   :  { %6713 = vpow2.f32 %v4391_v7  ;;  %v4413_v7 = vmul.f32 %v4844_v14, %v4405_v59 }
 0x439   :  { %v6714_v33 = vpop.eup %6713 }
 0x43a   :  { %4394 = vrot.lane.b32.xlu0 %v6714_v33, %s6742_s15  ;;  %v4550_v33 = vrot.slane %v4537_v20, %v4549_v41 }
 0x4ac   :  { %v4395_v12 = vpop.permute.xlu0 %4394 }
 0x4ad   :  { %v4397_v32 = vmul.f32 %v4395_v12, %v4389_v38 }
 0x4af   :  { %v4398_v31 = vadd.f32 %v4397_v32, %v4384_v47  ;;  %v6689_v47 = vpack.c.bf16 %v4534_v16, %v4529_v48 }
 0x4b1   :  { %5562 = vmatmul.mubr.msk.f32.vlgmr.msra.gmra.mrb[40].mxu0 %vm4414_vm5, %v4398_v31 }
 0x4b2   :  { %6678 = vmatpush1.bf16.msra.mxu0 %v6677_v43  ;;  %4702 = vmatprep.mubr.f32.mxu0 %v6735_v2 }
 0x4b3   :  { %6680 = vmatprep.subr.bf16.mxu0 %v6679_v46 }
 0x4b6   :  { %6682 = vmatpush1.bf16.msra.mxu0 %v6681_v56 }
 0x4b7   :  { %6684 = vmatprep.subr.bf16.mxu0 %v6683_v36 }
 0x4ba   :  { %6686 = vmatpush1.bf16.msra.mxu0 %v6685_v60 }
 0x4bb   :  { %6688 = vmatprep.subr.bf16.mxu0 %v6687_v4 }
 0x4be   :  { %6690 = vmatpush1.bf16.msra.mxu0 %v6689_v47 }
 0x584   :  { %v4484_v13 = vpop.f32.mrb[40].mxu0 }
 0x585   :  { %v4485_v11 = vadd.f32 %v4484_v13, %v4413_v7  ;;  %v5563_v6 = vpop.f32.mrb[41].mxu0 }
 0x587   :  { %v4495_v51 = vadd.f32 %v4846_v8, %v4485_v11 }
 0x589   :  { %v4496_v28 = vmax.f32 %v4495_v51, 0.0 }
 0x58b   :  { %4847 = vmatmul.mubr.msk.f32.vlgmr.msra.gmra.mrb[38].mxu1 %vm332_vm2, %v4496_v28  ;;  %4848 = vmatmul.mubr.msk.f32.vlgmr.msra.gmra.mrb[42].mxu0 %vm332_vm2, %v4496_v28 }
 0x58c   :  { %6693 = vmatpush3.bf16.msra.mxu1 %v6692_v49  ;;  %5580 = vmatprep.mubr.msk.f32.mxu1 %vm6740_vm3, %v6735_v2  ;;  %v4536_v2 = vld [vmem:[%s9701_s12 + $0x138] sm:$0xff] }
 0x58d   :  { %6694 = vmatprep.subr.bf16.mxu1 %v6739_v30  ;;  %v6701_v25 = vpack.c.bf16 %v4536_v2, %v4531_v24 }
 0x590   :  { %6696 = vmatpush3.bf16.msra.mxu1 %v6695_v18 }
 0x591   :  { %6697 = vmatprep.subr.bf16.mxu1 %v6739_v30 }
 0x594   :  { %6699 = vmatpush3.bf16.msra.mxu1 %v6698_v22 }
 0x595   :  { %6700 = vmatprep.subr.bf16.mxu1 %v6739_v30 }
 0x598   :  { %6702 = vmatpush3.bf16.msra.mxu1 %v6701_v25 }
 0x59b   :  { %5581 = vmatmul.mubr.msk.f32.vlgmr.msra.gmra.mrb[40].mxu1 %vm332_vm2, %v4496_v28 }
 0x65e   :  { %v4633_v37 = vpop.f32.mrb[38].mxu1  ;;  %v4704_v38 = vpop.f32.mrb[42].mxu0 }
 0x65f   :  { %v4634_v30 = vadd.f32 %v4633_v37, %v4542_v29  ;;  %v4705_v39 = vadd.f32 %v4704_v38, %v4550_v33  ;;  %v4635_v40 = vpop.f32.mrb[39].mxu1  ;;  %v4706_v12 = vpop.f32.mrb[43].mxu0 }
 0x660   :  { %v4636_v55 = vadd.f32 %v4635_v40, %v4546_v34  ;;  %v4707_v3 = vadd.f32 %v4706_v12, %v4554_v5 }
 0x661   :  { %v4850_v32 = vmul.f32 -1.442695, %v4634_v30  ;;  %v4852_v43 = vmul.f32 -1.442695, %v4705_v39 }
 0x662   :  { %v4851_v31 = vmul.f32 -1.442695, %v4636_v55  ;;  %v4853_v46 = vmul.f32 -1.442695, %v4707_v3 }
 0x663   :  { %6715 = vpow2.f32 %v4850_v32 }
 0x664   :  { %6717 = vpow2.f32 %v4852_v43 }
 0x665   :  { %6719 = vpow2.f32 %v4851_v31 }
 0x666   :  { %6721 = vpow2.f32 %v4853_v46 }
 0x66d   :  { %v6716_v44 = vpop.eup %6715 }
 0x66e   :  { %v6718_v1 = vpop.eup %6717  ;;  %v4794_v45 = vadd.f32 1.0, %v6716_v44  ;;  %v4775_v54 = vpop.f32.mrb[40].mxu1 }
 0x66f   :  { %v6720_v56 = vpop.eup %6719  ;;  %v4796_v36 = vadd.f32 1.0, %v6718_v1  ;;  %v4776_v35 = vadd.f32 %v4775_v54, %v4558_v58  ;;  %v5582_v50 = vpop.f32.mrb[41].mxu1 }
 0x670   :  { %v6722_v60 = vpop.eup %6721  ;;  %6723 = vrcp.f32 %v4794_v45  ;;  %v4795_v9 = vadd.f32 1.0, %v6720_v56 }
 0x671   :  { %6725 = vrcp.f32 %v4796_v36  ;;  %v4797_v53 = vadd.f32 1.0, %v6722_v60  ;;  %v4854_v62 = vmul.f32 -1.442695, %v4776_v35 }
 0x672   :  { %6727 = vrcp.f32 %v4795_v9 }
 0x673   :  { %6729 = vrcp.f32 %v4797_v53 }
 0x674   :  { %6731 = vpow2.f32 %v4854_v62 }
 0x67a   :  { %v6724_v61 = vpop.eup %6723 }
 0x67b   :  { %v6726_v57 = vpop.eup %6725  ;;  %4809 = vst [vmem:[%s9706_s14] sm:$0xff] %v6724_v61 }
 0x67c   :  { %v6728_v63 = vpop.eup %6727  ;;  %4811 = vst [vmem:[%s9706_s14 + $0x10] sm:$0xff] %v6726_v57 }
 0x67d   :  { %v6730_v42 = vpop.eup %6729  ;;  %4810 = vst [vmem:[%s9706_s14 + $0x8] sm:$0xff] %v6728_v63 }
 0x67e   :  { %v6732_v0 = vpop.eup %6731  ;;  %4812 = vst [vmem:[%s9706_s14 + $0x18] sm:$0xff] %v6730_v42 }
 0x67f   :  { %v4798_v52 = vadd.f32 1.0, %v6732_v0 }
 0x681   :  { %6733 = vrcp.f32 %v4798_v52 }
 0x68b   :  { %v6734_v48 = vpop.eup %6733 }
 0x68c   :  { %4813 = vst [vmem:[%s9706_s14 + $0x20] sm:$0xff] %v6734_v48 }

</bundles_post_ra>
